<compile_context>
chip_gen: v7x
topology: tpu7x:2x2x1
jax: 0.10.0
libtpu: 0.0.40
codegen_flags: <defaults>
</compile_context>

<pallas_src>
import math
import functools

import jax
import jax.numpy as jnp
from jax.experimental import pallas as pl
from jax.experimental.pallas import tpu as pltpu


def _round_up(v, m):
    return ((v + m - 1) // m) * m


def _latent_transformer_kernel(x_ref, w_ref, b_ref, o_ref, *,
                               num_layers, negative_slope, final_gain):
    """Fused PixelNorm + N x EqualLinear(fused_lrelu) on one batch tile.

    x_ref : [tm, D]     activation tile (double-buffered over the batch grid)
    w_ref : [L, D, D]   VMEM-resident weights, pre-transposed to (in, out) and
                        pre-scaled (EqualLinear scale, and sqrt(2) gain of the
                        previous activation folded into layers 1..L-1)
    b_ref : [L, 1, D]   VMEM-resident biases, pre-scaled by lr_mul (f32)
    o_ref : [tm, D]     output tile
    """
    x = x_ref[...].astype(jnp.float32)

    # PixelNorm over the feature (lane) axis, in f32.
    ms = jnp.mean(x * x, axis=-1, keepdims=True)
    h = x * jax.lax.rsqrt(ms + 1e-8)

    w_dtype = w_ref.dtype

    # Fully unrolled layer loop: activation stays resident in vregs/VMEM.
    # Each matmul is a single MXU op (weights already in [K, N] layout, so no
    # in-kernel transpose), f32 accumulation.
    for l in range(num_layers):
        y = jnp.dot(h.astype(w_dtype), w_ref[l],
                    preferred_element_type=jnp.float32) + b_ref[l]
        # leaky_relu(y, s) == max(y, s*y) for 0 < s < 1; the sqrt(2) gain is
        # folded into the next layer's weights (final layer handled below).
        h = jnp.maximum(y, y * negative_slope)

    o_ref[...] = (h * final_gain).astype(o_ref.dtype)


def prepare_params(weights_pt, biases, *, lr_mul=0.01, act_gain=2.0 ** 0.5,
                   weight_dtype=jnp.bfloat16):
    """One-time parameter prep (NOT on the per-forward path).

    weights_pt : list of L arrays [out_dim, in_dim]  (PyTorch layout)
    biases     : list of L arrays [out_dim]
    Returns (w_eff [L, in, out] in weight_dtype, b_eff [L, out] f32) with the
    EqualLinear scale and the sqrt(2) activation gain of the previous layer
    folded into the weights.
    """
    D = weights_pt[0].shape[1]
    scale = (1.0 / math.sqrt(D)) * lr_mul
    w_list = []
    for l, W in enumerate(weights_pt):
        gain = scale * (act_gain if l > 0 else 1.0)
        w_list.append((W.astype(jnp.float32).T * gain).astype(weight_dtype))
    w_eff = jnp.stack(w_list)                                   # [L, D, D]
    b_eff = jnp.stack(biases).astype(jnp.float32) * lr_mul      # [L, D]
    return w_eff, b_eff


def latent_transformer_forward(x, w_eff, b_eff, *, block_rows=512,
                               act_gain=2.0 ** 0.5, negative_slope=0.2):
    """Fused forward pass.

    x     : [B, D]      input latents
    w_eff : [L, D, D]   prepared weights (see prepare_params)
    b_eff : [L, D]      prepared biases (lr_mul already applied)
    """
    B, D = x.shape
    L = w_eff.shape[0]
    assert w_eff.shape == (L, D, D), "weights must be [L, in_dim, out_dim]"
    assert b_eff.shape == (L, D)
    assert D % 128 == 0, "latent_dim must be a multiple of 128 (lane width)"

    # Batch tile: multiple of 8 sublanes.  When the (padded) batch is >= 16
    # rows, make sure the grid has at least 2 steps so both v7x TensorCores
    # get work under the "parallel" semantics.
    B8 = _round_up(B, 8)
    if B8 <= block_rows:
        tm = _round_up((B8 + 1) // 2, 8) if B8 >= 16 else B8
    else:
        tm = block_rows
    B_pad = _round_up(B8, tm)
    x_p = x if B_pad == B else jnp.pad(x, ((0, B_pad - B), (0, 0)))

    b3 = b_eff.reshape(L, 1, D).astype(jnp.float32)

    # VMEM budget: single-buffered resident weights/biases + double-buffered
    # activation in/out tiles + f32 intermediates headroom.  Cap at 64 MiB
    # (v7x physical VMEM per TC).
    w_bytes = int(w_eff.size) * jnp.dtype(w_eff.dtype).itemsize
    b_bytes = int(b3.size) * 4
    io_bytes = 2 * 2 * tm * D * jnp.dtype(x.dtype).itemsize
    scratch_bytes = 6 * tm * D * 4
    vmem_limit = int(min(max(32 << 20,
                             2 * (w_bytes + b_bytes + io_bytes + scratch_bytes)),
                         64 << 20))

    kernel = functools.partial(
        _latent_transformer_kernel,
        num_layers=L, negative_slope=negative_slope, final_gain=act_gain)

    out = pl.pallas_call(
        kernel,
        out_shape=jax.ShapeDtypeStruct((B_pad, D), x.dtype),
        grid=(B_pad // tm,),
        in_specs=[
            pl.BlockSpec((tm, D), lambda i: (i, 0)),               # activations
            pl.BlockSpec(memory_space=pltpu.MemorySpace.VMEM),     # weights: one resident copy
            pl.BlockSpec(memory_space=pltpu.MemorySpace.VMEM),     # biases:  one resident copy
        ],
        out_specs=pl.BlockSpec((tm, D), lambda i: (i, 0)),
        compiler_params=pltpu.CompilerParams(
            dimension_semantics=("parallel",),   # shard batch tiles on v7x 2 TCs
            vmem_limit_bytes=vmem_limit),
    )(x_p, w_eff, b3)

    return out[:B] if B_pad != B else out


def _reference(x, weights_pt, biases, *, lr_mul=0.01):
    """Pure-JAX reference mirroring the PyTorch module (weights [out, in])."""
    D = x.shape[-1]
    scale = (1.0 / math.sqrt(D)) * lr_mul
    h = x * jax.lax.rsqrt(jnp.mean(x * x, axis=1, keepdims=True) + 1e-8)
    for W, b in zip(weights_pt, biases):
        out = jnp.dot(h, (W * scale).T, precision=jax.lax.Precision.HIGHEST)
        y = out + b * lr_mul
        h = jnp.where(y >= 0, y, 0.2 * y) * (2.0 ** 0.5)
    return h


if __name__ == "__main__":
    key = jax.random.PRNGKey(0)
    latent_dim = 512        # module default
    num_layers = 4
    batch = 8
    lr_mul = 0.01

    keys = jax.random.split(key, num_layers + 1)
    x = jax.random.normal(keys[0], (batch, latent_dim), jnp.float32)

    # PyTorch init: weight = randn(out, in) / lr_mul ; bias = zeros(out)
    weights_pt = [
        jax.random.normal(keys[1 + l], (latent_dim, latent_dim), jnp.float32) / lr_mul
        for l in range(num_layers)
    ]
    biases = [jnp.zeros((latent_dim,), jnp.float32) for _ in range(num_layers)]

    ref = _reference(x, weights_pt, biases, lr_mul=lr_mul)

    # Exactness check: f32 weight path.
    w_f32, b_f32 = prepare_params(weights_pt, biases, lr_mul=lr_mul,
                                  weight_dtype=jnp.float32)
    out_f32 = jax.block_until_ready(latent_transformer_forward(x, w_f32, b_f32))
    assert out_f32.shape == (batch, latent_dim)
    assert jnp.allclose(out_f32, ref, atol=1e-2, rtol=1e-2), "f32 path mismatch"

    # Default fast path: bf16 weights/activations into the MXU, f32 accumulate.
    w_bf16, b_bf16 = prepare_params(weights_pt, biases, lr_mul=lr_mul,
                                    weight_dtype=jnp.bfloat16)
    out_bf16 = jax.block_until_ready(latent_transformer_forward(x, w_bf16, b_bf16))
    assert out_bf16.shape == (batch, latent_dim)
    assert jnp.allclose(out_bf16, ref, atol=1e-1, rtol=1e-1), "bf16 path mismatch"

    print("KERNEL_OK")
</pallas_src>

<mosaic_0001>
module attributes {stable_mosaic.version = 11 : i64} {
  func.func @_latent_transformer_kernel(%arg0: i32, %arg1: memref<8x512xf32, #tpu.memory_space<vmem>>, %arg2: memref<4x512x512xf32, #tpu.memory_space<vmem>>, %arg3: memref<4x1x512xf32, #tpu.memory_space<vmem>>, %arg4: memref<8x512xf32, #tpu.memory_space<vmem>>) attributes {dimension_semantics = [#tpu.dimension_semantics<parallel>], iteration_bounds = array<i64: 1>, scalar_prefetch = 0 : i64, scratch_operands = 0 : i64, tpu.core_type = #tpu.core_type<tc>, window_params = [{transform_indices = @transform_0, window_bounds = array<i64: 8, 512>}, {pipeline_mode = #tpu.pipeline_mode<synchronous>, transform_indices = @transform_1, window_bounds = array<i64: 4, 512, 512>}, {pipeline_mode = #tpu.pipeline_mode<synchronous>, transform_indices = @transform_2, window_bounds = array<i64: 4, 1, 512>}, {transform_indices = @transform_3, window_bounds = array<i64: 8, 512>}]} {
    %c0 = arith.constant 0 : index
    %c0_0 = arith.constant 0 : index
    %0 = vector.load %arg1[%c0, %c0_0] : memref<8x512xf32, #tpu.memory_space<vmem>>, vector<8x512xf32>
    %1 = arith.mulf %0, %0 : vector<8x512xf32>
    %cst = arith.constant dense<0.000000e+00> : vector<8xf32>
    %2 = vector.multi_reduction <add>, %1, %cst [1] : vector<8x512xf32> to vector<8xf32>
    %3 = vector.shape_cast %2 : vector<8xf32> to vector<8x1xf32>
    %cst_1 = arith.constant 5.120000e+02 : f32
    %4 = vector.broadcast %cst_1 : f32 to vector<8x1xf32>
    %5 = arith.divf %3, %4 : vector<8x1xf32>
    %cst_2 = arith.constant 9.99999993E-9 : f32
    %6 = vector.broadcast %cst_2 : f32 to vector<8x1xf32>
    %7 = arith.addf %5, %6 : vector<8x1xf32>
    %8 = math.rsqrt %7 : vector<8x1xf32>
    %9 = vector.broadcast %8 : vector<8x1xf32> to vector<8x512xf32>
    %10 = arith.mulf %0, %9 : vector<8x512xf32>
    %c0_3 = arith.constant 0 : index
    %c0_4 = arith.constant 0 : index
    %c0_5 = arith.constant 0 : index
    %11 = vector.load %arg2[%c0_3, %c0_4, %c0_5] : memref<4x512x512xf32, #tpu.memory_space<vmem>>, vector<1x512x512xf32>
    %12 = vector.shape_cast %11 : vector<1x512x512xf32> to vector<512x512xf32>
    %cst_6 = arith.constant dense<0.000000e+00> : vector<8x512xf32>
    %13 = tpu.matmul %10, %12, %cst_6 {dimension_numbers = #tpu.dot_dimension_numbers<[1], [0], [0], [1], [0, 0, 1, 1], [], []>} : vector<8x512xf32>, vector<512x512xf32>, vector<8x512xf32> -> vector<8x512xf32>
    %c0_7 = arith.constant 0 : index
    %c0_8 = arith.constant 0 : index
    %c0_9 = arith.constant 0 : index
    %14 = vector.load %arg3[%c0_7, %c0_8, %c0_9] : memref<4x1x512xf32, #tpu.memory_space<vmem>>, vector<1x1x512xf32>
    %15 = vector.shape_cast %14 : vector<1x1x512xf32> to vector<1x512xf32>
    %16 = vector.broadcast %15 : vector<1x512xf32> to vector<8x512xf32>
    %17 = arith.addf %13, %16 : vector<8x512xf32>
    %cst_10 = arith.constant 2.000000e-01 : f32
    %18 = vector.broadcast %cst_10 : f32 to vector<8x512xf32>
    %19 = arith.mulf %17, %18 : vector<8x512xf32>
    %20 = arith.maximumf %17, %19 : vector<8x512xf32>
    %c1 = arith.constant 1 : index
    %c0_11 = arith.constant 0 : index
    %c0_12 = arith.constant 0 : index
    %21 = vector.load %arg2[%c1, %c0_11, %c0_12] : memref<4x512x512xf32, #tpu.memory_space<vmem>>, vector<1x512x512xf32>
    %22 = vector.shape_cast %21 : vector<1x512x512xf32> to vector<512x512xf32>
    %cst_13 = arith.constant dense<0.000000e+00> : vector<8x512xf32>
    %23 = tpu.matmul %20, %22, %cst_13 {dimension_numbers = #tpu.dot_dimension_numbers<[1], [0], [0], [1], [0, 0, 1, 1], [], []>} : vector<8x512xf32>, vector<512x512xf32>, vector<8x512xf32> -> vector<8x512xf32>
    %c1_14 = arith.constant 1 : index
    %c0_15 = arith.constant 0 : index
    %c0_16 = arith.constant 0 : index
    %24 = vector.load %arg3[%c1_14, %c0_15, %c0_16] : memref<4x1x512xf32, #tpu.memory_space<vmem>>, vector<1x1x512xf32>
    %25 = vector.shape_cast %24 : vector<1x1x512xf32> to vector<1x512xf32>
    %26 = vector.broadcast %25 : vector<1x512xf32> to vector<8x512xf32>
    %27 = arith.addf %23, %26 : vector<8x512xf32>
    %cst_17 = arith.constant 2.000000e-01 : f32
    %28 = vector.broadcast %cst_17 : f32 to vector<8x512xf32>
    %29 = arith.mulf %27, %28 : vector<8x512xf32>
    %30 = arith.maximumf %27, %29 : vector<8x512xf32>
    %c2 = arith.constant 2 : index
    %c0_18 = arith.constant 0 : index
    %c0_19 = arith.constant 0 : index
    %31 = vector.load %arg2[%c2, %c0_18, %c0_19] : memref<4x512x512xf32, #tpu.memory_space<vmem>>, vector<1x512x512xf32>
    %32 = vector.shape_cast %31 : vector<1x512x512xf32> to vector<512x512xf32>
    %cst_20 = arith.constant dense<0.000000e+00> : vector<8x512xf32>
    %33 = tpu.matmul %30, %32, %cst_20 {dimension_numbers = #tpu.dot_dimension_numbers<[1], [0], [0], [1], [0, 0, 1, 1], [], []>} : vector<8x512xf32>, vector<512x512xf32>, vector<8x512xf32> -> vector<8x512xf32>
    %c2_21 = arith.constant 2 : index
    %c0_22 = arith.constant 0 : index
    %c0_23 = arith.constant 0 : index
    %34 = vector.load %arg3[%c2_21, %c0_22, %c0_23] : memref<4x1x512xf32, #tpu.memory_space<vmem>>, vector<1x1x512xf32>
    %35 = vector.shape_cast %34 : vector<1x1x512xf32> to vector<1x512xf32>
    %36 = vector.broadcast %35 : vector<1x512xf32> to vector<8x512xf32>
    %37 = arith.addf %33, %36 : vector<8x512xf32>
    %cst_24 = arith.constant 2.000000e-01 : f32
    %38 = vector.broadcast %cst_24 : f32 to vector<8x512xf32>
    %39 = arith.mulf %37, %38 : vector<8x512xf32>
    %40 = arith.maximumf %37, %39 : vector<8x512xf32>
    %c3 = arith.constant 3 : index
    %c0_25 = arith.constant 0 : index
    %c0_26 = arith.constant 0 : index
    %41 = vector.load %arg2[%c3, %c0_25, %c0_26] : memref<4x512x512xf32, #tpu.memory_space<vmem>>, vector<1x512x512xf32>
    %42 = vector.shape_cast %41 : vector<1x512x512xf32> to vector<512x512xf32>
    %cst_27 = arith.constant dense<0.000000e+00> : vector<8x512xf32>
    %43 = tpu.matmul %40, %42, %cst_27 {dimension_numbers = #tpu.dot_dimension_numbers<[1], [0], [0], [1], [0, 0, 1, 1], [], []>} : vector<8x512xf32>, vector<512x512xf32>, vector<8x512xf32> -> vector<8x512xf32>
    %c3_28 = arith.constant 3 : index
    %c0_29 = arith.constant 0 : index
    %c0_30 = arith.constant 0 : index
    %44 = vector.load %arg3[%c3_28, %c0_29, %c0_30] : memref<4x1x512xf32, #tpu.memory_space<vmem>>, vector<1x1x512xf32>
    %45 = vector.shape_cast %44 : vector<1x1x512xf32> to vector<1x512xf32>
    %46 = vector.broadcast %45 : vector<1x512xf32> to vector<8x512xf32>
    %47 = arith.addf %43, %46 : vector<8x512xf32>
    %cst_31 = arith.constant 2.000000e-01 : f32
    %48 = vector.broadcast %cst_31 : f32 to vector<8x512xf32>
    %49 = arith.mulf %47, %48 : vector<8x512xf32>
    %50 = arith.maximumf %47, %49 : vector<8x512xf32>
    %cst_32 = arith.constant 1.41421354 : f32
    %51 = vector.broadcast %cst_32 : f32 to vector<8x512xf32>
    %52 = arith.mulf %50, %51 : vector<8x512xf32>
    %c0_33 = arith.constant 0 : index
    %c0_34 = arith.constant 0 : index
    %53 = vector.load %arg4[%c0_33, %c0_34] : memref<8x512xf32, #tpu.memory_space<vmem>>, vector<8x512xf32>
    tpu.vector_store %arg4[%c0_33, %c0_34], %52 {strides = array<i32>} : memref<8x512xf32, #tpu.memory_space<vmem>>, vector<8x512xf32>,
    return
  }
  func.func @transform_0(%arg0: i32) -> (i32, i32) {
    %c0_i32 = arith.constant 0 : i32
    %c0_i32_0 = arith.constant 0 : i32
    return %arg0, %c0_i32 : i32, i32
  }
  func.func @transform_1(%arg0: i32) -> (i32, i32, i32) {
    %c0_i32 = arith.constant 0 : i32
    %c0_i32_0 = arith.constant 0 : i32
    %c0_i32_1 = arith.constant 0 : i32
    %c0_i32_2 = arith.constant 0 : i32
    return %c0_i32, %c0_i32_0, %c0_i32_1 : i32, i32, i32
  }
  func.func @transform_2(%arg0: i32) -> (i32, i32, i32) {
    %c0_i32 = arith.constant 0 : i32
    %c0_i32_0 = arith.constant 0 : i32
    %c0_i32_1 = arith.constant 0 : i32
    %c0_i32_2 = arith.constant 0 : i32
    return %c0_i32, %c0_i32_0, %c0_i32_1 : i32, i32, i32
  }
  func.func @transform_3(%arg0: i32) -> (i32, i32) {
    %c0_i32 = arith.constant 0 : i32
    %c0_i32_0 = arith.constant 0 : i32
    return %arg0, %c0_i32 : i32, i32
  }
}

</mosaic_0001>

<bundles_post_ra>
// kernel: tpu_custom_call.1
= control target key start
LH: loop header
LB: loop body
LE: loop exit
PB: predicated region body
PF: predicated region fallthrough
CT: control target
= control target key end

     0   :  { %8 = vsyncpa [#allocation3], 0  ;;  %s3700_s0 = inlined_call_operand.hbm [shape: f32[8,512], index: 0, kind: input, shape index: {}]   ;;  %s3701_s1 = inlined_call_operand.hbm [shape: f32[4,512,512], index: 1, kind: input, shape index: {}]   ;;  %s3702_s2 = inlined_call_operand.hbm [shape: f32[4,1,512], index: 2, kind: input, shape index: {}]   ;;  %s3703_s3 = inlined_call_operand.hbm [shape: f32[8,512], index: 3, kind: output, shape index: {}]  }
   0x1   :  { %9 = vsyncpa [#allocation6], 0 }
   0x2   :  { %10 = vsyncpa [#allocation4], 0  ;;  %s3546_s12 = smov [#allocation5]   ;;  %s3452_s16 = scalar_lea.hbm %s3701_s1, 131072 }
   0x3   :  { %s26_s13 = sshll.u32 %s3546_s12, 4  ;;  %p3453_p0 = scmp.ne.s32.totalorder %s3701_s1, %s3452_s16  ;;  %s27_s13 = int_to_ptr.vmem [resolvable:$true] %s26_s13 }
   0x4   :  { %p3456_p1 = scmp.lt.u32.totalorder %s3452_s16, %s3701_s1 }
   0x6   :  { %p3458_p2 = pnand %p3456_p1, %p3453_p0 }
   0x8   :  { %3461 = shalt.err (!%p3458_p2)
}
   0x9   :  { %s3462_s21 = scalar_lea.vmem %s27_s13, 131072  ;;  %p3467_p4 = scmp.lt.s32.totalorder %s27_s13, %s27_s13 }
   0xa   :  { %p3463_p3 = scmp.ne.s32.totalorder %s27_s13, %s3462_s21  ;;  %p3468_p5 = scmp.lt.s32.totalorder %s3462_s21, %s3462_s21 }
   0xc   :  { %p3469_p6 = por %p3468_p5, %p3467_p4 }
   0xe   :  { %p3470_p7 = pnand %p3469_p6, %p3463_p3 }
  0x10   :  { %3473 = shalt.err (!%p3470_p7)
}
  0x11   :  { %s3547_s22 = smov 512   ;;  %s3548_s23 = smov 32  }
  0x12   :  { %32 = dma.hbm_to_vmem [thread:$0]  %s3701_s1, 131072, %s27_s13, [#allocation6], %s3547_s22, %s3547_s22, %s3548_s23  }
  0x13   :  { %s3549_s26 = smov [#allocation2]   ;;  %s3550_s28 = smov [#allocation7]  }
  0x14   :  { %s17_s27 = sshll.u32 %s3549_s26, 4  ;;  %s38_s29 = sshll.u32 %s3550_s28, 4  ;;  %s18_s27 = int_to_ptr.vmem [resolvable:$true] %s17_s27  ;;  %s39_s29 = int_to_ptr.vmem [resolvable:$true] %s38_s29 }
  0x15   :  { %s3474_s5 = scalar_lea.hbm %s3700_s0, 512 }
  0x16   :  { %p3475_p8 = scmp.ne.s32.totalorder %s3700_s0, %s3474_s5  ;;  %p3478_p9 = scmp.lt.u32.totalorder %s3474_s5, %s3700_s0 }
  0x18   :  { %p3480_p10 = pnand %p3478_p9, %p3475_p8 }
  0x1a   :  { %3483 = shalt.err (!%p3480_p10)
}
  0x1b   :  { %s3484_s1 = scalar_lea.vmem %s18_s27, 512  ;;  %p3489_p12 = scmp.lt.s32.totalorder %s18_s27, %s18_s27 }
  0x1c   :  { %p3485_p11 = scmp.ne.s32.totalorder %s18_s27, %s3484_s1  ;;  %p3490_p13 = scmp.lt.s32.totalorder %s3484_s1, %s3484_s1 }
  0x1e   :  { %p3491_p0 = por %p3490_p13, %p3489_p12 }
  0x20   :  { %p3492_p1 = pnand %p3491_p0, %p3485_p11 }
  0x22   :  { %3495 = shalt.err (!%p3492_p1)
}
  0x23   :  { %20 = dma.hbm_to_vmem [thread:$0]  %s3700_s0, 512, %s18_s27, [#allocation3]  }
  0x24   :  { %s3496_s14 = scalar_lea.hbm %s3702_s2, 256 }
  0x25   :  { %p3497_p2 = scmp.ne.s32.totalorder %s3702_s2, %s3496_s14  ;;  %p3500_p3 = scmp.lt.u32.totalorder %s3496_s14, %s3702_s2 }
  0x27   :  { %p3502_p4 = pnand %p3500_p3, %p3497_p2 }
  0x29   :  { %3505 = shalt.err (!%p3502_p4)
}
  0x2a   :  { %s3506_s19 = scalar_lea.vmem %s39_s29, 256  ;;  %p3511_p6 = scmp.lt.s32.totalorder %s39_s29, %s39_s29 }
  0x2b   :  { %p3507_p5 = scmp.ne.s32.totalorder %s39_s29, %s3506_s19  ;;  %p3512_p7 = scmp.lt.s32.totalorder %s3506_s19, %s3506_s19 }
  0x2d   :  { %p3513_p8 = por %p3512_p7, %p3511_p6 }
  0x2f   :  { %p3514_p9 = pnand %p3513_p8, %p3507_p5 }
  0x31   :  { %3517 = shalt.err (!%p3514_p9)
}
  0x32   :  { %s3551_s0 = smov 64   ;;  %s3552_s20 = smov 4  }
  0x33   :  { %44 = dma.hbm_to_vmem [thread:$0]  %s3702_s2, 256, %s39_s29, [#allocation6], %s3551_s0, %s3551_s0, %s3552_s20  }
  0x34   :  { %3540 = dma.done.wait [#allocation3], 512  }
  0x35   :  { %3541 = vsyncadd [#allocation3], 4294966784 }
  0x36   :  { %3542 = dma.done.wait [#allocation6], 131328  }
  0x37   :  { %3543 = vsyncadd [#allocation6], 4294835968  ;;  %v3610_v0 = vld [vmem:[#allocation2] sm:$0xff]  ;;  %v3612_v1 = vld [vmem:[#allocation2 + $0x8] sm:$0xff]  ;;  %s3553_s2 = smov [#allocation8]  }
  0x38   :  { %v56_v2 = vld [vmem:[#allocation2 + $0x10] sm:$0xff]  ;;  %v3614_v3 = vld [vmem:[#allocation2 + $0x18] sm:$0xff]  ;;  %v58_v4 = vmul.f32 %v3610_v0, %v3610_v0  ;;  %v59_v5 = vmul.f32 %v3612_v1, %v3612_v1  ;;  %v76_v7 = vld [vmem:[#allocation5 + $0x8] sm:$0xff]  ;;  %s2375_s23 = sshll.u32 %s3553_s2, 4  ;;  %s2376_s23 = int_to_ptr.vmem [resolvable:$true] %s2375_s23 }
  0x39   :  { %v60_v6 = vmul.f32 %v56_v2, %v56_v2  ;;  %v80_v8 = vld [vmem:[#allocation5 + $0x28] sm:$0xff]  ;;  %v78_v10 = vld [vmem:[#allocation5 + $0x18] sm:$0xff]  ;;  %v75_v12 = vld [vmem:[#allocation5] sm:$0xff]  ;;  %v61_v13 = vmul.f32 %v3614_v3, %v3614_v3  ;;  %s3518_s24 = scalar_lea.vmem %s2376_s23, 512  ;;  %p3523_p11 = scmp.lt.s32.totalorder %s2376_s23, %s2376_s23 }
  0x3a   :  { %v2385_v9 = vpack.c.bf16 %v80_v8, %v76_v7  ;;  %v82_v11 = vld [vmem:[#allocation5 + $0x38] sm:$0xff]  ;;  %v62_v14 = vadd.f32 %v59_v5, %v58_v4  ;;  %v79_v16 = vld [vmem:[#allocation5 + $0x20] sm:$0xff]  ;;  %v77_v17 = vld [vmem:[#allocation5 + $0x10] sm:$0xff]  ;;  %p3519_p10 = scmp.ne.s32.totalorder %s2376_s23, %s3518_s24  ;;  %p3524_p12 = scmp.lt.s32.totalorder %s3518_s24, %s3518_s24 }
  0x3b   :  { %v2513_v15 = vpack.c.bf16 %v82_v11, %v78_v10  ;;  %v81_v18 = vld [vmem:[#allocation5 + $0x30] sm:$0xff]  ;;  %v2387_v19 = vpack.c.bf16 %v79_v16, %v75_v12  ;;  %v84_v21 = vld [vmem:[#allocation5 + $0x48] sm:$0xff]  ;;  %v86_v23 = vld [vmem:[#allocation5 + $0x58] sm:$0xff] }
  0x3c   :  { %2386 = vmatprep.subr.bf16.mxu0 %v2385_v9  ;;  %v2515_v20 = vpack.c.bf16 %v81_v18, %v77_v17  ;;  %v88_v22 = vld [vmem:[#allocation5 + $0x68] sm:$0xff]  ;;  %v63_v24 = vadd.f32 %v62_v14, %v60_v6  ;;  %v90_v26 = vld [vmem:[#allocation5 + $0x78] sm:$0xff]  ;;  %v83_v27 = vld [vmem:[#allocation5 + $0x40] sm:$0xff]  ;;  %p3525_p13 = por %p3524_p12, %p3523_p11 }
  0x3d   :  { %2514 = vmatprep.subr.bf16.mxu1 %v2513_v15  ;;  %v2389_v25 = vpack.c.bf16 %v88_v22, %v84_v21  ;;  %v87_v28 = vld [vmem:[#allocation5 + $0x60] sm:$0xff]  ;;  %2388 = vmatpush1.bf16.msra.mxu0 %v2387_v19  ;;  %v2517_v29 = vpack.c.bf16 %v90_v26, %v86_v23  ;;  %v85_v31 = vld [vmem:[#allocation5 + $0x50] sm:$0xff]  ;;  %v92_v33 = vld [vmem:[#allocation5 + $0x88] sm:$0xff] }
  0x3e   :  { %2516 = vmatpush1.bf16.msra.mxu1 %v2515_v20  ;;  %v2391_v30 = vpack.c.bf16 %v87_v28, %v83_v27  ;;  %v89_v32 = vld [vmem:[#allocation5 + $0x70] sm:$0xff]  ;;  %v64_v34 = vadd.f32 %v63_v24, %v61_v13  ;;  %v96_v36 = vld [vmem:[#allocation5 + $0xa8] sm:$0xff]  ;;  %v94_v37 = vld [vmem:[#allocation5 + $0x98] sm:$0xff]  ;;  %p3526_p0 = pnand %p3525_p13, %p3519_p10 }
  0x3f   :  { %2390 = vmatprep.subr.bf16.mxu0 %v2389_v25  ;;  %v2519_v35 = vpack.c.bf16 %v89_v32, %v85_v31  ;;  %v98_v38 = vld [vmem:[#allocation5 + $0xb8] sm:$0xff]  ;;  %2518 = vmatprep.subr.bf16.mxu1 %v2517_v29  ;;  %v2393_v39 = vpack.c.bf16 %v96_v36, %v92_v33  ;;  %v91_v41 = vld [vmem:[#allocation5 + $0x80] sm:$0xff]  ;;  %v93_v43 = vld [vmem:[#allocation5 + $0x90] sm:$0xff] }
  0x40   :  { %v2521_v40 = vpack.c.bf16 %v98_v38, %v94_v37  ;;  %v95_v42 = vld [vmem:[#allocation5 + $0xa0] sm:$0xff]  ;;  %65 = vadd.xlane.f32.xlu0 %v64_v34  ;;  %v97_v44 = vld [vmem:[#allocation5 + $0xb0] sm:$0xff]  ;;  %v100_v45 = vld [vmem:[#allocation5 + $0xc8] sm:$0xff] }
  0x41   :  { %v104_v46 = vld [vmem:[#allocation5 + $0xe8] sm:$0xff]  ;;  %2392 = vmatpush1.bf16.msra.mxu0 %v2391_v30  ;;  %v2395_v47 = vpack.c.bf16 %v95_v42, %v91_v41  ;;  %v2523_v48 = vpack.c.bf16 %v97_v44, %v93_v43  ;;  %v102_v49 = vld [vmem:[#allocation5 + $0xd8] sm:$0xff]  ;;  %v99_v51 = vld [vmem:[#allocation5 + $0xc0] sm:$0xff] }
  0x42   :  { %2520 = vmatpush1.bf16.msra.mxu1 %v2519_v35  ;;  %v106_v50 = vld [vmem:[#allocation5 + $0xf8] sm:$0xff]  ;;  %2394 = vmatprep.subr.bf16.mxu0 %v2393_v39  ;;  %v2397_v52 = vpack.c.bf16 %v104_v46, %v100_v45  ;;  %v103_v54 = vld [vmem:[#allocation5 + $0xe0] sm:$0xff]  ;;  %v101_v55 = vld [vmem:[#allocation5 + $0xd0] sm:$0xff] }
  0x43   :  { %2522 = vmatprep.subr.bf16.mxu1 %v2521_v40  ;;  %v2525_v53 = vpack.c.bf16 %v106_v50, %v102_v49  ;;  %v105_v56 = vld [vmem:[#allocation5 + $0xf0] sm:$0xff]  ;;  %v108_v57 = vld [vmem:[#allocation5 + $0x108] sm:$0xff]  ;;  %v110_v59 = vld [vmem:[#allocation5 + $0x118] sm:$0xff]  ;;  %v2399_v61 = vpack.c.bf16 %v103_v54, %v99_v51 }
  0x44   :  { %v112_v58 = vld [vmem:[#allocation5 + $0x128] sm:$0xff]  ;;  %v114_v60 = vld [vmem:[#allocation5 + $0x138] sm:$0xff]  ;;  %v2527_v62 = vpack.c.bf16 %v105_v56, %v101_v55  ;;  %v107_v63 = vld [vmem:[#allocation5 + $0x100] sm:$0xff] }
  0x45   :  { %2396 = vmatpush1.bf16.msra.mxu0 %v2395_v47  ;;  %v111_v2 = vld [vmem:[#allocation5 + $0x120] sm:$0xff]  ;;  %v2401_v4 = vpack.c.bf16 %v112_v58, %v108_v57  ;;  %v2529_v5 = vpack.c.bf16 %v114_v60, %v110_v59  ;;  %v109_v6 = vld [vmem:[#allocation5 + $0x110] sm:$0xff]  ;;  %v116_v8 = vld [vmem:[#allocation5 + $0x148] sm:$0xff] }
  0x46   :  { %2524 = vmatpush1.bf16.msra.mxu1 %v2523_v48  ;;  %2398 = vmatprep.subr.bf16.mxu0 %v2397_v52  ;;  %v113_v7 = vld [vmem:[#allocation5 + $0x130] sm:$0xff]  ;;  %v120_v9 = vld [vmem:[#allocation5 + $0x168] sm:$0xff]  ;;  %v118_v10 = vld [vmem:[#allocation5 + $0x158] sm:$0xff]  ;;  %v2403_v12 = vpack.c.bf16 %v111_v2, %v107_v63 }
  0x47   :  { %2526 = vmatprep.subr.bf16.mxu1 %v2525_v53  ;;  %v122_v11 = vld [vmem:[#allocation5 + $0x178] sm:$0xff]  ;;  %v2531_v13 = vpack.c.bf16 %v113_v7, %v109_v6  ;;  %v115_v14 = vld [vmem:[#allocation5 + $0x140] sm:$0xff]  ;;  %v2405_v16 = vpack.c.bf16 %v120_v9, %v116_v8  ;;  %v117_v18 = vld [vmem:[#allocation5 + $0x150] sm:$0xff] }
  0x48   :  { %v119_v15 = vld [vmem:[#allocation5 + $0x160] sm:$0xff]  ;;  %v2533_v17 = vpack.c.bf16 %v122_v11, %v118_v10  ;;  %v121_v19 = vld [vmem:[#allocation5 + $0x170] sm:$0xff]  ;;  %v124_v20 = vld [vmem:[#allocation5 + $0x188] sm:$0xff] }
  0x49   :  { %2400 = vmatpush1.bf16.msra.mxu0 %v2399_v61  ;;  %v128_v21 = vld [vmem:[#allocation5 + $0x1a8] sm:$0xff]  ;;  %v126_v22 = vld [vmem:[#allocation5 + $0x198] sm:$0xff]  ;;  %v2407_v24 = vpack.c.bf16 %v119_v15, %v115_v14  ;;  %v2535_v25 = vpack.c.bf16 %v121_v19, %v117_v18  ;;  %v123_v26 = vld [vmem:[#allocation5 + $0x180] sm:$0xff] }
  0x4a   :  { %2528 = vmatpush1.bf16.msra.mxu1 %v2527_v62  ;;  %2402 = vmatprep.subr.bf16.mxu0 %v2401_v4  ;;  %v130_v23 = vld [vmem:[#allocation5 + $0x1b8] sm:$0xff]  ;;  %v127_v27 = vld [vmem:[#allocation5 + $0x1a0] sm:$0xff]  ;;  %v2409_v28 = vpack.c.bf16 %v128_v21, %v124_v20  ;;  %v125_v30 = vld [vmem:[#allocation5 + $0x190] sm:$0xff] }
  0x4b   :  { %2530 = vmatprep.subr.bf16.mxu1 %v2529_v5  ;;  %v2537_v29 = vpack.c.bf16 %v130_v23, %v126_v22  ;;  %v129_v31 = vld [vmem:[#allocation5 + $0x1b0] sm:$0xff]  ;;  %v132_v32 = vld [vmem:[#allocation5 + $0x1c8] sm:$0xff]  ;;  %v134_v34 = vld [vmem:[#allocation5 + $0x1d8] sm:$0xff]  ;;  %v2411_v36 = vpack.c.bf16 %v127_v27, %v123_v26 }
  0x4c   :  { %v136_v33 = vld [vmem:[#allocation5 + $0x1e8] sm:$0xff]  ;;  %v138_v35 = vld [vmem:[#allocation5 + $0x1f8] sm:$0xff]  ;;  %v2539_v37 = vpack.c.bf16 %v129_v31, %v125_v30  ;;  %v131_v38 = vld [vmem:[#allocation5 + $0x1c0] sm:$0xff] }
  0x4d   :  { %2404 = vmatpush1.bf16.msra.mxu0 %v2403_v12  ;;  %v135_v39 = vld [vmem:[#allocation5 + $0x1e0] sm:$0xff]  ;;  %v2413_v40 = vpack.c.bf16 %v136_v33, %v132_v32  ;;  %v2541_v41 = vpack.c.bf16 %v138_v35, %v134_v34  ;;  %v133_v42 = vld [vmem:[#allocation5 + $0x1d0] sm:$0xff]  ;;  %v140_v44 = vld [vmem:[#allocation5 + $0x208] sm:$0xff] }
  0x4e   :  { %2532 = vmatpush1.bf16.msra.mxu1 %v2531_v13  ;;  %2406 = vmatprep.subr.bf16.mxu0 %v2405_v16  ;;  %v137_v43 = vld [vmem:[#allocation5 + $0x1f0] sm:$0xff]  ;;  %v144_v45 = vld [vmem:[#allocation5 + $0x228] sm:$0xff]  ;;  %v142_v46 = vld [vmem:[#allocation5 + $0x218] sm:$0xff]  ;;  %v2415_v48 = vpack.c.bf16 %v135_v39, %v131_v38 }
  0x4f   :  { %2534 = vmatprep.subr.bf16.mxu1 %v2533_v17  ;;  %v146_v47 = vld [vmem:[#allocation5 + $0x238] sm:$0xff]  ;;  %v2543_v49 = vpack.c.bf16 %v137_v43, %v133_v42  ;;  %v139_v50 = vld [vmem:[#allocation5 + $0x200] sm:$0xff]  ;;  %v2417_v52 = vpack.c.bf16 %v144_v45, %v140_v44  ;;  %v141_v54 = vld [vmem:[#allocation5 + $0x210] sm:$0xff] }
  0x50   :  { %v143_v51 = vld [vmem:[#allocation5 + $0x220] sm:$0xff]  ;;  %v2545_v53 = vpack.c.bf16 %v146_v47, %v142_v46  ;;  %v145_v55 = vld [vmem:[#allocation5 + $0x230] sm:$0xff]  ;;  %v148_v56 = vld [vmem:[#allocation5 + $0x248] sm:$0xff] }
  0x51   :  { %2408 = vmatpush1.bf16.msra.mxu0 %v2407_v24  ;;  %v152_v57 = vld [vmem:[#allocation5 + $0x268] sm:$0xff]  ;;  %v150_v58 = vld [vmem:[#allocation5 + $0x258] sm:$0xff]  ;;  %v2419_v60 = vpack.c.bf16 %v143_v51, %v139_v50  ;;  %v2547_v61 = vpack.c.bf16 %v145_v55, %v141_v54  ;;  %v147_v62 = vld [vmem:[#allocation5 + $0x240] sm:$0xff] }
  0x52   :  { %2536 = vmatpush1.bf16.msra.mxu1 %v2535_v25  ;;  %2410 = vmatprep.subr.bf16.mxu0 %v2409_v28  ;;  %v154_v59 = vld [vmem:[#allocation5 + $0x278] sm:$0xff]  ;;  %v151_v63 = vld [vmem:[#allocation5 + $0x260] sm:$0xff]  ;;  %v2421_v2 = vpack.c.bf16 %v152_v57, %v148_v56  ;;  %v149_v5 = vld [vmem:[#allocation5 + $0x250] sm:$0xff] }
  0x53   :  { %2538 = vmatprep.subr.bf16.mxu1 %v2537_v29  ;;  %v2549_v4 = vpack.c.bf16 %v154_v59, %v150_v58  ;;  %v153_v6 = vld [vmem:[#allocation5 + $0x270] sm:$0xff]  ;;  %v156_v7 = vld [vmem:[#allocation5 + $0x288] sm:$0xff]  ;;  %v158_v9 = vld [vmem:[#allocation5 + $0x298] sm:$0xff]  ;;  %v2423_v11 = vpack.c.bf16 %v151_v63, %v147_v62 }
  0x54   :  { %v160_v8 = vld [vmem:[#allocation5 + $0x2a8] sm:$0xff]  ;;  %v162_v10 = vld [vmem:[#allocation5 + $0x2b8] sm:$0xff]  ;;  %v2551_v12 = vpack.c.bf16 %v153_v6, %v149_v5  ;;  %v155_v13 = vld [vmem:[#allocation5 + $0x280] sm:$0xff] }
  0x55   :  { %2412 = vmatpush1.bf16.msra.mxu0 %v2411_v36  ;;  %v159_v14 = vld [vmem:[#allocation5 + $0x2a0] sm:$0xff]  ;;  %v2425_v15 = vpack.c.bf16 %v160_v8, %v156_v7  ;;  %v2553_v16 = vpack.c.bf16 %v162_v10, %v158_v9  ;;  %v157_v17 = vld [vmem:[#allocation5 + $0x290] sm:$0xff]  ;;  %v164_v19 = vld [vmem:[#allocation5 + $0x2c8] sm:$0xff] }
  0x56   :  { %2540 = vmatpush1.bf16.msra.mxu1 %v2539_v37  ;;  %2414 = vmatprep.subr.bf16.mxu0 %v2413_v40  ;;  %v161_v18 = vld [vmem:[#allocation5 + $0x2b0] sm:$0xff]  ;;  %v168_v20 = vld [vmem:[#allocation5 + $0x2e8] sm:$0xff]  ;;  %v166_v21 = vld [vmem:[#allocation5 + $0x2d8] sm:$0xff]  ;;  %v2427_v23 = vpack.c.bf16 %v159_v14, %v155_v13 }
  0x57   :  { %2542 = vmatprep.subr.bf16.mxu1 %v2541_v41  ;;  %v170_v22 = vld [vmem:[#allocation5 + $0x2f8] sm:$0xff]  ;;  %v2555_v24 = vpack.c.bf16 %v161_v18, %v157_v17  ;;  %v163_v25 = vld [vmem:[#allocation5 + $0x2c0] sm:$0xff]  ;;  %v2429_v27 = vpack.c.bf16 %v168_v20, %v164_v19  ;;  %v165_v29 = vld [vmem:[#allocation5 + $0x2d0] sm:$0xff] }
  0x58   :  { %v167_v26 = vld [vmem:[#allocation5 + $0x2e0] sm:$0xff]  ;;  %v2557_v28 = vpack.c.bf16 %v170_v22, %v166_v21  ;;  %v169_v30 = vld [vmem:[#allocation5 + $0x2f0] sm:$0xff]  ;;  %v172_v31 = vld [vmem:[#allocation5 + $0x308] sm:$0xff] }
  0x59   :  { %2416 = vmatpush1.bf16.msra.mxu0 %v2415_v48  ;;  %v176_v32 = vld [vmem:[#allocation5 + $0x328] sm:$0xff]  ;;  %v174_v33 = vld [vmem:[#allocation5 + $0x318] sm:$0xff]  ;;  %v2431_v35 = vpack.c.bf16 %v167_v26, %v163_v25  ;;  %v2559_v36 = vpack.c.bf16 %v169_v30, %v165_v29  ;;  %v171_v37 = vld [vmem:[#allocation5 + $0x300] sm:$0xff] }
  0x5a   :  { %2544 = vmatpush1.bf16.msra.mxu1 %v2543_v49  ;;  %2418 = vmatprep.subr.bf16.mxu0 %v2417_v52  ;;  %v178_v34 = vld [vmem:[#allocation5 + $0x338] sm:$0xff]  ;;  %v175_v38 = vld [vmem:[#allocation5 + $0x320] sm:$0xff]  ;;  %v2433_v39 = vpack.c.bf16 %v176_v32, %v172_v31  ;;  %v173_v41 = vld [vmem:[#allocation5 + $0x310] sm:$0xff] }
  0x5b   :  { %2546 = vmatprep.subr.bf16.mxu1 %v2545_v53  ;;  %v2561_v40 = vpack.c.bf16 %v178_v34, %v174_v33  ;;  %v177_v42 = vld [vmem:[#allocation5 + $0x330] sm:$0xff]  ;;  %v180_v43 = vld [vmem:[#allocation5 + $0x348] sm:$0xff]  ;;  %v182_v45 = vld [vmem:[#allocation5 + $0x358] sm:$0xff]  ;;  %v2435_v47 = vpack.c.bf16 %v175_v38, %v171_v37 }
  0x5c   :  { %v184_v44 = vld [vmem:[#allocation5 + $0x368] sm:$0xff]  ;;  %v186_v46 = vld [vmem:[#allocation5 + $0x378] sm:$0xff]  ;;  %v2563_v48 = vpack.c.bf16 %v177_v42, %v173_v41  ;;  %v179_v49 = vld [vmem:[#allocation5 + $0x340] sm:$0xff] }
  0x5d   :  { %2420 = vmatpush1.bf16.msra.mxu0 %v2419_v60  ;;  %v183_v50 = vld [vmem:[#allocation5 + $0x360] sm:$0xff]  ;;  %v2437_v51 = vpack.c.bf16 %v184_v44, %v180_v43  ;;  %v2565_v52 = vpack.c.bf16 %v186_v46, %v182_v45  ;;  %v181_v53 = vld [vmem:[#allocation5 + $0x350] sm:$0xff]  ;;  %v188_v55 = vld [vmem:[#allocation5 + $0x388] sm:$0xff] }
  0x5e   :  { %2548 = vmatpush1.bf16.msra.mxu1 %v2547_v61  ;;  %2422 = vmatprep.subr.bf16.mxu0 %v2421_v2  ;;  %v185_v54 = vld [vmem:[#allocation5 + $0x370] sm:$0xff]  ;;  %v192_v56 = vld [vmem:[#allocation5 + $0x3a8] sm:$0xff]  ;;  %v190_v57 = vld [vmem:[#allocation5 + $0x398] sm:$0xff]  ;;  %v2439_v59 = vpack.c.bf16 %v183_v50, %v179_v49 }
  0x5f   :  { %2550 = vmatprep.subr.bf16.mxu1 %v2549_v4  ;;  %v194_v58 = vld [vmem:[#allocation5 + $0x3b8] sm:$0xff]  ;;  %v2567_v60 = vpack.c.bf16 %v185_v54, %v181_v53  ;;  %v187_v61 = vld [vmem:[#allocation5 + $0x380] sm:$0xff]  ;;  %v2441_v63 = vpack.c.bf16 %v192_v56, %v188_v55  ;;  %v189_v4 = vld [vmem:[#allocation5 + $0x390] sm:$0xff] }
  0x60   :  { %v191_v62 = vld [vmem:[#allocation5 + $0x3a0] sm:$0xff]  ;;  %v2569_v2 = vpack.c.bf16 %v194_v58, %v190_v57  ;;  %v193_v5 = vld [vmem:[#allocation5 + $0x3b0] sm:$0xff]  ;;  %v196_v6 = vld [vmem:[#allocation5 + $0x3c8] sm:$0xff] }
  0x61   :  { %2424 = vmatpush1.bf16.msra.mxu0 %v2423_v11  ;;  %v200_v7 = vld [vmem:[#allocation5 + $0x3e8] sm:$0xff]  ;;  %v198_v8 = vld [vmem:[#allocation5 + $0x3d8] sm:$0xff]  ;;  %v2443_v10 = vpack.c.bf16 %v191_v62, %v187_v61  ;;  %v2571_v11 = vpack.c.bf16 %v193_v5, %v189_v4  ;;  %v199_v13 = vld [vmem:[#allocation5 + $0x3e0] sm:$0xff] }
  0x62   :  { %2552 = vmatpush1.bf16.msra.mxu1 %v2551_v12  ;;  %2426 = vmatprep.subr.bf16.mxu0 %v2425_v15  ;;  %v202_v9 = vld [vmem:[#allocation5 + $0x3f8] sm:$0xff]  ;;  %v195_v12 = vld [vmem:[#allocation5 + $0x3c0] sm:$0xff]  ;;  %v2445_v14 = vpack.c.bf16 %v200_v7, %v196_v6  ;;  %v201_v17 = vld [vmem:[#allocation5 + $0x3f0] sm:$0xff] }
  0x63   :  { %2554 = vmatprep.subr.bf16.mxu1 %v2553_v16  ;;  %v2573_v15 = vpack.c.bf16 %v202_v9, %v198_v8  ;;  %v197_v16 = vld [vmem:[#allocation5 + $0x3d0] sm:$0xff]  ;;  %v204_v18 = vld [vmem:[#allocation5 + $0x408] sm:$0xff]  ;;  %v206_v20 = vld [vmem:[#allocation5 + $0x418] sm:$0xff]  ;;  %v2447_v22 = vpack.c.bf16 %v199_v13, %v195_v12 }
  0x64   :  { %v208_v19 = vld [vmem:[#allocation5 + $0x428] sm:$0xff]  ;;  %v210_v21 = vld [vmem:[#allocation5 + $0x438] sm:$0xff]  ;;  %v203_v29 = vld [vmem:[#allocation5 + $0x400] sm:$0xff] }
  0x65   :  { %2428 = vmatpush1.bf16.msra.mxu0 %v2427_v23  ;;  %v2575_v23 = vpack.c.bf16 %v201_v17, %v197_v16  ;;  %v2577_v25 = vpack.c.bf16 %v210_v21, %v206_v20  ;;  %v207_v30 = vld [vmem:[#allocation5 + $0x420] sm:$0xff]  ;;  %v205_v31 = vld [vmem:[#allocation5 + $0x410] sm:$0xff]  ;;  %v212_v33 = vld [vmem:[#allocation5 + $0x448] sm:$0xff] }
  0x66   :  { %2556 = vmatpush1.bf16.msra.mxu1 %v2555_v24  ;;  %2430 = vmatprep.subr.bf16.mxu0 %v2429_v27  ;;  %v2449_v24 = vpack.c.bf16 %v208_v19, %v204_v18  ;;  %v209_v32 = vld [vmem:[#allocation5 + $0x430] sm:$0xff]  ;;  %v218_v37 = vld [vmem:[#allocation5 + $0x478] sm:$0xff]  ;;  %v211_v42 = vld [vmem:[#allocation5 + $0x440] sm:$0xff] }
  0x67   :  { %2558 = vmatprep.subr.bf16.mxu1 %v2557_v28  ;;  %v2579_v41 = vpack.c.bf16 %v209_v32, %v205_v31  ;;  %v215_v43 = vld [vmem:[#allocation5 + $0x460] sm:$0xff]  ;;  %v213_v44 = vld [vmem:[#allocation5 + $0x450] sm:$0xff]  ;;  %v220_v46 = vld [vmem:[#allocation5 + $0x488] sm:$0xff] }
  0x68   :  { %v217_v45 = vld [vmem:[#allocation5 + $0x470] sm:$0xff]  ;;  %v224_v49 = vld [vmem:[#allocation5 + $0x4a8] sm:$0xff]  ;;  %v222_v50 = vld [vmem:[#allocation5 + $0x498] sm:$0xff] }
  0x69   :  { %2432 = vmatpush1.bf16.msra.mxu0 %v2431_v35  ;;  %v216_v35 = vld [vmem:[#allocation5 + $0x468] sm:$0xff]  ;;  %v219_v53 = vld [vmem:[#allocation5 + $0x480] sm:$0xff]  ;;  %v2457_v55 = vpack.c.bf16 %v224_v49, %v220_v46  ;;  %v221_v57 = vld [vmem:[#allocation5 + $0x490] sm:$0xff] }
  0x6a   :  { %2560 = vmatpush1.bf16.msra.mxu1 %v2559_v36  ;;  %2434 = vmatprep.subr.bf16.mxu0 %v2433_v39  ;;  %v214_v36 = vld [vmem:[#allocation5 + $0x458] sm:$0xff]  ;;  %v223_v54 = vld [vmem:[#allocation5 + $0x4a0] sm:$0xff]  ;;  %v225_v58 = vld [vmem:[#allocation5 + $0x4b0] sm:$0xff] }
  0x6b   :  { %2562 = vmatprep.subr.bf16.mxu1 %v2561_v40  ;;  %v2451_v40 = vpack.c.bf16 %v207_v30, %v203_v29  ;;  %v230_v61 = vld [vmem:[#allocation5 + $0x4d8] sm:$0xff]  ;;  %v231_v4 = vld [vmem:[#allocation5 + $0x4e0] sm:$0xff]  ;;  %v229_v7 = vld [vmem:[#allocation5 + $0x4d0] sm:$0xff] }
  0x6c   :  { %v234_v62 = vld [vmem:[#allocation5 + $0x4f8] sm:$0xff]  ;;  %v233_v8 = vld [vmem:[#allocation5 + $0x4f0] sm:$0xff]  ;;  %v236_v9 = vld [vmem:[#allocation5 + $0x508] sm:$0xff] }
  0x6d   :  { %2436 = vmatpush1.bf16.msra.mxu0 %v2435_v47  ;;  %v2453_v47 = vpack.c.bf16 %v216_v35, %v212_v33  ;;  %v2589_v6 = vpack.c.bf16 %v234_v62, %v230_v61  ;;  %v242_v12 = vld [vmem:[#allocation5 + $0x538] sm:$0xff]  ;;  %v239_v16 = vld [vmem:[#allocation5 + $0x520] sm:$0xff]  ;;  %v237_v19 = vld [vmem:[#allocation5 + $0x510] sm:$0xff] }
  0x6e   :  { %2564 = vmatpush1.bf16.msra.mxu1 %v2563_v48  ;;  %2438 = vmatprep.subr.bf16.mxu0 %v2437_v51  ;;  %v2581_v48 = vpack.c.bf16 %v218_v37, %v214_v36  ;;  %v226_v51 = vld [vmem:[#allocation5 + $0x4b8] sm:$0xff]  ;;  %v241_v20 = vld [vmem:[#allocation5 + $0x530] sm:$0xff]  ;;  %v244_v21 = vld [vmem:[#allocation5 + $0x548] sm:$0xff] }
  0x6f   :  { %2566 = vmatprep.subr.bf16.mxu1 %v2565_v52  ;;  %v2583_v52 = vpack.c.bf16 %v217_v45, %v213_v44  ;;  %v2585_v56 = vpack.c.bf16 %v226_v51, %v222_v50  ;;  %v245_v31 = vld [vmem:[#allocation5 + $0x550] sm:$0xff]  ;;  %v252_v33 = vld [vmem:[#allocation5 + $0x588] sm:$0xff]  ;;  %v254_v36 = vld [vmem:[#allocation5 + $0x598] sm:$0xff] }
  0x70   :  { %v249_v32 = vld [vmem:[#allocation5 + $0x570] sm:$0xff]  ;;  %v256_v35 = vld [vmem:[#allocation5 + $0x5a8] sm:$0xff]  ;;  %v258_v37 = vld [vmem:[#allocation5 + $0x5b8] sm:$0xff] }
  0x71   :  { %2440 = vmatpush1.bf16.msra.mxu0 %v2439_v59  ;;  %v228_v59 = vld [vmem:[#allocation5 + $0x4c8] sm:$0xff]  ;;  %v253_v44 = vld [vmem:[#allocation5 + $0x590] sm:$0xff]  ;;  %v266_v49 = vld [vmem:[#allocation5 + $0x5f8] sm:$0xff] }
  0x72   :  { %2568 = vmatpush1.bf16.msra.mxu1 %v2567_v60  ;;  %2442 = vmatprep.subr.bf16.mxu0 %v2441_v63  ;;  %v232_v60 = vld [vmem:[#allocation5 + $0x4e8] sm:$0xff]  ;;  %v2587_v63 = vpack.c.bf16 %v225_v58, %v221_v57  ;;  %v257_v45 = vld [vmem:[#allocation5 + $0x5b0] sm:$0xff]  ;;  %v270_v58 = vld [vmem:[#allocation5 + $0x618] sm:$0xff] }
  0x73   :  { %2570 = vmatprep.subr.bf16.mxu1 %v2569_v2  ;;  %v227_v2 = vld [vmem:[#allocation5 + $0x4c0] sm:$0xff]  ;;  %v2461_v5 = vpack.c.bf16 %v232_v60, %v228_v59  ;;  %v260_v46 = vld [vmem:[#allocation5 + $0x5c8] sm:$0xff]  ;;  %v2603_v51 = vpack.c.bf16 %v257_v45, %v253_v44  ;;  %v274_v59 = vld [vmem:[#allocation5 + $0x638] sm:$0xff] }
  0x74   :  { %v2463_v13 = vpack.c.bf16 %v231_v4, %v227_v2  ;;  %v272_v57 = vld [vmem:[#allocation5 + $0x628] sm:$0xff]  ;;  %v267_v62 = vld [vmem:[#allocation5 + $0x600] sm:$0xff]  ;;  %v2609_v2 = vpack.c.bf16 %v274_v59, %v270_v58  ;;  %v269_v4 = vld [vmem:[#allocation5 + $0x610] sm:$0xff] }
  0x75   :  { %2444 = vmatpush1.bf16.msra.mxu0 %v2443_v10  ;;  %v240_v10 = vld [vmem:[#allocation5 + $0x528] sm:$0xff]  ;;  %v302_v45 = vld [vmem:[#allocation5 + $0x718] sm:$0xff]  ;;  %v307_v59 = vld [vmem:[#allocation5 + $0x740] sm:$0xff] }
  0x76   :  { %2572 = vmatpush1.bf16.msra.mxu1 %v2571_v11  ;;  %2446 = vmatprep.subr.bf16.mxu0 %v2445_v14  ;;  %v238_v11 = vld [vmem:[#allocation5 + $0x518] sm:$0xff]  ;;  %v2591_v14 = vpack.c.bf16 %v233_v8, %v229_v7  ;;  %v2465_v17 = vpack.c.bf16 %v240_v10, %v236_v9  ;;  %v280_v7 = vld [vmem:[#allocation5 + $0x668] sm:$0xff] }
  0x77   :  { %2574 = vmatprep.subr.bf16.mxu1 %v2573_v15  ;;  %v235_v15 = vld [vmem:[#allocation5 + $0x500] sm:$0xff]  ;;  %v2593_v18 = vpack.c.bf16 %v242_v12, %v238_v11  ;;  %v278_v8 = vld [vmem:[#allocation5 + $0x658] sm:$0xff]  ;;  %v304_v44 = vld [vmem:[#allocation5 + $0x728] sm:$0xff] }
  0x78   :  { %v282_v9 = vld [vmem:[#allocation5 + $0x678] sm:$0xff]  ;;  %v275_v12 = vld [vmem:[#allocation5 + $0x640] sm:$0xff] }
  0x79   :  { %2448 = vmatpush1.bf16.msra.mxu0 %v2447_v22  ;;  %v248_v22 = vld [vmem:[#allocation5 + $0x568] sm:$0xff] }
  0x7a   :  { %2576 = vmatpush1.bf16.msra.mxu1 %v2575_v23  ;;  %2450 = vmatprep.subr.bf16.mxu0 %v2449_v24  ;;  %v246_v23 = vld [vmem:[#allocation5 + $0x558] sm:$0xff]  ;;  %v2469_v29 = vpack.c.bf16 %v248_v22, %v244_v21 }
  0x7b   :  { %2578 = vmatprep.subr.bf16.mxu1 %v2577_v25  ;;  %v250_v24 = vld [vmem:[#allocation5 + $0x578] sm:$0xff]  ;;  %v2467_v25 = vpack.c.bf16 %v239_v16, %v235_v15  ;;  %v2613_v15 = vpack.c.bf16 %v282_v9, %v278_v8  ;;  %v277_v16 = vld [vmem:[#allocation5 + $0x650] sm:$0xff]  ;;  %v315_v9 = vld [vmem:[#allocation5 + $0x780] sm:$0xff] }
  0x7c   :  { %v2597_v30 = vpack.c.bf16 %v250_v24, %v246_v23  ;;  %v290_v21 = vld [vmem:[#allocation5 + $0x6b8] sm:$0xff]  ;;  %v283_v24 = vld [vmem:[#allocation5 + $0x680] sm:$0xff] }
  0xcd   :  { %v66_v26 = vpop.xlane.xlu0 %65 }
  0xce   :  { %v68_v27 = vmul.f32 0.001953125, %v66_v26  ;;  %v2595_v26 = vpack.c.bf16 %v241_v20, %v237_v19  ;;  %v288_v19 = vld [vmem:[#allocation5 + $0x6a8] sm:$0xff]  ;;  %v286_v20 = vld [vmem:[#allocation5 + $0x698] sm:$0xff] }
  0xd0   :  { %v69_v28 = vadd.f32 1e-08, %v68_v27  ;;  %v243_v27 = vld [vmem:[#allocation5 + $0x540] sm:$0xff] }
  0xd2   :  { %3449 = vrsqrt.f32 %v69_v28  ;;  %v247_v28 = vld [vmem:[#allocation5 + $0x560] sm:$0xff] }
  0xdc   :  { %v3622_v34 = vpop.eup %3449 }
  0xdd   :  { %v72_v38 = vmul.f32 %v3622_v34, %v3612_v1  ;;  %v71_v39 = vmul.f32 %v3622_v34, %v3610_v0  ;;  %v74_v1 = vmul.f32 %v3622_v34, %v3614_v3  ;;  %v2455_v0 = vpack.c.bf16 %v215_v43, %v211_v42 }
  0xde   :  { %v2459_v3 = vpack.c.bf16 %v223_v54, %v219_v53  ;;  %v2473_v42 = vpack.c.bf16 %v256_v35, %v252_v33  ;;  %v2601_v43 = vpack.c.bf16 %v258_v37, %v254_v36  ;;  %v261_v54 = vld [vmem:[#allocation5 + $0x5d0] sm:$0xff]  ;;  %v298_v33 = vld [vmem:[#allocation5 + $0x6f8] sm:$0xff]  ;;  %v291_v37 = vld [vmem:[#allocation5 + $0x6c0] sm:$0xff] }
  0xdf   :  { %417 = vmatprep.mubr.f32.mxu0 %v72_v38  ;;  %559 = vmatprep.mubr.f32.mxu1 %v72_v38  ;;  %v2471_v38 = vpack.c.bf16 %v247_v28, %v243_v27  ;;  %v2617_v27 = vpack.c.bf16 %v290_v21, %v286_v20  ;;  %v285_v28 = vld [vmem:[#allocation5 + $0x690] sm:$0xff]  ;;  %v323_v21 = vld [vmem:[#allocation5 + $0x7c0] sm:$0xff] }
  0xe0   :  { %418 = vmatmul.mubr.f32.vlgmr.msra.gmra.mrb[0].mxu0 %v71_v39  ;;  %560 = vmatmul.mubr.f32.vlgmr.msra.gmra.mrb[0].mxu1 %v71_v39  ;;  %v2599_v39 = vpack.c.bf16 %v249_v32, %v245_v31  ;;  %v296_v31 = vld [vmem:[#allocation5 + $0x6e8] sm:$0xff]  ;;  %v294_v32 = vld [vmem:[#allocation5 + $0x6d8] sm:$0xff] }
  0xe1   :  { %2452 = vmatpush1.bf16.msra.mxu0 %v2451_v40  ;;  %2580 = vmatpush1.bf16.msra.mxu1 %v2579_v41  ;;  %v251_v40 = vld [vmem:[#allocation5 + $0x580] sm:$0xff] }
  0xe2   :  { %488 = vmatprep.mubr.f32.mxu0 %v74_v1  ;;  %630 = vmatprep.mubr.f32.mxu1 %v74_v1  ;;  %v255_v41 = vld [vmem:[#allocation5 + $0x5a0] sm:$0xff] }
  0xe3   :  { %2454 = vmatprep.subr.bf16.mxu0 %v2453_v47  ;;  %2582 = vmatprep.subr.bf16.mxu1 %v2581_v48  ;;  %v264_v47 = vld [vmem:[#allocation5 + $0x5e8] sm:$0xff]  ;;  %v262_v48 = vld [vmem:[#allocation5 + $0x5d8] sm:$0xff]  ;;  %v2475_v50 = vpack.c.bf16 %v255_v41, %v251_v40  ;;  %v259_v1 = vld [vmem:[#allocation5 + $0x5c0] sm:$0xff]  ;;  %v2621_v40 = vpack.c.bf16 %v298_v33, %v294_v32 }
  0xe4   :  { %v2605_v53 = vpack.c.bf16 %v266_v49, %v262_v48  ;;  %v293_v41 = vld [vmem:[#allocation5 + $0x6d0] sm:$0xff]  ;;  %v299_v49 = vld [vmem:[#allocation5 + $0x700] sm:$0xff] }
  0xe5   :  { %2456 = vmatpush1.bf16.msra.mxu0 %v2455_v0  ;;  %2584 = vmatpush1.bf16.msra.mxu1 %v2583_v52  ;;  %v263_v0 = vld [vmem:[#allocation5 + $0x5e0] sm:$0xff]  ;;  %v2477_v52 = vpack.c.bf16 %v264_v47, %v260_v46  ;;  %v306_v46 = vld [vmem:[#allocation5 + $0x738] sm:$0xff] }
  0xe6   :  { %2458 = vmatprep.subr.bf16.mxu0 %v2457_v55  ;;  %2586 = vmatprep.subr.bf16.mxu1 %v2585_v56  ;;  %v265_v55 = vld [vmem:[#allocation5 + $0x5f0] sm:$0xff]  ;;  %v268_v56 = vld [vmem:[#allocation5 + $0x608] sm:$0xff]  ;;  %v2479_v60 = vpack.c.bf16 %v263_v0, %v259_v1  ;;  %v2625_v1 = vpack.c.bf16 %v306_v46, %v302_v45  ;;  %v646_v33 = vld [vmem:[#allocation5 + $0x800] sm:$0xff] }
  0xe7   :  { %v2607_v61 = vpack.c.bf16 %v265_v55, %v261_v54  ;;  %v301_v0 = vld [vmem:[#allocation5 + $0x710] sm:$0xff]  ;;  %v312_v54 = vld [vmem:[#allocation5 + $0x768] sm:$0xff]  ;;  %v310_v55 = vld [vmem:[#allocation5 + $0x758] sm:$0xff] }
  0xe8   :  { %v654_v46 = vld [vmem:[#allocation5 + $0x840] sm:$0xff] }
  0xe9   :  { %2460 = vmatpush1.bf16.msra.mxu0 %v2459_v3  ;;  %2588 = vmatpush1.bf16.msra.mxu1 %v2587_v63  ;;  %v271_v3 = vld [vmem:[#allocation5 + $0x620] sm:$0xff]  ;;  %v2481_v63 = vpack.c.bf16 %v272_v57, %v268_v56  ;;  %v314_v56 = vld [vmem:[#allocation5 + $0x778] sm:$0xff] }
  0xea   :  { %2462 = vmatprep.subr.bf16.mxu0 %v2461_v5  ;;  %2590 = vmatprep.subr.bf16.mxu1 %v2589_v6  ;;  %v273_v5 = vld [vmem:[#allocation5 + $0x630] sm:$0xff]  ;;  %v276_v6 = vld [vmem:[#allocation5 + $0x648] sm:$0xff]  ;;  %v2483_v10 = vpack.c.bf16 %v271_v3, %v267_v62  ;;  %v2629_v62 = vpack.c.bf16 %v314_v56, %v310_v55  ;;  %v669_v55 = vld [vmem:[#allocation5 + $0x8b8] sm:$0xff] }
  0xeb   :  { %v2611_v11 = vpack.c.bf16 %v273_v5, %v269_v4  ;;  %v309_v3 = vld [vmem:[#allocation5 + $0x750] sm:$0xff]  ;;  %v320_v4 = vld [vmem:[#allocation5 + $0x7a8] sm:$0xff]  ;;  %v318_v5 = vld [vmem:[#allocation5 + $0x798] sm:$0xff] }
  0xed   :  { %2464 = vmatpush1.bf16.msra.mxu0 %v2463_v13  ;;  %2592 = vmatpush1.bf16.msra.mxu1 %v2591_v14  ;;  %v279_v13 = vld [vmem:[#allocation5 + $0x660] sm:$0xff]  ;;  %v2485_v14 = vpack.c.bf16 %v280_v7, %v276_v6  ;;  %v322_v6 = vld [vmem:[#allocation5 + $0x7b8] sm:$0xff] }
  0xee   :  { %2466 = vmatprep.subr.bf16.mxu0 %v2465_v17  ;;  %2594 = vmatprep.subr.bf16.mxu1 %v2593_v18  ;;  %v281_v17 = vld [vmem:[#allocation5 + $0x670] sm:$0xff]  ;;  %v284_v18 = vld [vmem:[#allocation5 + $0x688] sm:$0xff]  ;;  %v2487_v22 = vpack.c.bf16 %v279_v13, %v275_v12  ;;  %v2633_v12 = vpack.c.bf16 %v322_v6, %v318_v5 }
  0xef   :  { %v2615_v23 = vpack.c.bf16 %v281_v17, %v277_v16  ;;  %v317_v13 = vld [vmem:[#allocation5 + $0x790] sm:$0xff]  ;;  %v328_v16 = vld [vmem:[#allocation5 + $0x7e8] sm:$0xff]  ;;  %v326_v17 = vld [vmem:[#allocation5 + $0x7d8] sm:$0xff] }
  0xf1   :  { %2468 = vmatpush1.bf16.msra.mxu0 %v2467_v25  ;;  %2596 = vmatpush1.bf16.msra.mxu1 %v2595_v26  ;;  %v287_v25 = vld [vmem:[#allocation5 + $0x6a0] sm:$0xff]  ;;  %v2489_v26 = vpack.c.bf16 %v288_v19, %v284_v18  ;;  %v330_v18 = vld [vmem:[#allocation5 + $0x7f8] sm:$0xff] }
  0xf2   :  { %2470 = vmatprep.subr.bf16.mxu0 %v2469_v29  ;;  %2598 = vmatprep.subr.bf16.mxu1 %v2597_v30  ;;  %v289_v29 = vld [vmem:[#allocation5 + $0x6b0] sm:$0xff]  ;;  %v292_v30 = vld [vmem:[#allocation5 + $0x6c8] sm:$0xff]  ;;  %v2491_v35 = vpack.c.bf16 %v287_v25, %v283_v24  ;;  %v2637_v24 = vpack.c.bf16 %v330_v18, %v326_v17 }
  0xf3   :  { %v2619_v36 = vpack.c.bf16 %v289_v29, %v285_v28  ;;  %v325_v25 = vld [vmem:[#allocation5 + $0x7d0] sm:$0xff]  ;;  %v651_v28 = vld [vmem:[#allocation5 + $0x828] sm:$0xff]  ;;  %v649_v29 = vld [vmem:[#allocation5 + $0x818] sm:$0xff] }
  0xf5   :  { %2472 = vmatpush1.bf16.msra.mxu0 %v2471_v38  ;;  %2600 = vmatpush1.bf16.msra.mxu1 %v2599_v39  ;;  %v295_v38 = vld [vmem:[#allocation5 + $0x6e0] sm:$0xff]  ;;  %v2493_v39 = vpack.c.bf16 %v296_v31, %v292_v30  ;;  %v653_v30 = vld [vmem:[#allocation5 + $0x838] sm:$0xff] }
  0xf6   :  { %2474 = vmatprep.subr.bf16.mxu0 %v2473_v42  ;;  %2602 = vmatprep.subr.bf16.mxu1 %v2601_v43  ;;  %v297_v42 = vld [vmem:[#allocation5 + $0x6f0] sm:$0xff]  ;;  %v300_v43 = vld [vmem:[#allocation5 + $0x708] sm:$0xff]  ;;  %v2495_v47 = vpack.c.bf16 %v295_v38, %v291_v37  ;;  %v2769_v37 = vpack.c.bf16 %v653_v30, %v649_v29 }
  0xf7   :  { %v2623_v48 = vpack.c.bf16 %v297_v42, %v293_v41  ;;  %v648_v38 = vld [vmem:[#allocation5 + $0x810] sm:$0xff]  ;;  %v659_v41 = vld [vmem:[#allocation5 + $0x868] sm:$0xff]  ;;  %v657_v42 = vld [vmem:[#allocation5 + $0x858] sm:$0xff] }
  0xf9   :  { %2476 = vmatpush1.bf16.msra.mxu0 %v2475_v50  ;;  %2604 = vmatpush1.bf16.msra.mxu1 %v2603_v51  ;;  %v303_v50 = vld [vmem:[#allocation5 + $0x720] sm:$0xff]  ;;  %v2497_v51 = vpack.c.bf16 %v304_v44, %v300_v43  ;;  %v661_v43 = vld [vmem:[#allocation5 + $0x878] sm:$0xff] }
  0xfa   :  { %2478 = vmatprep.subr.bf16.mxu0 %v2477_v52  ;;  %2606 = vmatprep.subr.bf16.mxu1 %v2605_v53  ;;  %v305_v52 = vld [vmem:[#allocation5 + $0x730] sm:$0xff]  ;;  %v308_v53 = vld [vmem:[#allocation5 + $0x748] sm:$0xff]  ;;  %v2499_v57 = vpack.c.bf16 %v303_v50, %v299_v49 }
  0xfb   :  { %v2627_v58 = vpack.c.bf16 %v305_v52, %v301_v0  ;;  %v660_v0 = vld [vmem:[#allocation5 + $0x870] sm:$0xff]  ;;  %v663_v52 = vld [vmem:[#allocation5 + $0x888] sm:$0xff] }
  0xfd   :  { %2480 = vmatpush1.bf16.msra.mxu0 %v2479_v60  ;;  %2608 = vmatpush1.bf16.msra.mxu1 %v2607_v61  ;;  %v311_v60 = vld [vmem:[#allocation5 + $0x760] sm:$0xff]  ;;  %v2501_v61 = vpack.c.bf16 %v312_v54, %v308_v53  ;;  %v667_v53 = vld [vmem:[#allocation5 + $0x8a8] sm:$0xff]  ;;  %v665_v54 = vld [vmem:[#allocation5 + $0x898] sm:$0xff] }
  0xfe   :  { %2482 = vmatprep.subr.bf16.mxu0 %v2481_v63  ;;  %2610 = vmatprep.subr.bf16.mxu1 %v2609_v2  ;;  %v313_v63 = vld [vmem:[#allocation5 + $0x770] sm:$0xff]  ;;  %v316_v2 = vld [vmem:[#allocation5 + $0x788] sm:$0xff]  ;;  %v2503_v7 = vpack.c.bf16 %v311_v60, %v307_v59  ;;  %v666_v59 = vld [vmem:[#allocation5 + $0x8a0] sm:$0xff]  ;;  %v2777_v60 = vpack.c.bf16 %v669_v55, %v665_v54 }
  0xff   :  { %v2631_v8 = vpack.c.bf16 %v313_v63, %v309_v3  ;;  %v671_v3 = vld [vmem:[#allocation5 + $0x8c8] sm:$0xff]  ;;  %v702_v54 = vld [vmem:[#allocation5 + $0x9c0] sm:$0xff] }
 0x100   :  { %v675_v63 = vld [vmem:[#allocation5 + $0x8e8] sm:$0xff]  ;;  %v706_v55 = vld [vmem:[#allocation5 + $0x9e0] sm:$0xff] }
 0x101   :  { %2484 = vmatpush1.bf16.msra.mxu0 %v2483_v10  ;;  %2612 = vmatpush1.bf16.msra.mxu1 %v2611_v11  ;;  %v319_v10 = vld [vmem:[#allocation5 + $0x7a0] sm:$0xff]  ;;  %v2505_v11 = vpack.c.bf16 %v320_v4, %v316_v2  ;;  %v673_v2 = vld [vmem:[#allocation5 + $0x8d8] sm:$0xff] }
 0x102   :  { %2486 = vmatprep.subr.bf16.mxu0 %v2485_v14  ;;  %2614 = vmatprep.subr.bf16.mxu1 %v2613_v15  ;;  %v321_v14 = vld [vmem:[#allocation5 + $0x7b0] sm:$0xff]  ;;  %v324_v15 = vld [vmem:[#allocation5 + $0x7c8] sm:$0xff]  ;;  %v2507_v19 = vpack.c.bf16 %v319_v10, %v315_v9  ;;  %v677_v4 = vld [vmem:[#allocation5 + $0x8f8] sm:$0xff]  ;;  %v2653_v9 = vpack.c.bf16 %v675_v63, %v671_v3  ;;  %v2671_v3 = vpack.c.bf16 %v706_v55, %v702_v54 }
 0x103   :  { %v2635_v20 = vpack.c.bf16 %v321_v14, %v317_v13  ;;  %v2781_v10 = vpack.c.bf16 %v677_v4, %v673_v2  ;;  %v679_v13 = vld [vmem:[#allocation5 + $0x908] sm:$0xff]  ;;  %v710_v2 = vld [vmem:[#allocation5 + $0xa00] sm:$0xff]  ;;  %v744_v54 = vld [vmem:[#allocation5 + $0xb10] sm:$0xff] }
 0x104   :  { %v683_v14 = vld [vmem:[#allocation5 + $0x928] sm:$0xff]  ;;  %v714_v4 = vld [vmem:[#allocation5 + $0xa20] sm:$0xff]  ;;  %v748_v55 = vld [vmem:[#allocation5 + $0xb30] sm:$0xff] }
 0x105   :  { %2488 = vmatpush1.bf16.msra.mxu0 %v2487_v22  ;;  %2616 = vmatpush1.bf16.msra.mxu1 %v2615_v23  ;;  %v327_v22 = vld [vmem:[#allocation5 + $0x7e0] sm:$0xff]  ;;  %v2509_v23 = vpack.c.bf16 %v328_v16, %v324_v15  ;;  %v681_v15 = vld [vmem:[#allocation5 + $0x918] sm:$0xff] }
 0x106   :  { %2490 = vmatprep.subr.bf16.mxu0 %v2489_v26  ;;  %2618 = vmatprep.subr.bf16.mxu1 %v2617_v27  ;;  %v329_v26 = vld [vmem:[#allocation5 + $0x7f0] sm:$0xff]  ;;  %v647_v27 = vld [vmem:[#allocation5 + $0x808] sm:$0xff]  ;;  %v2511_v31 = vpack.c.bf16 %v327_v22, %v323_v21  ;;  %v685_v16 = vld [vmem:[#allocation5 + $0x938] sm:$0xff]  ;;  %v2657_v21 = vpack.c.bf16 %v683_v14, %v679_v13  ;;  %v2675_v13 = vpack.c.bf16 %v714_v4, %v710_v2 }
 0x107   :  { %v2639_v32 = vpack.c.bf16 %v329_v26, %v325_v25  ;;  %v2785_v22 = vpack.c.bf16 %v685_v16, %v681_v15  ;;  %v687_v25 = vld [vmem:[#allocation5 + $0x948] sm:$0xff]  ;;  %v718_v15 = vld [vmem:[#allocation5 + $0xa40] sm:$0xff]  ;;  %v752_v2 = vld [vmem:[#allocation5 + $0xb50] sm:$0xff] }
 0x108   :  { %v691_v26 = vld [vmem:[#allocation5 + $0x968] sm:$0xff]  ;;  %v722_v16 = vld [vmem:[#allocation5 + $0xa60] sm:$0xff]  ;;  %v756_v4 = vld [vmem:[#allocation5 + $0xb70] sm:$0xff] }
 0x109   :  { %2492 = vmatpush1.bf16.msra.mxu0 %v2491_v35  ;;  %2620 = vmatpush1.bf16.msra.mxu1 %v2619_v36  ;;  %v650_v35 = vld [vmem:[#allocation5 + $0x820] sm:$0xff]  ;;  %v2641_v36 = vpack.c.bf16 %v651_v28, %v647_v27  ;;  %v689_v27 = vld [vmem:[#allocation5 + $0x958] sm:$0xff] }
 0x10a   :  { %2494 = vmatprep.subr.bf16.mxu0 %v2493_v39  ;;  %2622 = vmatprep.subr.bf16.mxu1 %v2621_v40  ;;  %v652_v39 = vld [vmem:[#allocation5 + $0x830] sm:$0xff]  ;;  %v655_v40 = vld [vmem:[#allocation5 + $0x848] sm:$0xff]  ;;  %v2643_v44 = vpack.c.bf16 %v650_v35, %v646_v33  ;;  %v693_v28 = vld [vmem:[#allocation5 + $0x978] sm:$0xff]  ;;  %v2661_v33 = vpack.c.bf16 %v691_v26, %v687_v25  ;;  %v2679_v25 = vpack.c.bf16 %v722_v16, %v718_v15 }
 0x10b   :  { %v2771_v45 = vpack.c.bf16 %v652_v39, %v648_v38  ;;  %v2645_v50 = vpack.c.bf16 %v659_v41, %v655_v40  ;;  %v2789_v35 = vpack.c.bf16 %v693_v28, %v689_v27  ;;  %v695_v38 = vld [vmem:[#allocation5 + $0x988] sm:$0xff]  ;;  %v697_v40 = vld [vmem:[#allocation5 + $0x998] sm:$0xff]  ;;  %v726_v27 = vld [vmem:[#allocation5 + $0xa80] sm:$0xff] }
 0x10c   :  { %v699_v39 = vld [vmem:[#allocation5 + $0x9a8] sm:$0xff]  ;;  %v701_v41 = vld [vmem:[#allocation5 + $0x9b8] sm:$0xff]  ;;  %v730_v28 = vld [vmem:[#allocation5 + $0xaa0] sm:$0xff] }
 0x10d   :  { %2496 = vmatpush1.bf16.msra.mxu0 %v2495_v47  ;;  %2624 = vmatpush1.bf16.msra.mxu1 %v2623_v48  ;;  %v658_v47 = vld [vmem:[#allocation5 + $0x860] sm:$0xff]  ;;  %v3451_v48 = vld [vmem:[#allocation2 + $0x10] sm:$0xff] }
 0x10e   :  { %2498 = vmatprep.subr.bf16.mxu0 %v2497_v51  ;;  %2626 = vmatprep.subr.bf16.mxu1 %v2625_v1  ;;  %v73_v49 = vmul.f32 %v3451_v48, %v3622_v34  ;;  %v2773_v51 = vpack.c.bf16 %v661_v43, %v657_v42  ;;  %v656_v1 = vld [vmem:[#allocation5 + $0x850] sm:$0xff]  ;;  %v2647_v56 = vpack.c.bf16 %v658_v47, %v654_v46 }
 0x10f   :  { %v2649_v34 = vpack.c.bf16 %v667_v53, %v663_v52  ;;  %v2665_v46 = vpack.c.bf16 %v699_v39, %v695_v38  ;;  %v2793_v47 = vpack.c.bf16 %v701_v41, %v697_v40  ;;  %v696_v48 = vld [vmem:[#allocation5 + $0x990] sm:$0xff]  ;;  %v2683_v38 = vpack.c.bf16 %v730_v28, %v726_v27  ;;  %v734_v40 = vld [vmem:[#allocation5 + $0xac0] sm:$0xff] }
 0x110   :  { %v738_v41 = vld [vmem:[#allocation5 + $0xae0] sm:$0xff]  ;;  %v760_v16 = vld [vmem:[#allocation5 + $0xb90] sm:$0xff] }
 0x111   :  { %2500 = vmatpush1.bf16.msra.mxu0 %v2499_v57  ;;  %2628 = vmatpush1.bf16.msra.mxu1 %v2627_v58  ;;  %v2775_v57 = vpack.c.bf16 %v660_v0, %v656_v1  ;;  %v662_v58 = vld [vmem:[#allocation5 + $0x880] sm:$0xff]  ;;  %v705_v1 = vld [vmem:[#allocation5 + $0x9d8] sm:$0xff]  ;;  %v768_v28 = vld [vmem:[#allocation5 + $0xbd0] sm:$0xff] }
 0x112   :  { %2502 = vmatprep.subr.bf16.mxu0 %v2501_v61  ;;  %2630 = vmatprep.subr.bf16.mxu1 %v2629_v62  ;;  %v664_v61 = vld [vmem:[#allocation5 + $0x890] sm:$0xff]  ;;  %v2651_v5 = vpack.c.bf16 %v666_v59, %v662_v58  ;;  %v709_v0 = vld [vmem:[#allocation5 + $0x9f8] sm:$0xff] }
 0x113   :  { %v668_v62 = vld [vmem:[#allocation5 + $0x8b0] sm:$0xff] }
 0x114   :  { %v2779_v6 = vpack.c.bf16 %v668_v62, %v664_v61  ;;  %v704_v58 = vld [vmem:[#allocation5 + $0x9d0] sm:$0xff]  ;;  %v713_v61 = vld [vmem:[#allocation5 + $0xa18] sm:$0xff] }
 0x115   :  { %2504 = vmatpush1.bf16.msra.mxu0 %v2503_v7  ;;  %2632 = vmatpush1.bf16.msra.mxu1 %v2631_v8  ;;  %v670_v7 = vld [vmem:[#allocation5 + $0x8c0] sm:$0xff]  ;;  %v708_v59 = vld [vmem:[#allocation5 + $0x9f0] sm:$0xff]  ;;  %v717_v62 = vld [vmem:[#allocation5 + $0xa38] sm:$0xff] }
 0x116   :  { %2506 = vmatprep.subr.bf16.mxu0 %v2505_v11  ;;  %2634 = vmatprep.subr.bf16.mxu1 %v2633_v12  ;;  %v674_v8 = vld [vmem:[#allocation5 + $0x8e0] sm:$0xff]  ;;  %v672_v11 = vld [vmem:[#allocation5 + $0x8d0] sm:$0xff]  ;;  %v2799_v63 = vpack.c.bf16 %v708_v59, %v704_v58  ;;  %v753_v58 = vld [vmem:[#allocation5 + $0xb58] sm:$0xff] }
 0x117   :  { %v676_v12 = vld [vmem:[#allocation5 + $0x8f0] sm:$0xff]  ;;  %v2655_v17 = vpack.c.bf16 %v674_v8, %v670_v7  ;;  %v757_v59 = vld [vmem:[#allocation5 + $0xb78] sm:$0xff] }
 0x118   :  { %v2783_v18 = vpack.c.bf16 %v676_v12, %v672_v11  ;;  %v712_v7 = vld [vmem:[#allocation5 + $0xa10] sm:$0xff]  ;;  %v721_v11 = vld [vmem:[#allocation5 + $0xa58] sm:$0xff] }
 0x119   :  { %2508 = vmatpush1.bf16.msra.mxu0 %v2507_v19  ;;  %2636 = vmatpush1.bf16.msra.mxu1 %v2635_v20  ;;  %v678_v19 = vld [vmem:[#allocation5 + $0x900] sm:$0xff]  ;;  %v716_v8 = vld [vmem:[#allocation5 + $0xa30] sm:$0xff]  ;;  %v725_v12 = vld [vmem:[#allocation5 + $0xa78] sm:$0xff] }
 0x11a   :  { %2510 = vmatprep.subr.bf16.mxu0 %v2509_v23  ;;  %2638 = vmatprep.subr.bf16.mxu1 %v2637_v24  ;;  %v682_v20 = vld [vmem:[#allocation5 + $0x920] sm:$0xff]  ;;  %v680_v23 = vld [vmem:[#allocation5 + $0x910] sm:$0xff]  ;;  %v2803_v14 = vpack.c.bf16 %v716_v8, %v712_v7  ;;  %v759_v7 = vld [vmem:[#allocation5 + $0xb88] sm:$0xff] }
 0x11b   :  { %v684_v24 = vld [vmem:[#allocation5 + $0x930] sm:$0xff]  ;;  %v2659_v29 = vpack.c.bf16 %v682_v20, %v678_v19  ;;  %v763_v8 = vld [vmem:[#allocation5 + $0xba8] sm:$0xff] }
 0x11c   :  { %v2787_v30 = vpack.c.bf16 %v684_v24, %v680_v23  ;;  %v720_v19 = vld [vmem:[#allocation5 + $0xa50] sm:$0xff]  ;;  %v729_v23 = vld [vmem:[#allocation5 + $0xa98] sm:$0xff] }
 0x11d   :  { %2512 = vmatpush1.bf16.msra.mxu0 %v2511_v31  ;;  %2640 = vmatpush1.bf16.msra.mxu1 %v2639_v32  ;;  %v686_v31 = vld [vmem:[#allocation5 + $0x940] sm:$0xff]  ;;  %v724_v20 = vld [vmem:[#allocation5 + $0xa70] sm:$0xff]  ;;  %v733_v24 = vld [vmem:[#allocation5 + $0xab8] sm:$0xff] }
 0x11e   :  { %2642 = vmatprep.subr.bf16.mxu0 %v2641_v36  ;;  %2770 = vmatprep.subr.bf16.mxu1 %v2769_v37  ;;  %v690_v32 = vld [vmem:[#allocation5 + $0x960] sm:$0xff]  ;;  %v688_v36 = vld [vmem:[#allocation5 + $0x950] sm:$0xff]  ;;  %v2807_v26 = vpack.c.bf16 %v724_v20, %v720_v19  ;;  %v767_v19 = vld [vmem:[#allocation5 + $0xbc8] sm:$0xff] }
 0x11f   :  { %v692_v37 = vld [vmem:[#allocation5 + $0x970] sm:$0xff]  ;;  %v2663_v42 = vpack.c.bf16 %v690_v32, %v686_v31  ;;  %v771_v20 = vld [vmem:[#allocation5 + $0xbe8] sm:$0xff] }
 0x120   :  { %489 = vmatmul.mubr.f32.vlgmr.msra.gmra.mrb[0].mxu0 %v73_v49  ;;  %631 = vmatmul.mubr.f32.vlgmr.msra.gmra.mrb[0].mxu1 %v73_v49  ;;  %v2791_v43 = vpack.c.bf16 %v692_v37, %v688_v36  ;;  %v700_v49 = vld [vmem:[#allocation5 + $0x9b0] sm:$0xff]  ;;  %v737_v36 = vld [vmem:[#allocation5 + $0xad8] sm:$0xff] }
 0x121   :  { %2644 = vmatpush1.bf16.msra.mxu0 %v2643_v44  ;;  %2772 = vmatpush1.bf16.msra.mxu1 %v2771_v45  ;;  %v694_v44 = vld [vmem:[#allocation5 + $0x980] sm:$0xff]  ;;  %v2795_v53 = vpack.c.bf16 %v700_v49, %v696_v48  ;;  %v728_v31 = vld [vmem:[#allocation5 + $0xa90] sm:$0xff]  ;;  %v741_v37 = vld [vmem:[#allocation5 + $0xaf8] sm:$0xff] }
 0x122   :  { %2646 = vmatprep.subr.bf16.mxu0 %v2645_v50  ;;  %2774 = vmatprep.subr.bf16.mxu1 %v2773_v51  ;;  %v698_v45 = vld [vmem:[#allocation5 + $0x9a0] sm:$0xff]  ;;  %v703_v50 = vld [vmem:[#allocation5 + $0x9c8] sm:$0xff]  ;;  %v732_v32 = vld [vmem:[#allocation5 + $0xab0] sm:$0xff] }
 0x123   :  { %v707_v51 = vld [vmem:[#allocation5 + $0x9e8] sm:$0xff]  ;;  %v2667_v52 = vpack.c.bf16 %v698_v45, %v694_v44  ;;  %v2811_v39 = vpack.c.bf16 %v732_v32, %v728_v31  ;;  %v736_v44 = vld [vmem:[#allocation5 + $0xad0] sm:$0xff]  ;;  %v745_v48 = vld [vmem:[#allocation5 + $0xb18] sm:$0xff] }
 0x124   :  { %v740_v45 = vld [vmem:[#allocation5 + $0xaf0] sm:$0xff]  ;;  %v749_v49 = vld [vmem:[#allocation5 + $0xb38] sm:$0xff]  ;;  %v775_v31 = vld [vmem:[#allocation5 + $0xc08] sm:$0xff] }
 0x125   :  { %2648 = vmatpush1.bf16.msra.mxu0 %v2647_v56  ;;  %2776 = vmatpush1.bf16.msra.mxu1 %v2775_v57  ;;  %v2669_v56 = vpack.c.bf16 %v707_v51, %v703_v50  ;;  %v2797_v57 = vpack.c.bf16 %v709_v0, %v705_v1  ;;  %v2687_v50 = vpack.c.bf16 %v738_v41, %v734_v40  ;;  %v742_v1 = vld [vmem:[#allocation5 + $0xb00] sm:$0xff]  ;;  %v779_v32 = vld [vmem:[#allocation5 + $0xc28] sm:$0xff] }
 0x126   :  { %2650 = vmatprep.subr.bf16.mxu0 %v2649_v34  ;;  %2778 = vmatprep.subr.bf16.mxu1 %v2777_v60  ;;  %v711_v34 = vld [vmem:[#allocation5 + $0xa08] sm:$0xff]  ;;  %v2815_v51 = vpack.c.bf16 %v740_v45, %v736_v44  ;;  %v746_v0 = vld [vmem:[#allocation5 + $0xb20] sm:$0xff] }
 0x127   :  { %v715_v60 = vld [vmem:[#allocation5 + $0xa28] sm:$0xff]  ;;  %v3636_v41 = vld [vmem:[#allocation7] sm:$0xf] }
 0x129   :  { %2652 = vmatpush1.bf16.msra.mxu0 %v2651_v5  ;;  %2780 = vmatpush1.bf16.msra.mxu1 %v2779_v6  ;;  %v2673_v5 = vpack.c.bf16 %v715_v60, %v711_v34  ;;  %v2801_v6 = vpack.c.bf16 %v717_v62, %v713_v61  ;;  %v2691_v34 = vpack.c.bf16 %v746_v0, %v742_v1  ;;  %v750_v61 = vld [vmem:[#allocation5 + $0xb40] sm:$0xff] }
 0x12a   :  { %2654 = vmatprep.subr.bf16.mxu0 %v2653_v9  ;;  %2782 = vmatprep.subr.bf16.mxu1 %v2781_v10  ;;  %v719_v9 = vld [vmem:[#allocation5 + $0xa48] sm:$0xff]  ;;  %v2819_v60 = vpack.c.bf16 %v748_v55, %v744_v54  ;;  %v778_v54 = vld [vmem:[#allocation5 + $0xc20] sm:$0xff]  ;;  %v776_v55 = vld [vmem:[#allocation5 + $0xc10] sm:$0xff] }
 0x12b   :  { %v723_v10 = vld [vmem:[#allocation5 + $0xa68] sm:$0xff] }
 0x12d   :  { %2656 = vmatpush1.bf16.msra.mxu0 %v2655_v17  ;;  %2784 = vmatpush1.bf16.msra.mxu1 %v2783_v18  ;;  %v2677_v17 = vpack.c.bf16 %v723_v10, %v719_v9  ;;  %v2805_v18 = vpack.c.bf16 %v725_v12, %v721_v11  ;;  %v761_v9 = vld [vmem:[#allocation5 + $0xb98] sm:$0xff]  ;;  %v2697_v10 = vpack.c.bf16 %v763_v8, %v759_v7  ;;  %v758_v12 = vld [vmem:[#allocation5 + $0xb80] sm:$0xff]  ;;  %v788_v7 = vld [vmem:[#allocation5 + $0xc70] sm:$0xff] }
 0x12e   :  { %2658 = vmatprep.subr.bf16.mxu0 %v2657_v21  ;;  %2786 = vmatprep.subr.bf16.mxu1 %v2785_v22  ;;  %v727_v21 = vld [vmem:[#allocation5 + $0xa88] sm:$0xff]  ;;  %v765_v11 = vld [vmem:[#allocation5 + $0xbb8] sm:$0xff] }
 0x12f   :  { %v731_v22 = vld [vmem:[#allocation5 + $0xaa8] sm:$0xff] }
 0x130   :  { %v791_v8 = vld [vmem:[#allocation5 + $0xc88] sm:$0xff] }
 0x131   :  { %2660 = vmatpush1.bf16.msra.mxu0 %v2659_v29  ;;  %2788 = vmatpush1.bf16.msra.mxu1 %v2787_v30  ;;  %v2681_v29 = vpack.c.bf16 %v731_v22, %v727_v21  ;;  %v2809_v30 = vpack.c.bf16 %v733_v24, %v729_v23  ;;  %v769_v21 = vld [vmem:[#allocation5 + $0xbd8] sm:$0xff]  ;;  %v2701_v22 = vpack.c.bf16 %v771_v20, %v767_v19  ;;  %v766_v24 = vld [vmem:[#allocation5 + $0xbc0] sm:$0xff] }
 0x132   :  { %2662 = vmatprep.subr.bf16.mxu0 %v2661_v33  ;;  %2790 = vmatprep.subr.bf16.mxu1 %v2789_v35  ;;  %v735_v33 = vld [vmem:[#allocation5 + $0xac8] sm:$0xff]  ;;  %v773_v23 = vld [vmem:[#allocation5 + $0xbf8] sm:$0xff] }
 0x133   :  { %v739_v35 = vld [vmem:[#allocation5 + $0xae8] sm:$0xff] }
 0x135   :  { %2664 = vmatpush1.bf16.msra.mxu0 %v2663_v42  ;;  %2792 = vmatpush1.bf16.msra.mxu1 %v2791_v43  ;;  %v2685_v42 = vpack.c.bf16 %v739_v35, %v735_v33  ;;  %v2813_v43 = vpack.c.bf16 %v741_v37, %v737_v36  ;;  %v777_v33 = vld [vmem:[#allocation5 + $0xc18] sm:$0xff]  ;;  %v2705_v35 = vpack.c.bf16 %v779_v32, %v775_v31 }
 0x136   :  { %2666 = vmatprep.subr.bf16.mxu0 %v2665_v46  ;;  %2794 = vmatprep.subr.bf16.mxu1 %v2793_v47  ;;  %v743_v46 = vld [vmem:[#allocation5 + $0xb08] sm:$0xff]  ;;  %v781_v36 = vld [vmem:[#allocation5 + $0xc38] sm:$0xff] }
 0x137   :  { %v747_v47 = vld [vmem:[#allocation5 + $0xb28] sm:$0xff]  ;;  %v2833_v37 = vpack.c.bf16 %v781_v36, %v777_v33  ;;  %v800_v33 = vld [vmem:[#allocation5 + $0xcd0] sm:$0xff] }
 0x138   :  { %v807_v36 = vld [vmem:[#allocation5 + $0xd08] sm:$0xff] }
 0x139   :  { %2668 = vmatpush1.bf16.msra.mxu0 %v2667_v52  ;;  %2796 = vmatpush1.bf16.msra.mxu1 %v2795_v53  ;;  %v2689_v52 = vpack.c.bf16 %v747_v47, %v743_v46  ;;  %v2817_v53 = vpack.c.bf16 %v749_v49, %v745_v48 }
 0x13a   :  { %2670 = vmatprep.subr.bf16.mxu0 %v2669_v56  ;;  %2798 = vmatprep.subr.bf16.mxu1 %v2797_v57  ;;  %v751_v56 = vld [vmem:[#allocation5 + $0xb48] sm:$0xff] }
 0x13b   :  { %v755_v57 = vld [vmem:[#allocation5 + $0xb68] sm:$0xff] }
 0x13c   :  { %v2693_v62 = vpack.c.bf16 %v755_v57, %v751_v56  ;;  %v780_v56 = vld [vmem:[#allocation5 + $0xc30] sm:$0xff] }
 0x13d   :  { %2672 = vmatpush1.bf16.msra.mxu0 %v2671_v3  ;;  %2800 = vmatpush1.bf16.msra.mxu1 %v2799_v63  ;;  %v2821_v3 = vpack.c.bf16 %v757_v59, %v753_v58  ;;  %v754_v63 = vld [vmem:[#allocation5 + $0xb60] sm:$0xff]  ;;  %v783_v58 = vld [vmem:[#allocation5 + $0xc48] sm:$0xff] }
 0x13e   :  { %2674 = vmatprep.subr.bf16.mxu0 %v2673_v5  ;;  %2802 = vmatprep.subr.bf16.mxu1 %v2801_v6  ;;  %v2695_v5 = vpack.c.bf16 %v754_v63, %v750_v61  ;;  %v2823_v6 = vpack.c.bf16 %v756_v4, %v752_v2  ;;  %v789_v61 = vld [vmem:[#allocation5 + $0xc78] sm:$0xff]  ;;  %v2835_v63 = vpack.c.bf16 %v780_v56, %v776_v55  ;;  %v782_v2 = vld [vmem:[#allocation5 + $0xc40] sm:$0xff] }
 0x13f   :  { %v786_v4 = vld [vmem:[#allocation5 + $0xc60] sm:$0xff]  ;;  %v821_v55 = vld [vmem:[#allocation5 + $0xd78] sm:$0xff] }
 0x141   :  { %2676 = vmatpush1.bf16.msra.mxu0 %v2675_v13  ;;  %2804 = vmatpush1.bf16.msra.mxu1 %v2803_v14  ;;  %v762_v13 = vld [vmem:[#allocation5 + $0xba0] sm:$0xff]  ;;  %v2825_v14 = vpack.c.bf16 %v765_v11, %v761_v9  ;;  %v795_v11 = vld [vmem:[#allocation5 + $0xca8] sm:$0xff] }
 0x142   :  { %2678 = vmatprep.subr.bf16.mxu0 %v2677_v17  ;;  %2806 = vmatprep.subr.bf16.mxu1 %v2805_v18  ;;  %v2699_v15 = vpack.c.bf16 %v762_v13, %v758_v12  ;;  %v764_v17 = vld [vmem:[#allocation5 + $0xbb0] sm:$0xff]  ;;  %v793_v12 = vld [vmem:[#allocation5 + $0xc98] sm:$0xff]  ;;  %v2713_v19 = vpack.c.bf16 %v795_v11, %v791_v8  ;;  %v826_v8 = vld [vmem:[#allocation5 + $0xda0] sm:$0xff] }
 0x143   :  { %v2827_v18 = vpack.c.bf16 %v764_v17, %v760_v16  ;;  %v797_v13 = vld [vmem:[#allocation5 + $0xcb8] sm:$0xff]  ;;  %v790_v17 = vld [vmem:[#allocation5 + $0xc80] sm:$0xff]  ;;  %v824_v11 = vld [vmem:[#allocation5 + $0xd90] sm:$0xff] }
 0x144   :  { %v2841_v20 = vpack.c.bf16 %v797_v13, %v793_v12  ;;  %v828_v12 = vld [vmem:[#allocation5 + $0xdb0] sm:$0xff]  ;;  %v831_v13 = vld [vmem:[#allocation5 + $0xdc8] sm:$0xff] }
 0x145   :  { %2680 = vmatpush1.bf16.msra.mxu0 %v2679_v25  ;;  %2808 = vmatpush1.bf16.msra.mxu1 %v2807_v26  ;;  %v770_v25 = vld [vmem:[#allocation5 + $0xbe0] sm:$0xff]  ;;  %v2829_v26 = vpack.c.bf16 %v773_v23, %v769_v21  ;;  %v792_v21 = vld [vmem:[#allocation5 + $0xc90] sm:$0xff]  ;;  %v799_v23 = vld [vmem:[#allocation5 + $0xcc8] sm:$0xff] }
 0x146   :  { %2682 = vmatprep.subr.bf16.mxu0 %v2681_v29  ;;  %2810 = vmatprep.subr.bf16.mxu1 %v2809_v30  ;;  %v2703_v27 = vpack.c.bf16 %v770_v25, %v766_v24  ;;  %v772_v29 = vld [vmem:[#allocation5 + $0xbf0] sm:$0xff]  ;;  %v803_v24 = vld [vmem:[#allocation5 + $0xce8] sm:$0xff]  ;;  %v801_v25 = vld [vmem:[#allocation5 + $0xcd8] sm:$0xff] }
 0x147   :  { %v2831_v30 = vpack.c.bf16 %v772_v29, %v768_v28  ;;  %v798_v29 = vld [vmem:[#allocation5 + $0xcc0] sm:$0xff]  ;;  %v2717_v31 = vpack.c.bf16 %v803_v24, %v799_v23  ;;  %v832_v23 = vld [vmem:[#allocation5 + $0xdd0] sm:$0xff] }
 0x148   :  { %v836_v24 = vld [vmem:[#allocation5 + $0xdf0] sm:$0xff] }
 0x149   :  { %2684 = vmatpush1.bf16.msra.mxu0 %v2683_v38  ;;  %2812 = vmatpush1.bf16.msra.mxu1 %v2811_v39  ;;  %v333_v38 = vlaneseq }
 0x14a   :  { %2686 = vmatprep.subr.bf16.mxu0 %v2685_v42  ;;  %2814 = vmatprep.subr.bf16.mxu1 %v2813_v43 }
 0x14b   :  { %v3631_v39 = vshrl.u32 %v333_v38, 7  ;;  %v809_v38 = vld [vmem:[#allocation5 + $0xd18] sm:$0xff] }
 0x14d   :  { %2688 = vmatpush1.bf16.msra.mxu0 %v2687_v50  ;;  %2816 = vmatpush1.bf16.msra.mxu1 %v2815_v51  ;;  %v3634_v40 = vsub.s32 0, %v3631_v39  ;;  %v3639_v42 = vsub.s32 1, %v3631_v39  ;;  %v3642_v43 = vsub.s32 3, %v3631_v39 }
 0x14e   :  { %2690 = vmatprep.subr.bf16.mxu0 %v2689_v52  ;;  %2818 = vmatprep.subr.bf16.mxu1 %v2817_v53  ;;  %v774_v52 = vld [vmem:[#allocation5 + $0xc00] sm:$0xff] }
 0x14f   :  { %v336_v44 = vrot.slane %v3636_v41, %v3634_v40  ;;  %v340_v45 = vrot.slane %v3636_v41, %v3639_v42  ;;  %v348_v46 = vrot.slane %v3636_v41, %v3642_v43 }
 0x151   :  { %2692 = vmatpush1.bf16.msra.mxu0 %v2691_v34  ;;  %2820 = vmatpush1.bf16.msra.mxu1 %v2819_v60  ;;  %v787_v34 = vld [vmem:[#allocation5 + $0xc68] sm:$0xff]  ;;  %v785_v60 = vld [vmem:[#allocation5 + $0xc58] sm:$0xff] }
 0x152   :  { %2694 = vmatprep.subr.bf16.mxu0 %v2693_v62  ;;  %2822 = vmatprep.subr.bf16.mxu1 %v2821_v3  ;;  %v2707_v3 = vpack.c.bf16 %v778_v54, %v774_v52  ;;  %v2709_v9 = vpack.c.bf16 %v787_v34, %v783_v58  ;;  %v815_v52 = vld [vmem:[#allocation5 + $0xd48] sm:$0xff]  ;;  %v817_v54 = vld [vmem:[#allocation5 + $0xd58] sm:$0xff]  ;;  %v814_v58 = vld [vmem:[#allocation5 + $0xd40] sm:$0xff] }
 0x155   :  { %2696 = vmatpush1.bf16.msra.mxu0 %v2695_v5  ;;  %2824 = vmatpush1.bf16.msra.mxu1 %v2823_v6  ;;  %v784_v6 = vld [vmem:[#allocation5 + $0xc50] sm:$0xff] }
 0x156   :  { %2698 = vmatprep.subr.bf16.mxu0 %v2697_v10  ;;  %2826 = vmatprep.subr.bf16.mxu1 %v2825_v14  ;;  %v2837_v10 = vpack.c.bf16 %v789_v61, %v785_v60  ;;  %v2839_v16 = vpack.c.bf16 %v788_v7, %v784_v6  ;;  %v2853_v60 = vpack.c.bf16 %v821_v55, %v817_v54  ;;  %v816_v61 = vld [vmem:[#allocation5 + $0xd50] sm:$0xff]  ;;  %v822_v7 = vld [vmem:[#allocation5 + $0xd80] sm:$0xff]  ;;  %v855_v54 = vld [vmem:[#allocation5 + $0xe88] sm:$0xff] }
 0x157   :  { %v859_v55 = vld [vmem:[#allocation5 + $0xea8] sm:$0xff] }
 0x159   :  { %2700 = vmatpush1.bf16.msra.mxu0 %v2699_v15  ;;  %2828 = vmatpush1.bf16.msra.mxu1 %v2827_v18  ;;  %v2711_v15 = vpack.c.bf16 %v786_v4, %v782_v2  ;;  %v794_v18 = vld [vmem:[#allocation5 + $0xca0] sm:$0xff]  ;;  %v825_v2 = vld [vmem:[#allocation5 + $0xd98] sm:$0xff] }
 0x15a   :  { %2702 = vmatprep.subr.bf16.mxu0 %v2701_v22  ;;  %2830 = vmatprep.subr.bf16.mxu1 %v2829_v26  ;;  %v796_v22 = vld [vmem:[#allocation5 + $0xcb0] sm:$0xff]  ;;  %v805_v26 = vld [vmem:[#allocation5 + $0xcf8] sm:$0xff] }
 0x15b   :  { %v2843_v28 = vpack.c.bf16 %v796_v22, %v792_v21  ;;  %v2845_v32 = vpack.c.bf16 %v805_v26, %v801_v25  ;;  %v829_v4 = vld [vmem:[#allocation5 + $0xdb8] sm:$0xff]  ;;  %v839_v25 = vld [vmem:[#allocation5 + $0xe08] sm:$0xff] }
 0x15c   :  { %v843_v26 = vld [vmem:[#allocation5 + $0xe28] sm:$0xff] }
 0x15d   :  { %2704 = vmatpush1.bf16.msra.mxu0 %v2703_v27  ;;  %2832 = vmatpush1.bf16.msra.mxu1 %v2831_v30  ;;  %v2715_v27 = vpack.c.bf16 %v794_v18, %v790_v17  ;;  %v802_v30 = vld [vmem:[#allocation5 + $0xce0] sm:$0xff]  ;;  %v2731_v17 = vpack.c.bf16 %v826_v8, %v822_v7  ;;  %v2859_v18 = vpack.c.bf16 %v828_v12, %v824_v11 }
 0x15e   :  { %2706 = vmatprep.subr.bf16.mxu0 %v2705_v35  ;;  %2834 = vmatprep.subr.bf16.mxu1 %v2833_v37  ;;  %v804_v35 = vld [vmem:[#allocation5 + $0xcf0] sm:$0xff]  ;;  %v811_v37 = vld [vmem:[#allocation5 + $0xd28] sm:$0xff] }
 0x1f3   :  { %v490_v47 = vpop.f32.mrb[0].mxu0  ;;  %v3650_v48 = vpop.f32.mrb[0].mxu1 }
 0x1f4   :  { %v3409_v49 = vadd.f32 %v490_v47, %v336_v44  ;;  %v492_v50 = vpop.f32.mrb[1].mxu0  ;;  %v634_v51 = vpop.f32.mrb[1].mxu1  ;;  %v813_v44 = vld [vmem:[#allocation5 + $0xd38] sm:$0xff]  ;;  %v806_v47 = vld [vmem:[#allocation5 + $0xd00] sm:$0xff] }
 0x1f5   :  { %v3410_v1 = vadd.f32 %v492_v50, %v340_v45  ;;  %v3412_v0 = vadd.f32 %v634_v51, %v348_v46  ;;  %v2719_v45 = vpack.c.bf16 %v802_v30, %v798_v29  ;;  %v2847_v46 = vpack.c.bf16 %v804_v35, %v800_v33 }
 0x1f6   :  { %v637_v53 = vmul.f32 0.2, %v3409_v49  ;;  %v2721_v50 = vpack.c.bf16 %v811_v37, %v807_v36  ;;  %v2849_v51 = vpack.c.bf16 %v813_v44, %v809_v38  ;;  %v2863_v30 = vpack.c.bf16 %v836_v24, %v832_v23  ;;  %v840_v36 = vld [vmem:[#allocation5 + $0xe10] sm:$0xff]  ;;  %v847_v38 = vld [vmem:[#allocation5 + $0xe48] sm:$0xff] }
 0x1f7   :  { %v638_v57 = vmul.f32 0.2, %v3410_v1  ;;  %v640_v59 = vmul.f32 0.2, %v3412_v0  ;;  %v2737_v33 = vpack.c.bf16 %v843_v26, %v839_v25  ;;  %v844_v37 = vld [vmem:[#allocation5 + $0xe30] sm:$0xff]  ;;  %v851_v44 = vld [vmem:[#allocation5 + $0xe68] sm:$0xff] }
 0x1f8   :  { %v641_v5 = vmax.f32 %v3409_v49, %v637_v53  ;;  %v810_v49 = vld [vmem:[#allocation5 + $0xd20] sm:$0xff]  ;;  %v819_v53 = vld [vmem:[#allocation5 + $0xd68] sm:$0xff]  ;;  %v872_v25 = vld [vmem:[#allocation5 + $0xf10] sm:$0xff] }
 0x1f9   :  { %v642_v62 = vmax.f32 %v3410_v1, %v638_v57  ;;  %v644_v14 = vmax.f32 %v3412_v0, %v640_v59  ;;  %v808_v1 = vld [vmem:[#allocation5 + $0xd10] sm:$0xff]  ;;  %v2723_v56 = vpack.c.bf16 %v810_v49, %v806_v47  ;;  %v818_v59 = vld [vmem:[#allocation5 + $0xd60] sm:$0xff]  ;;  %v2725_v34 = vpack.c.bf16 %v819_v53, %v815_v52 }
 0x1fa   :  { %v812_v0 = vld [vmem:[#allocation5 + $0xd30] sm:$0xff]  ;;  %v2867_v49 = vpack.c.bf16 %v844_v37, %v840_v36  ;;  %v3653_v36 = vsub.s32 2, %v3631_v39 }
 0x1fb   :  { %989 = vmatprep.mubr.f32.mxu0 %v642_v62  ;;  %1131 = vmatprep.mubr.f32.mxu1 %v642_v62  ;;  %v2851_v57 = vpack.c.bf16 %v812_v0, %v808_v1  ;;  %v820_v62 = vld [vmem:[#allocation5 + $0xd70] sm:$0xff]  ;;  %v2741_v1 = vpack.c.bf16 %v851_v44, %v847_v38 }
 0x1fc   :  { %990 = vmatmul.mubr.f32.vlgmr.msra.gmra.mrb[2].mxu0 %v641_v5  ;;  %1132 = vmatmul.mubr.f32.vlgmr.msra.gmra.mrb[2].mxu1 %v641_v5  ;;  %v2727_v5 = vpack.c.bf16 %v818_v59, %v814_v58  ;;  %v2855_v6 = vpack.c.bf16 %v820_v62, %v816_v61  ;;  %v848_v52 = vld [vmem:[#allocation5 + $0xe50] sm:$0xff]  ;;  %v2745_v61 = vpack.c.bf16 %v859_v55, %v855_v54 }
 0x1fd   :  { %2708 = vmatpush1.bf16.msra.mxu0 %v2707_v3  ;;  %2836 = vmatpush1.bf16.msra.mxu1 %v2835_v63  ;;  %v823_v3 = vld [vmem:[#allocation5 + $0xd88] sm:$0xff]  ;;  %v852_v53 = vld [vmem:[#allocation5 + $0xe70] sm:$0xff]  ;;  %v344_v39 = vrot.slane %v3636_v41, %v3653_v36 }
 0x1fe   :  { %1060 = vmatprep.mubr.f32.mxu0 %v644_v14  ;;  %1202 = vmatprep.mubr.f32.mxu1 %v644_v14  ;;  %v827_v63 = vld [vmem:[#allocation5 + $0xda8] sm:$0xff]  ;;  %v2871_v59 = vpack.c.bf16 %v852_v53, %v848_v52  ;;  %v876_v26 = vld [vmem:[#allocation5 + $0xf30] sm:$0xff]  ;;  %v890_v52 = vld [vmem:[#allocation5 + $0xfa0] sm:$0xff] }
 0x1ff   :  { %2710 = vmatprep.subr.bf16.mxu0 %v2709_v9  ;;  %2838 = vmatprep.subr.bf16.mxu1 %v2837_v10  ;;  %v2729_v9 = vpack.c.bf16 %v827_v63, %v823_v3  ;;  %v2857_v10 = vpack.c.bf16 %v829_v4, %v825_v2  ;;  %v835_v14 = vld [vmem:[#allocation5 + $0xde8] sm:$0xff]  ;;  %v856_v3 = vld [vmem:[#allocation5 + $0xe90] sm:$0xff] }
 0x200   :  { %v2733_v21 = vpack.c.bf16 %v835_v14, %v831_v13  ;;  %v860_v63 = vld [vmem:[#allocation5 + $0xeb0] sm:$0xff]  ;;  %v863_v2 = vld [vmem:[#allocation5 + $0xec8] sm:$0xff] }
 0x201   :  { %2712 = vmatpush1.bf16.msra.mxu0 %v2711_v15  ;;  %2840 = vmatpush1.bf16.msra.mxu1 %v2839_v16  ;;  %v833_v15 = vld [vmem:[#allocation5 + $0xdd8] sm:$0xff]  ;;  %v867_v4 = vld [vmem:[#allocation5 + $0xee8] sm:$0xff]  ;;  %v2875_v8 = vpack.c.bf16 %v860_v63, %v856_v3  ;;  %v864_v13 = vld [vmem:[#allocation5 + $0xed0] sm:$0xff]  ;;  %v3411_v63 = vadd.f32 %v3650_v48, %v344_v39 }
 0x202   :  { %2714 = vmatprep.subr.bf16.mxu0 %v2713_v19  ;;  %2842 = vmatprep.subr.bf16.mxu1 %v2841_v20  ;;  %v837_v16 = vld [vmem:[#allocation5 + $0xdf8] sm:$0xff]  ;;  %v830_v19 = vld [vmem:[#allocation5 + $0xdc0] sm:$0xff]  ;;  %v2749_v11 = vpack.c.bf16 %v867_v4, %v863_v2  ;;  %v868_v14 = vld [vmem:[#allocation5 + $0xef0] sm:$0xff] }
 0x203   :  { %v834_v20 = vld [vmem:[#allocation5 + $0xde0] sm:$0xff]  ;;  %v2861_v22 = vpack.c.bf16 %v837_v16, %v833_v15  ;;  %v871_v15 = vld [vmem:[#allocation5 + $0xf08] sm:$0xff]  ;;  %v880_v44 = vld [vmem:[#allocation5 + $0xf50] sm:$0xff] }
 0x204   :  { %v2735_v29 = vpack.c.bf16 %v834_v20, %v830_v19  ;;  %v875_v16 = vld [vmem:[#allocation5 + $0xf28] sm:$0xff]  ;;  %v2879_v20 = vpack.c.bf16 %v868_v14, %v864_v13  ;;  %v888_v55 = vld [vmem:[#allocation5 + $0xf90] sm:$0xff]  ;;  %v898_v3 = vld [vmem:[#allocation5 + $0xfe0] sm:$0xff]  ;;  %v639_v14 = vmul.f32 0.2, %v3411_v63 }
 0x205   :  { %2716 = vmatpush1.bf16.msra.mxu0 %v2715_v27  ;;  %2844 = vmatpush1.bf16.msra.mxu1 %v2843_v28  ;;  %v841_v27 = vld [vmem:[#allocation5 + $0xe18] sm:$0xff]  ;;  %v2753_v23 = vpack.c.bf16 %v875_v16, %v871_v15  ;;  %v896_v4 = vld [vmem:[#allocation5 + $0xfd0] sm:$0xff]  ;;  %v1222_v13 = vld [vmem:[#allocation5 + $0x1020] sm:$0xff] }
 0x206   :  { %2718 = vmatprep.subr.bf16.mxu0 %v2717_v31  ;;  %2846 = vmatprep.subr.bf16.mxu1 %v2845_v32  ;;  %v845_v28 = vld [vmem:[#allocation5 + $0xe38] sm:$0xff]  ;;  %v838_v31 = vld [vmem:[#allocation5 + $0xe00] sm:$0xff]  ;;  %v1220_v16 = vld [vmem:[#allocation5 + $0x1010] sm:$0xff] }
 0x207   :  { %v842_v32 = vld [vmem:[#allocation5 + $0xe20] sm:$0xff]  ;;  %v2865_v35 = vpack.c.bf16 %v845_v28, %v841_v27  ;;  %v879_v27 = vld [vmem:[#allocation5 + $0xf48] sm:$0xff] }
 0x208   :  { %v2739_v47 = vpack.c.bf16 %v842_v32, %v838_v31  ;;  %v883_v28 = vld [vmem:[#allocation5 + $0xf68] sm:$0xff]  ;;  %v2883_v32 = vpack.c.bf16 %v876_v26, %v872_v25  ;;  %v1230_v25 = vld [vmem:[#allocation5 + $0x1060] sm:$0xff]  ;;  %v643_v26 = vmax.f32 %v3411_v63, %v639_v14 }
 0x209   :  { %2720 = vmatpush1.bf16.msra.mxu0 %v2719_v45  ;;  %2848 = vmatpush1.bf16.msra.mxu1 %v2847_v46  ;;  %v849_v45 = vld [vmem:[#allocation5 + $0xe58] sm:$0xff]  ;;  %v2757_v37 = vpack.c.bf16 %v883_v28, %v879_v27  ;;  %v1258_v14 = vld [vmem:[#allocation5 + $0x1140] sm:$0xff] }
 0x20a   :  { %2722 = vmatprep.subr.bf16.mxu0 %v2721_v50  ;;  %2850 = vmatprep.subr.bf16.mxu1 %v2849_v51  ;;  %v853_v46 = vld [vmem:[#allocation5 + $0xe78] sm:$0xff]  ;;  %v846_v50 = vld [vmem:[#allocation5 + $0xe40] sm:$0xff] }
 0x20b   :  { %v850_v51 = vld [vmem:[#allocation5 + $0xe60] sm:$0xff]  ;;  %v2869_v0 = vpack.c.bf16 %v853_v46, %v849_v45  ;;  %v884_v45 = vld [vmem:[#allocation5 + $0xf70] sm:$0xff]  ;;  %v887_v46 = vld [vmem:[#allocation5 + $0xf88] sm:$0xff] }
 0x20c   :  { %v2743_v58 = vpack.c.bf16 %v850_v51, %v846_v50  ;;  %v893_v50 = vld [vmem:[#allocation5 + $0xfb8] sm:$0xff] }
 0x20d   :  { %2724 = vmatpush1.bf16.msra.mxu0 %v2723_v56  ;;  %2852 = vmatpush1.bf16.msra.mxu1 %v2851_v57  ;;  %v857_v56 = vld [vmem:[#allocation5 + $0xe98] sm:$0xff] }
 0x20e   :  { %2726 = vmatprep.subr.bf16.mxu0 %v2725_v34  ;;  %2854 = vmatprep.subr.bf16.mxu1 %v2853_v60  ;;  %v861_v57 = vld [vmem:[#allocation5 + $0xeb8] sm:$0xff]  ;;  %v854_v34 = vld [vmem:[#allocation5 + $0xe80] sm:$0xff] }
 0x20f   :  { %v858_v60 = vld [vmem:[#allocation5 + $0xea0] sm:$0xff]  ;;  %v2873_v62 = vpack.c.bf16 %v861_v57, %v857_v56  ;;  %v892_v56 = vld [vmem:[#allocation5 + $0xfb0] sm:$0xff]  ;;  %v895_v57 = vld [vmem:[#allocation5 + $0xfc8] sm:$0xff] }
 0x210   :  { %v2747_v7 = vpack.c.bf16 %v858_v60, %v854_v34  ;;  %v901_v34 = vld [vmem:[#allocation5 + $0xff8] sm:$0xff] }
 0x211   :  { %2728 = vmatpush1.bf16.msra.mxu0 %v2727_v5  ;;  %2856 = vmatpush1.bf16.msra.mxu1 %v2855_v6  ;;  %v865_v5 = vld [vmem:[#allocation5 + $0xed8] sm:$0xff] }
 0x212   :  { %2730 = vmatprep.subr.bf16.mxu0 %v2729_v9  ;;  %2858 = vmatprep.subr.bf16.mxu1 %v2857_v10  ;;  %v869_v6 = vld [vmem:[#allocation5 + $0xef8] sm:$0xff]  ;;  %v862_v9 = vld [vmem:[#allocation5 + $0xec0] sm:$0xff] }
 0x213   :  { %v866_v10 = vld [vmem:[#allocation5 + $0xee0] sm:$0xff]  ;;  %v2877_v12 = vpack.c.bf16 %v869_v6, %v865_v5  ;;  %v900_v5 = vld [vmem:[#allocation5 + $0xff0] sm:$0xff]  ;;  %v1219_v6 = vld [vmem:[#allocation5 + $0x1008] sm:$0xff] }
 0x214   :  { %v2751_v19 = vpack.c.bf16 %v866_v10, %v862_v9  ;;  %v1225_v9 = vld [vmem:[#allocation5 + $0x1038] sm:$0xff] }
 0x215   :  { %2732 = vmatpush1.bf16.msra.mxu0 %v2731_v17  ;;  %2860 = vmatpush1.bf16.msra.mxu1 %v2859_v18  ;;  %v873_v17 = vld [vmem:[#allocation5 + $0xf18] sm:$0xff] }
 0x216   :  { %2734 = vmatprep.subr.bf16.mxu0 %v2733_v21  ;;  %2862 = vmatprep.subr.bf16.mxu1 %v2861_v22  ;;  %v877_v18 = vld [vmem:[#allocation5 + $0xf38] sm:$0xff]  ;;  %v870_v21 = vld [vmem:[#allocation5 + $0xf00] sm:$0xff] }
 0x217   :  { %v874_v22 = vld [vmem:[#allocation5 + $0xf20] sm:$0xff]  ;;  %v2881_v24 = vpack.c.bf16 %v877_v18, %v873_v17  ;;  %v1224_v17 = vld [vmem:[#allocation5 + $0x1030] sm:$0xff]  ;;  %v1227_v18 = vld [vmem:[#allocation5 + $0x1048] sm:$0xff] }
 0x218   :  { %v2755_v31 = vpack.c.bf16 %v874_v22, %v870_v21  ;;  %v1233_v21 = vld [vmem:[#allocation5 + $0x1078] sm:$0xff] }
 0x219   :  { %2736 = vmatpush1.bf16.msra.mxu0 %v2735_v29  ;;  %2864 = vmatpush1.bf16.msra.mxu1 %v2863_v30  ;;  %v881_v29 = vld [vmem:[#allocation5 + $0xf58] sm:$0xff] }
 0x21a   :  { %2738 = vmatprep.subr.bf16.mxu0 %v2737_v33  ;;  %2866 = vmatprep.subr.bf16.mxu1 %v2865_v35  ;;  %v885_v30 = vld [vmem:[#allocation5 + $0xf78] sm:$0xff]  ;;  %v878_v33 = vld [vmem:[#allocation5 + $0xf40] sm:$0xff] }
 0x21b   :  { %v882_v35 = vld [vmem:[#allocation5 + $0xf60] sm:$0xff]  ;;  %v2885_v38 = vpack.c.bf16 %v885_v30, %v881_v29  ;;  %v1228_v29 = vld [vmem:[#allocation5 + $0x1050] sm:$0xff] }
 0x21c   :  { %v2759_v51 = vpack.c.bf16 %v882_v35, %v878_v33  ;;  %v1232_v30 = vld [vmem:[#allocation5 + $0x1070] sm:$0xff]  ;;  %v1237_v33 = vld [vmem:[#allocation5 + $0x1098] sm:$0xff] }
 0x21d   :  { %2740 = vmatpush1.bf16.msra.mxu0 %v2739_v47  ;;  %2868 = vmatpush1.bf16.msra.mxu1 %v2867_v49  ;;  %v891_v47 = vld [vmem:[#allocation5 + $0xfa8] sm:$0xff]  ;;  %v889_v49 = vld [vmem:[#allocation5 + $0xf98] sm:$0xff] }
 0x21e   :  { %2742 = vmatprep.subr.bf16.mxu0 %v2741_v1  ;;  %2870 = vmatprep.subr.bf16.mxu1 %v2869_v0  ;;  %v2887_v1 = vpack.c.bf16 %v884_v45, %v880_v44  ;;  %v886_v0 = vld [vmem:[#allocation5 + $0xf80] sm:$0xff]  ;;  %v2761_v53 = vpack.c.bf16 %v891_v47, %v887_v46  ;;  %v2889_v54 = vpack.c.bf16 %v893_v50, %v889_v49  ;;  %v1241_v35 = vld [vmem:[#allocation5 + $0x10b8] sm:$0xff]  ;;  %v1236_v49 = vld [vmem:[#allocation5 + $0x1090] sm:$0xff] }
 0x21f   :  { %v2763_v60 = vpack.c.bf16 %v890_v52, %v886_v0  ;;  %v1234_v44 = vld [vmem:[#allocation5 + $0x1080] sm:$0xff]  ;;  %v3033_v47 = vpack.c.bf16 %v1241_v35, %v1237_v33  ;;  %v1240_v50 = vld [vmem:[#allocation5 + $0x10b0] sm:$0xff]  ;;  %v1245_v0 = vld [vmem:[#allocation5 + $0x10d8] sm:$0xff] }
 0x220   :  { %v1238_v45 = vld [vmem:[#allocation5 + $0x10a0] sm:$0xff]  ;;  %v1249_v52 = vld [vmem:[#allocation5 + $0x10f8] sm:$0xff] }
 0x221   :  { %2744 = vmatpush1.bf16.msra.mxu0 %v2743_v58  ;;  %2872 = vmatpush1.bf16.msra.mxu1 %v2871_v59  ;;  %v899_v58 = vld [vmem:[#allocation5 + $0xfe8] sm:$0xff]  ;;  %v897_v59 = vld [vmem:[#allocation5 + $0xfd8] sm:$0xff]  ;;  %v2907_v39 = vpack.c.bf16 %v1238_v45, %v1234_v44  ;;  %v1274_v44 = vld [vmem:[#allocation5 + $0x11c0] sm:$0xff] }
 0x222   :  { %2746 = vmatprep.subr.bf16.mxu0 %v2745_v61  ;;  %2874 = vmatprep.subr.bf16.mxu1 %v2873_v62  ;;  %v2891_v61 = vpack.c.bf16 %v892_v56, %v888_v55  ;;  %v894_v62 = vld [vmem:[#allocation5 + $0xfc0] sm:$0xff]  ;;  %v2765_v41 = vpack.c.bf16 %v899_v58, %v895_v57  ;;  %v2893_v2 = vpack.c.bf16 %v901_v34, %v897_v59  ;;  %v1244_v58 = vld [vmem:[#allocation5 + $0x10d0] sm:$0xff]  ;;  %v1251_v34 = vld [vmem:[#allocation5 + $0x1108] sm:$0xff] }
 0x223   :  { %v2767_v10 = vpack.c.bf16 %v898_v3, %v894_v62  ;;  %v1246_v55 = vld [vmem:[#allocation5 + $0x10e0] sm:$0xff]  ;;  %v3037_v57 = vpack.c.bf16 %v1249_v52, %v1245_v0  ;;  %v1248_v59 = vld [vmem:[#allocation5 + $0x10f0] sm:$0xff]  ;;  %v1257_v62 = vld [vmem:[#allocation5 + $0x1138] sm:$0xff] }
 0x224   :  { %v3039_v63 = vpack.c.bf16 %v1248_v59, %v1244_v58  ;;  %v1277_v33 = vld [vmem:[#allocation5 + $0x11d8] sm:$0xff]  ;;  %v1278_v45 = vld [vmem:[#allocation5 + $0x11e0] sm:$0xff]  ;;  %v1284_v58 = vld [vmem:[#allocation5 + $0x1210] sm:$0xff] }
 0x225   :  { %2748 = vmatpush1.bf16.msra.mxu0 %v2747_v7  ;;  %2876 = vmatpush1.bf16.msra.mxu1 %v2875_v8  ;;  %v1223_v7 = vld [vmem:[#allocation5 + $0x1028] sm:$0xff]  ;;  %v1221_v8 = vld [vmem:[#allocation5 + $0x1018] sm:$0xff]  ;;  %v1288_v59 = vld [vmem:[#allocation5 + $0x1230] sm:$0xff] }
 0x226   :  { %2750 = vmatprep.subr.bf16.mxu0 %v2749_v11  ;;  %2878 = vmatprep.subr.bf16.mxu1 %v2877_v12  ;;  %v2895_v11 = vpack.c.bf16 %v900_v5, %v896_v4  ;;  %v1218_v12 = vld [vmem:[#allocation5 + $0x1000] sm:$0xff]  ;;  %v2897_v48 = vpack.c.bf16 %v1223_v7, %v1219_v6  ;;  %v3025_v15 = vpack.c.bf16 %v1225_v9, %v1221_v8  ;;  %v1252_v6 = vld [vmem:[#allocation5 + $0x1110] sm:$0xff]  ;;  %v1259_v8 = vld [vmem:[#allocation5 + $0x1148] sm:$0xff] }
 0x227   :  { %v2899_v22 = vpack.c.bf16 %v1222_v13, %v1218_v12  ;;  %v1256_v7 = vld [vmem:[#allocation5 + $0x1130] sm:$0xff]  ;;  %v1263_v9 = vld [vmem:[#allocation5 + $0x1168] sm:$0xff]  ;;  %v1281_v35 = vld [vmem:[#allocation5 + $0x11f8] sm:$0xff] }
 0x228   :  { %v3043_v13 = vpack.c.bf16 %v1256_v7, %v1252_v6  ;;  %v1285_v0 = vld [vmem:[#allocation5 + $0x1218] sm:$0xff]  ;;  %v1292_v6 = vld [vmem:[#allocation5 + $0x1250] sm:$0xff] }
 0x229   :  { %2752 = vmatpush1.bf16.msra.mxu0 %v2751_v19  ;;  %2880 = vmatpush1.bf16.msra.mxu1 %v2879_v20  ;;  %v1231_v19 = vld [vmem:[#allocation5 + $0x1068] sm:$0xff]  ;;  %v1229_v20 = vld [vmem:[#allocation5 + $0x1058] sm:$0xff]  ;;  %v1296_v7 = vld [vmem:[#allocation5 + $0x1270] sm:$0xff] }
 0x22a   :  { %2754 = vmatprep.subr.bf16.mxu0 %v2753_v23  ;;  %2882 = vmatprep.subr.bf16.mxu1 %v2881_v24  ;;  %v3027_v23 = vpack.c.bf16 %v1224_v17, %v1220_v16  ;;  %v1226_v24 = vld [vmem:[#allocation5 + $0x1040] sm:$0xff]  ;;  %v2901_v27 = vpack.c.bf16 %v1231_v19, %v1227_v18  ;;  %v3029_v28 = vpack.c.bf16 %v1233_v21, %v1229_v20  ;;  %v1260_v17 = vld [vmem:[#allocation5 + $0x1150] sm:$0xff]  ;;  %v1267_v19 = vld [vmem:[#allocation5 + $0x1188] sm:$0xff] }
 0x22b   :  { %v1264_v18 = vld [vmem:[#allocation5 + $0x1170] sm:$0xff]  ;;  %v1271_v20 = vld [vmem:[#allocation5 + $0x11a8] sm:$0xff]  ;;  %v1269_v21 = vld [vmem:[#allocation5 + $0x1198] sm:$0xff] }
 0x22c   :  { %v1289_v52 = vld [vmem:[#allocation5 + $0x1238] sm:$0xff] }
 0x22d   :  { %2756 = vmatpush1.bf16.msra.mxu0 %v2755_v31  ;;  %2884 = vmatpush1.bf16.msra.mxu1 %v2883_v32  ;;  %v1235_v31 = vld [vmem:[#allocation5 + $0x1088] sm:$0xff] }
 0x22e   :  { %2758 = vmatprep.subr.bf16.mxu0 %v2757_v37  ;;  %2886 = vmatprep.subr.bf16.mxu1 %v2885_v38  ;;  %v1239_v32 = vld [vmem:[#allocation5 + $0x10a8] sm:$0xff]  ;;  %v2903_v37 = vpack.c.bf16 %v1230_v25, %v1226_v24  ;;  %v3031_v38 = vpack.c.bf16 %v1232_v30, %v1228_v29  ;;  %v3047_v24 = vpack.c.bf16 %v1264_v18, %v1260_v17  ;;  %v1266_v25 = vld [vmem:[#allocation5 + $0x1180] sm:$0xff]  ;;  %v1268_v29 = vld [vmem:[#allocation5 + $0x1190] sm:$0xff] }
 0x22f   :  { %v2905_v46 = vpack.c.bf16 %v1239_v32, %v1235_v31  ;;  %v1272_v30 = vld [vmem:[#allocation5 + $0x11b0] sm:$0xff]  ;;  %v1275_v31 = vld [vmem:[#allocation5 + $0x11c8] sm:$0xff] }
 0x230   :  { %v1279_v32 = vld [vmem:[#allocation5 + $0x11e8] sm:$0xff]  ;;  %v1300_v17 = vld [vmem:[#allocation5 + $0x1290] sm:$0xff] }
 0x231   :  { %2760 = vmatpush1.bf16.msra.mxu0 %v2759_v51  ;;  %2888 = vmatpush1.bf16.msra.mxu1 %v2887_v1  ;;  %v1243_v51 = vld [vmem:[#allocation5 + $0x10c8] sm:$0xff]  ;;  %v1304_v18 = vld [vmem:[#allocation5 + $0x12b0] sm:$0xff] }
 0x232   :  { %2762 = vmatprep.subr.bf16.mxu0 %v2761_v53  ;;  %2890 = vmatprep.subr.bf16.mxu1 %v2889_v54  ;;  %v1247_v1 = vld [vmem:[#allocation5 + $0x10e8] sm:$0xff]  ;;  %v3035_v53 = vpack.c.bf16 %v1240_v50, %v1236_v49  ;;  %v1242_v54 = vld [vmem:[#allocation5 + $0x10c0] sm:$0xff]  ;;  %v1276_v49 = vld [vmem:[#allocation5 + $0x11d0] sm:$0xff] }
 0x233   :  { %v2909_v56 = vpack.c.bf16 %v1247_v1, %v1243_v51  ;;  %v2911_v3 = vpack.c.bf16 %v1246_v55, %v1242_v54  ;;  %v1280_v50 = vld [vmem:[#allocation5 + $0x11f0] sm:$0xff]  ;;  %v1283_v51 = vld [vmem:[#allocation5 + $0x1208] sm:$0xff]  ;;  %v1282_v54 = vld [vmem:[#allocation5 + $0x1200] sm:$0xff] }
 0x234   :  { %v1287_v1 = vld [vmem:[#allocation5 + $0x1228] sm:$0xff]  ;;  %v1286_v55 = vld [vmem:[#allocation5 + $0x1220] sm:$0xff] }
 0x235   :  { %2764 = vmatpush1.bf16.msra.mxu0 %v2763_v60  ;;  %2892 = vmatpush1.bf16.msra.mxu1 %v2891_v61  ;;  %v1255_v60 = vld [vmem:[#allocation5 + $0x1128] sm:$0xff]  ;;  %v1253_v61 = vld [vmem:[#allocation5 + $0x1118] sm:$0xff] }
 0x236   :  { %2766 = vmatprep.subr.bf16.mxu0 %v2765_v41  ;;  %2894 = vmatprep.subr.bf16.mxu1 %v2893_v2  ;;  %v1250_v41 = vld [vmem:[#allocation5 + $0x1100] sm:$0xff]  ;;  %v2913_v4 = vpack.c.bf16 %v1255_v60, %v1251_v34  ;;  %v3041_v5 = vpack.c.bf16 %v1257_v62, %v1253_v61  ;;  %v1291_v34 = vld [vmem:[#allocation5 + $0x1248] sm:$0xff]  ;;  %v1293_v61 = vld [vmem:[#allocation5 + $0x1258] sm:$0xff] }
 0x237   :  { %v1254_v2 = vld [vmem:[#allocation5 + $0x1120] sm:$0xff]  ;;  %v1295_v60 = vld [vmem:[#allocation5 + $0x1268] sm:$0xff]  ;;  %v1297_v62 = vld [vmem:[#allocation5 + $0x1278] sm:$0xff] }
 0x238   :  { %v2915_v12 = vpack.c.bf16 %v1254_v2, %v1250_v41  ;;  %v1290_v41 = vld [vmem:[#allocation5 + $0x1240] sm:$0xff] }
 0x239   :  { %2768 = vmatpush1.bf16.msra.mxu0 %v2767_v10  ;;  %2896 = vmatpush1.bf16.msra.mxu1 %v2895_v11  ;;  %v1261_v10 = vld [vmem:[#allocation5 + $0x1158] sm:$0xff]  ;;  %v1294_v2 = vld [vmem:[#allocation5 + $0x1260] sm:$0xff] }
 0x23a   :  { %2898 = vmatprep.subr.bf16.mxu0 %v2897_v48  ;;  %3026 = vmatprep.subr.bf16.mxu1 %v3025_v15  ;;  %v1265_v11 = vld [vmem:[#allocation5 + $0x1178] sm:$0xff]  ;;  %v1262_v48 = vld [vmem:[#allocation5 + $0x1160] sm:$0xff]  ;;  %v2917_v15 = vpack.c.bf16 %v1263_v9, %v1259_v8  ;;  %v1299_v8 = vld [vmem:[#allocation5 + $0x1288] sm:$0xff] }
 0x23b   :  { %v3045_v16 = vpack.c.bf16 %v1265_v11, %v1261_v10  ;;  %v1303_v9 = vld [vmem:[#allocation5 + $0x12a8] sm:$0xff]  ;;  %v1301_v10 = vld [vmem:[#allocation5 + $0x1298] sm:$0xff] }
 0x23c   :  { %1061 = vmatmul.mubr.f32.vlgmr.msra.gmra.mrb[2].mxu0 %v643_v26  ;;  %1203 = vmatmul.mubr.f32.vlgmr.msra.gmra.mrb[2].mxu1 %v643_v26  ;;  %v1270_v26 = vld [vmem:[#allocation5 + $0x11a0] sm:$0xff]  ;;  %v1305_v11 = vld [vmem:[#allocation5 + $0x12b8] sm:$0xff] }
 0x23d   :  { %2900 = vmatpush1.bf16.msra.mxu0 %v2899_v22  ;;  %3028 = vmatpush1.bf16.msra.mxu1 %v3027_v23  ;;  %v1273_v22 = vld [vmem:[#allocation5 + $0x11b8] sm:$0xff]  ;;  %v2919_v23 = vpack.c.bf16 %v1262_v48, %v1258_v14  ;;  %v1298_v14 = vld [vmem:[#allocation5 + $0x1280] sm:$0xff] }
 0x23e   :  { %2902 = vmatprep.subr.bf16.mxu0 %v2901_v27  ;;  %3030 = vmatprep.subr.bf16.mxu1 %v3029_v28  ;;  %v2921_v27 = vpack.c.bf16 %v1271_v20, %v1267_v19  ;;  %v3049_v28 = vpack.c.bf16 %v1273_v22, %v1269_v21  ;;  %v1302_v48 = vld [vmem:[#allocation5 + $0x12a0] sm:$0xff]  ;;  %v1307_v19 = vld [vmem:[#allocation5 + $0x12c8] sm:$0xff]  ;;  %v1309_v21 = vld [vmem:[#allocation5 + $0x12d8] sm:$0xff] }
 0x23f   :  { %v1311_v20 = vld [vmem:[#allocation5 + $0x12e8] sm:$0xff]  ;;  %v1313_v22 = vld [vmem:[#allocation5 + $0x12f8] sm:$0xff] }
 0x241   :  { %2904 = vmatpush1.bf16.msra.mxu0 %v2903_v37  ;;  %3032 = vmatpush1.bf16.msra.mxu1 %v3031_v38  ;;  %v2923_v37 = vpack.c.bf16 %v1270_v26, %v1266_v25  ;;  %v3051_v38 = vpack.c.bf16 %v1272_v30, %v1268_v29  ;;  %v1306_v25 = vld [vmem:[#allocation5 + $0x12c0] sm:$0xff]  ;;  %v1308_v29 = vld [vmem:[#allocation5 + $0x12d0] sm:$0xff] }
 0x242   :  { %2906 = vmatprep.subr.bf16.mxu0 %v2905_v46  ;;  %3034 = vmatprep.subr.bf16.mxu1 %v3033_v47  ;;  %v2925_v46 = vpack.c.bf16 %v1279_v32, %v1275_v31  ;;  %v3053_v47 = vpack.c.bf16 %v1281_v35, %v1277_v33  ;;  %v1310_v26 = vld [vmem:[#allocation5 + $0x12e0] sm:$0xff]  ;;  %v1312_v30 = vld [vmem:[#allocation5 + $0x12f0] sm:$0xff]  ;;  %v1315_v31 = vld [vmem:[#allocation5 + $0x1308] sm:$0xff] }
 0x243   :  { %v1319_v32 = vld [vmem:[#allocation5 + $0x1328] sm:$0xff]  ;;  %v1317_v33 = vld [vmem:[#allocation5 + $0x1318] sm:$0xff] }
 0x244   :  { %v1321_v35 = vld [vmem:[#allocation5 + $0x1338] sm:$0xff] }
 0x245   :  { %2908 = vmatpush1.bf16.msra.mxu0 %v2907_v39  ;;  %3036 = vmatpush1.bf16.msra.mxu1 %v3035_v53  ;;  %v2927_v39 = vpack.c.bf16 %v1278_v45, %v1274_v44  ;;  %v3055_v53 = vpack.c.bf16 %v1280_v50, %v1276_v49  ;;  %v1314_v44 = vld [vmem:[#allocation5 + $0x1300] sm:$0xff]  ;;  %v1316_v49 = vld [vmem:[#allocation5 + $0x1310] sm:$0xff] }
 0x246   :  { %2910 = vmatprep.subr.bf16.mxu0 %v2909_v56  ;;  %3038 = vmatprep.subr.bf16.mxu1 %v3037_v57  ;;  %v2929_v56 = vpack.c.bf16 %v1287_v1, %v1283_v51  ;;  %v3057_v57 = vpack.c.bf16 %v1289_v52, %v1285_v0  ;;  %v1318_v45 = vld [vmem:[#allocation5 + $0x1320] sm:$0xff]  ;;  %v1320_v50 = vld [vmem:[#allocation5 + $0x1330] sm:$0xff]  ;;  %v1323_v51 = vld [vmem:[#allocation5 + $0x1348] sm:$0xff] }
 0x247   :  { %v1327_v1 = vld [vmem:[#allocation5 + $0x1368] sm:$0xff]  ;;  %v1325_v0 = vld [vmem:[#allocation5 + $0x1358] sm:$0xff] }
 0x248   :  { %v1329_v52 = vld [vmem:[#allocation5 + $0x1378] sm:$0xff] }
 0x249   :  { %2912 = vmatpush1.bf16.msra.mxu0 %v2911_v3  ;;  %3040 = vmatpush1.bf16.msra.mxu1 %v3039_v63  ;;  %v2931_v3 = vpack.c.bf16 %v1286_v55, %v1282_v54  ;;  %v3059_v63 = vpack.c.bf16 %v1288_v59, %v1284_v58  ;;  %v1322_v54 = vld [vmem:[#allocation5 + $0x1340] sm:$0xff]  ;;  %v2949_v55 = vpack.c.bf16 %v1327_v1, %v1323_v51  ;;  %v1324_v58 = vld [vmem:[#allocation5 + $0x1350] sm:$0xff]  ;;  %v1355_v1 = vld [vmem:[#allocation5 + $0x1448] sm:$0xff] }
 0x24a   :  { %2914 = vmatprep.subr.bf16.mxu0 %v2913_v4  ;;  %3042 = vmatprep.subr.bf16.mxu1 %v3041_v5  ;;  %v2933_v4 = vpack.c.bf16 %v1295_v60, %v1291_v34  ;;  %v3061_v5 = vpack.c.bf16 %v1297_v62, %v1293_v61  ;;  %v1328_v59 = vld [vmem:[#allocation5 + $0x1370] sm:$0xff]  ;;  %v1331_v61 = vld [vmem:[#allocation5 + $0x1388] sm:$0xff] }
 0x24b   :  { %v3079_v60 = vpack.c.bf16 %v1328_v59, %v1324_v58  ;;  %v1335_v62 = vld [vmem:[#allocation5 + $0x13a8] sm:$0xff]  ;;  %v1358_v58 = vld [vmem:[#allocation5 + $0x1460] sm:$0xff] }
 0x24d   :  { %2916 = vmatpush1.bf16.msra.mxu0 %v2915_v12  ;;  %3044 = vmatpush1.bf16.msra.mxu1 %v3043_v13  ;;  %v2935_v12 = vpack.c.bf16 %v1294_v2, %v1290_v41  ;;  %v3063_v13 = vpack.c.bf16 %v1296_v7, %v1292_v6  ;;  %v1337_v41 = vld [vmem:[#allocation5 + $0x13b8] sm:$0xff]  ;;  %v1330_v2 = vld [vmem:[#allocation5 + $0x1380] sm:$0xff]  ;;  %v1332_v7 = vld [vmem:[#allocation5 + $0x1390] sm:$0xff] }
 0x24e   :  { %2918 = vmatprep.subr.bf16.mxu0 %v2917_v15  ;;  %3046 = vmatprep.subr.bf16.mxu1 %v3045_v16  ;;  %v2937_v15 = vpack.c.bf16 %v1303_v9, %v1299_v8  ;;  %v3065_v16 = vpack.c.bf16 %v1305_v11, %v1301_v10  ;;  %v1336_v8 = vld [vmem:[#allocation5 + $0x13b0] sm:$0xff]  ;;  %v1339_v10 = vld [vmem:[#allocation5 + $0x13c8] sm:$0xff] }
 0x24f   :  { %v3083_v9 = vpack.c.bf16 %v1336_v8, %v1332_v7  ;;  %v1343_v11 = vld [vmem:[#allocation5 + $0x13e8] sm:$0xff]  ;;  %v1362_v7 = vld [vmem:[#allocation5 + $0x1480] sm:$0xff] }
 0x250   :  { %v1366_v8 = vld [vmem:[#allocation5 + $0x14a0] sm:$0xff] }
 0x251   :  { %2920 = vmatpush1.bf16.msra.mxu0 %v2919_v23  ;;  %3048 = vmatpush1.bf16.msra.mxu1 %v3047_v24  ;;  %v2939_v23 = vpack.c.bf16 %v1302_v48, %v1298_v14  ;;  %v3067_v24 = vpack.c.bf16 %v1304_v18, %v1300_v17  ;;  %v1345_v14 = vld [vmem:[#allocation5 + $0x13f8] sm:$0xff]  ;;  %v1338_v48 = vld [vmem:[#allocation5 + $0x13c0] sm:$0xff]  ;;  %v1340_v18 = vld [vmem:[#allocation5 + $0x13d0] sm:$0xff] }
 0x252   :  { %2922 = vmatprep.subr.bf16.mxu0 %v2921_v27  ;;  %3050 = vmatprep.subr.bf16.mxu1 %v3049_v28  ;;  %v2941_v27 = vpack.c.bf16 %v1311_v20, %v1307_v19  ;;  %v3069_v28 = vpack.c.bf16 %v1313_v22, %v1309_v21  ;;  %v1344_v19 = vld [vmem:[#allocation5 + $0x13f0] sm:$0xff]  ;;  %v1347_v21 = vld [vmem:[#allocation5 + $0x1408] sm:$0xff] }
 0x253   :  { %v3087_v20 = vpack.c.bf16 %v1344_v19, %v1340_v18  ;;  %v1351_v22 = vld [vmem:[#allocation5 + $0x1428] sm:$0xff]  ;;  %v1370_v18 = vld [vmem:[#allocation5 + $0x14c0] sm:$0xff] }
 0x254   :  { %v1374_v19 = vld [vmem:[#allocation5 + $0x14e0] sm:$0xff] }
 0x255   :  { %2924 = vmatpush1.bf16.msra.mxu0 %v2923_v37  ;;  %3052 = vmatpush1.bf16.msra.mxu1 %v3051_v38  ;;  %v2943_v37 = vpack.c.bf16 %v1310_v26, %v1306_v25  ;;  %v3071_v38 = vpack.c.bf16 %v1312_v30, %v1308_v29  ;;  %v1353_v25 = vld [vmem:[#allocation5 + $0x1438] sm:$0xff] }
 0x256   :  { %2926 = vmatprep.subr.bf16.mxu0 %v2925_v46  ;;  %3054 = vmatprep.subr.bf16.mxu1 %v3053_v47  ;;  %v2945_v46 = vpack.c.bf16 %v1319_v32, %v1315_v31  ;;  %v3073_v47 = vpack.c.bf16 %v1321_v35, %v1317_v33 }
 0x259   :  { %2928 = vmatpush1.bf16.msra.mxu0 %v2927_v39  ;;  %3056 = vmatpush1.bf16.msra.mxu1 %v3055_v53  ;;  %v2947_v39 = vpack.c.bf16 %v1318_v45, %v1314_v44  ;;  %v3075_v53 = vpack.c.bf16 %v1320_v50, %v1316_v49  ;;  %v1346_v45 = vld [vmem:[#allocation5 + $0x1400] sm:$0xff]  ;;  %v1348_v49 = vld [vmem:[#allocation5 + $0x1410] sm:$0xff] }
 0x25a   :  { %2930 = vmatprep.subr.bf16.mxu0 %v2929_v56  ;;  %3058 = vmatprep.subr.bf16.mxu1 %v3057_v57  ;;  %v3077_v56 = vpack.c.bf16 %v1329_v52, %v1325_v0  ;;  %v1326_v57 = vld [vmem:[#allocation5 + $0x1360] sm:$0xff]  ;;  %v1352_v50 = vld [vmem:[#allocation5 + $0x1430] sm:$0xff]  ;;  %v1359_v52 = vld [vmem:[#allocation5 + $0x1468] sm:$0xff] }
 0x25b   :  { %v2951_v34 = vpack.c.bf16 %v1326_v57, %v1322_v54  ;;  %v1354_v57 = vld [vmem:[#allocation5 + $0x1440] sm:$0xff] }
 0x25d   :  { %2932 = vmatpush1.bf16.msra.mxu0 %v2931_v3  ;;  %3060 = vmatpush1.bf16.msra.mxu1 %v3059_v63  ;;  %v1333_v3 = vld [vmem:[#allocation5 + $0x1398] sm:$0xff]  ;;  %v2953_v63 = vpack.c.bf16 %v1335_v62, %v1331_v61  ;;  %v1363_v61 = vld [vmem:[#allocation5 + $0x1488] sm:$0xff]  ;;  %v2965_v62 = vpack.c.bf16 %v1359_v52, %v1355_v1  ;;  %v1386_v1 = vld [vmem:[#allocation5 + $0x1540] sm:$0xff] }
 0x25e   :  { %2934 = vmatprep.subr.bf16.mxu0 %v2933_v4  ;;  %3062 = vmatprep.subr.bf16.mxu1 %v3061_v5  ;;  %v1334_v4 = vld [vmem:[#allocation5 + $0x13a0] sm:$0xff]  ;;  %v3081_v5 = vpack.c.bf16 %v1337_v41, %v1333_v3  ;;  %v1365_v41 = vld [vmem:[#allocation5 + $0x1498] sm:$0xff] }
 0x25f   :  { %v2955_v6 = vpack.c.bf16 %v1334_v4, %v1330_v2  ;;  %v1369_v2 = vld [vmem:[#allocation5 + $0x14b8] sm:$0xff] }
 0x261   :  { %2936 = vmatpush1.bf16.msra.mxu0 %v2935_v12  ;;  %3064 = vmatpush1.bf16.msra.mxu1 %v3063_v13  ;;  %v1341_v12 = vld [vmem:[#allocation5 + $0x13d8] sm:$0xff]  ;;  %v2957_v13 = vpack.c.bf16 %v1343_v11, %v1339_v10  ;;  %v3097_v10 = vpack.c.bf16 %v1369_v2, %v1365_v41  ;;  %v1364_v11 = vld [vmem:[#allocation5 + $0x1490] sm:$0xff]  ;;  %v1403_v2 = vld [vmem:[#allocation5 + $0x15c8] sm:$0xff] }
 0x262   :  { %2938 = vmatprep.subr.bf16.mxu0 %v2937_v15  ;;  %3066 = vmatprep.subr.bf16.mxu1 %v3065_v16  ;;  %v1342_v15 = vld [vmem:[#allocation5 + $0x13e0] sm:$0xff]  ;;  %v3085_v16 = vpack.c.bf16 %v1345_v14, %v1341_v12  ;;  %v1368_v12 = vld [vmem:[#allocation5 + $0x14b0] sm:$0xff]  ;;  %v1375_v14 = vld [vmem:[#allocation5 + $0x14e8] sm:$0xff] }
 0x263   :  { %v2959_v17 = vpack.c.bf16 %v1342_v15, %v1338_v48  ;;  %v1373_v48 = vld [vmem:[#allocation5 + $0x14d8] sm:$0xff]  ;;  %v1400_v41 = vld [vmem:[#allocation5 + $0x15b0] sm:$0xff] }
 0x264   :  { %v1377_v15 = vld [vmem:[#allocation5 + $0x14f8] sm:$0xff] }
 0x265   :  { %2940 = vmatpush1.bf16.msra.mxu0 %v2939_v23  ;;  %3068 = vmatpush1.bf16.msra.mxu1 %v3067_v24  ;;  %v1349_v23 = vld [vmem:[#allocation5 + $0x1418] sm:$0xff]  ;;  %v2961_v24 = vpack.c.bf16 %v1351_v22, %v1347_v21  ;;  %v3101_v21 = vpack.c.bf16 %v1377_v15, %v1373_v48  ;;  %v1372_v22 = vld [vmem:[#allocation5 + $0x14d0] sm:$0xff]  ;;  %v1411_v48 = vld [vmem:[#allocation5 + $0x1608] sm:$0xff] }
 0x266   :  { %2942 = vmatprep.subr.bf16.mxu0 %v2941_v27  ;;  %3070 = vmatprep.subr.bf16.mxu1 %v3069_v28  ;;  %v3089_v26 = vpack.c.bf16 %v1353_v25, %v1349_v23  ;;  %v3658_v27 = vld [vmem:[#allocation7 + $0x4] sm:$0xf]  ;;  %v1376_v23 = vld [vmem:[#allocation5 + $0x14f0] sm:$0xff]  ;;  %v1383_v25 = vld [vmem:[#allocation5 + $0x1528] sm:$0xff] }
 0x267   :  { %v908_v28 = vrot.slane %v3658_v27, %v3634_v40  ;;  %v912_v29 = vrot.slane %v3658_v27, %v3639_v42  ;;  %v920_v30 = vrot.slane %v3658_v27, %v3642_v43  ;;  %v1415_v15 = vld [vmem:[#allocation5 + $0x1628] sm:$0xff] }
 0x269   :  { %2944 = vmatpush1.bf16.msra.mxu0 %v2943_v37  ;;  %3072 = vmatpush1.bf16.msra.mxu1 %v3071_v38 }
 0x26a   :  { %2946 = vmatprep.subr.bf16.mxu0 %v2945_v46  ;;  %3074 = vmatprep.subr.bf16.mxu1 %v3073_v47  ;;  %v1350_v47 = vld [vmem:[#allocation5 + $0x1420] sm:$0xff] }
 0x26d   :  { %2948 = vmatpush1.bf16.msra.mxu0 %v2947_v39  ;;  %3076 = vmatpush1.bf16.msra.mxu1 %v3075_v53  ;;  %v1357_v39 = vld [vmem:[#allocation5 + $0x1458] sm:$0xff] }
 0x26e   :  { %2950 = vmatprep.subr.bf16.mxu0 %v2949_v55  ;;  %3078 = vmatprep.subr.bf16.mxu1 %v3077_v56  ;;  %v1361_v53 = vld [vmem:[#allocation5 + $0x1478] sm:$0xff]  ;;  %v2963_v55 = vpack.c.bf16 %v1350_v47, %v1346_v45  ;;  %v3091_v56 = vpack.c.bf16 %v1352_v50, %v1348_v49  ;;  %v1387_v45 = vld [vmem:[#allocation5 + $0x1548] sm:$0xff] }
 0x26f   :  { %v3093_v3 = vpack.c.bf16 %v1361_v53, %v1357_v39  ;;  %v1389_v47 = vld [vmem:[#allocation5 + $0x1558] sm:$0xff]  ;;  %v1388_v53 = vld [vmem:[#allocation5 + $0x1550] sm:$0xff] }
 0x270   :  { %v1393_v49 = vld [vmem:[#allocation5 + $0x1578] sm:$0xff] }
 0x271   :  { %2952 = vmatpush1.bf16.msra.mxu0 %v2951_v34  ;;  %3080 = vmatpush1.bf16.msra.mxu1 %v3079_v60  ;;  %v1356_v34 = vld [vmem:[#allocation5 + $0x1450] sm:$0xff]  ;;  %v3109_v39 = vpack.c.bf16 %v1393_v49, %v1389_v47  ;;  %v1427_v47 = vld [vmem:[#allocation5 + $0x1688] sm:$0xff] }
 0x272   :  { %2954 = vmatprep.subr.bf16.mxu0 %v2953_v63  ;;  %3082 = vmatprep.subr.bf16.mxu1 %v3081_v5  ;;  %v1360_v60 = vld [vmem:[#allocation5 + $0x1470] sm:$0xff]  ;;  %v1367_v63 = vld [vmem:[#allocation5 + $0x14a8] sm:$0xff]  ;;  %v2967_v5 = vpack.c.bf16 %v1358_v58, %v1354_v57  ;;  %v1397_v57 = vld [vmem:[#allocation5 + $0x1598] sm:$0xff] }
 0x273   :  { %v1401_v58 = vld [vmem:[#allocation5 + $0x15b8] sm:$0xff]  ;;  %v1431_v49 = vld [vmem:[#allocation5 + $0x16a8] sm:$0xff] }
 0x275   :  { %2956 = vmatpush1.bf16.msra.mxu0 %v2955_v6  ;;  %3084 = vmatpush1.bf16.msra.mxu1 %v3083_v9  ;;  %v3095_v6 = vpack.c.bf16 %v1360_v60, %v1356_v34  ;;  %v2969_v9 = vpack.c.bf16 %v1367_v63, %v1363_v61  ;;  %v1394_v60 = vld [vmem:[#allocation5 + $0x1580] sm:$0xff]  ;;  %v1396_v63 = vld [vmem:[#allocation5 + $0x1590] sm:$0xff] }
 0x276   :  { %2958 = vmatprep.subr.bf16.mxu0 %v2957_v13  ;;  %3086 = vmatprep.subr.bf16.mxu1 %v3085_v16  ;;  %v1371_v13 = vld [vmem:[#allocation5 + $0x14c8] sm:$0xff]  ;;  %v2971_v16 = vpack.c.bf16 %v1366_v8, %v1362_v7  ;;  %v1398_v61 = vld [vmem:[#allocation5 + $0x15a0] sm:$0xff]  ;;  %v3115_v8 = vpack.c.bf16 %v1400_v41, %v1396_v63 }
 0x277   :  { %v2987_v7 = vpack.c.bf16 %v1398_v61, %v1394_v60 }
 0x279   :  { %2960 = vmatpush1.bf16.msra.mxu0 %v2959_v17  ;;  %3088 = vmatpush1.bf16.msra.mxu1 %v3087_v20  ;;  %v3099_v17 = vpack.c.bf16 %v1368_v12, %v1364_v11  ;;  %v2973_v20 = vpack.c.bf16 %v1375_v14, %v1371_v13  ;;  %v1404_v13 = vld [vmem:[#allocation5 + $0x15d0] sm:$0xff] }
 0x27a   :  { %2962 = vmatprep.subr.bf16.mxu0 %v2961_v24  ;;  %3090 = vmatprep.subr.bf16.mxu1 %v3089_v26  ;;  %v1379_v24 = vld [vmem:[#allocation5 + $0x1508] sm:$0xff]  ;;  %v1381_v26 = vld [vmem:[#allocation5 + $0x1518] sm:$0xff]  ;;  %v1408_v14 = vld [vmem:[#allocation5 + $0x15f0] sm:$0xff] }
 0x30f   :  { %v1062_v31 = vpop.f32.mrb[2].mxu0  ;;  %v3666_v32 = vpop.f32.mrb[2].mxu1 }
 0x310   :  { %v3413_v33 = vadd.f32 %v1062_v31, %v908_v28  ;;  %v1064_v35 = vpop.f32.mrb[3].mxu0  ;;  %v1206_v37 = vpop.f32.mrb[3].mxu1  ;;  %v1385_v28 = vld [vmem:[#allocation5 + $0x1538] sm:$0xff]  ;;  %v1378_v31 = vld [vmem:[#allocation5 + $0x1500] sm:$0xff] }
 0x311   :  { %v3414_v38 = vadd.f32 %v1064_v35, %v912_v29  ;;  %v3416_v44 = vadd.f32 %v1206_v37, %v920_v30  ;;  %v2975_v29 = vpack.c.bf16 %v1374_v19, %v1370_v18  ;;  %v3103_v30 = vpack.c.bf16 %v1376_v23, %v1372_v22 }
 0x312   :  { %v1209_v46 = vmul.f32 0.2, %v3413_v33  ;;  %v2977_v35 = vpack.c.bf16 %v1383_v25, %v1379_v24  ;;  %v3105_v37 = vpack.c.bf16 %v1385_v28, %v1381_v26  ;;  %v3119_v19 = vpack.c.bf16 %v1408_v14, %v1404_v13  ;;  %v1412_v24 = vld [vmem:[#allocation5 + $0x1610] sm:$0xff]  ;;  %v1419_v26 = vld [vmem:[#allocation5 + $0x1648] sm:$0xff] }
 0x313   :  { %v1210_v51 = vmul.f32 0.2, %v3414_v38  ;;  %v1212_v0 = vmul.f32 0.2, %v3416_v44  ;;  %v2993_v22 = vpack.c.bf16 %v1415_v15, %v1411_v48  ;;  %v1416_v25 = vld [vmem:[#allocation5 + $0x1630] sm:$0xff]  ;;  %v1423_v28 = vld [vmem:[#allocation5 + $0x1668] sm:$0xff] }
 0x314   :  { %v1213_v59 = vmax.f32 %v3413_v33, %v1209_v46  ;;  %v1382_v33 = vld [vmem:[#allocation5 + $0x1520] sm:$0xff]  ;;  %v1391_v46 = vld [vmem:[#allocation5 + $0x1568] sm:$0xff]  ;;  %v1444_v48 = vld [vmem:[#allocation5 + $0x1710] sm:$0xff] }
 0x315   :  { %v1214_v54 = vmax.f32 %v3414_v38, %v1210_v51  ;;  %v1216_v4 = vmax.f32 %v3416_v44, %v1212_v0  ;;  %v1380_v38 = vld [vmem:[#allocation5 + $0x1510] sm:$0xff]  ;;  %v2979_v50 = vpack.c.bf16 %v1382_v33, %v1378_v31  ;;  %v1390_v0 = vld [vmem:[#allocation5 + $0x1560] sm:$0xff]  ;;  %v2981_v52 = vpack.c.bf16 %v1391_v46, %v1387_v45 }
 0x316   :  { %v1384_v44 = vld [vmem:[#allocation5 + $0x1530] sm:$0xff]  ;;  %v3123_v33 = vpack.c.bf16 %v1416_v25, %v1412_v24 }
 0x317   :  { %1561 = vmatprep.mubr.f32.mxu0 %v1214_v54  ;;  %1703 = vmatprep.mubr.f32.mxu1 %v1214_v54  ;;  %v3107_v51 = vpack.c.bf16 %v1384_v44, %v1380_v38  ;;  %v1392_v54 = vld [vmem:[#allocation5 + $0x1570] sm:$0xff]  ;;  %v2997_v38 = vpack.c.bf16 %v1423_v28, %v1419_v26 }
 0x318   :  { %1562 = vmatmul.mubr.f32.vlgmr.msra.gmra.mrb[4].mxu0 %v1213_v59  ;;  %1704 = vmatmul.mubr.f32.vlgmr.msra.gmra.mrb[4].mxu1 %v1213_v59  ;;  %v2983_v59 = vpack.c.bf16 %v1390_v0, %v1386_v1  ;;  %v3111_v34 = vpack.c.bf16 %v1392_v54, %v1388_v53  ;;  %v1420_v45 = vld [vmem:[#allocation5 + $0x1650] sm:$0xff]  ;;  %v3001_v53 = vpack.c.bf16 %v1431_v49, %v1427_v47 }
 0x319   :  { %2964 = vmatpush1.bf16.msra.mxu0 %v2963_v55  ;;  %3092 = vmatpush1.bf16.msra.mxu1 %v3091_v56  ;;  %v1395_v55 = vld [vmem:[#allocation5 + $0x1588] sm:$0xff]  ;;  %v1424_v46 = vld [vmem:[#allocation5 + $0x1670] sm:$0xff] }
 0x31a   :  { %1632 = vmatprep.mubr.f32.mxu0 %v1216_v4  ;;  %1774 = vmatprep.mubr.f32.mxu1 %v1216_v4  ;;  %v1399_v56 = vld [vmem:[#allocation5 + $0x15a8] sm:$0xff]  ;;  %v3127_v0 = vpack.c.bf16 %v1424_v46, %v1420_v45  ;;  %v1448_v15 = vld [vmem:[#allocation5 + $0x1730] sm:$0xff]  ;;  %v916_v45 = vrot.slane %v3658_v27, %v3653_v36 }
 0x31b   :  { %2966 = vmatprep.subr.bf16.mxu0 %v2965_v62  ;;  %3094 = vmatprep.subr.bf16.mxu1 %v3093_v3  ;;  %v2985_v62 = vpack.c.bf16 %v1399_v56, %v1395_v55  ;;  %v3113_v3 = vpack.c.bf16 %v1401_v58, %v1397_v57  ;;  %v1407_v4 = vld [vmem:[#allocation5 + $0x15e8] sm:$0xff]  ;;  %v1428_v55 = vld [vmem:[#allocation5 + $0x1690] sm:$0xff] }
 0x31c   :  { %v2989_v11 = vpack.c.bf16 %v1407_v4, %v1403_v2  ;;  %v1432_v56 = vld [vmem:[#allocation5 + $0x16b0] sm:$0xff]  ;;  %v1435_v57 = vld [vmem:[#allocation5 + $0x16c8] sm:$0xff] }
 0x31d   :  { %2968 = vmatpush1.bf16.msra.mxu0 %v2967_v5  ;;  %3096 = vmatpush1.bf16.msra.mxu1 %v3095_v6  ;;  %v1405_v5 = vld [vmem:[#allocation5 + $0x15d8] sm:$0xff]  ;;  %v1439_v58 = vld [vmem:[#allocation5 + $0x16e8] sm:$0xff]  ;;  %v3131_v61 = vpack.c.bf16 %v1432_v56, %v1428_v55  ;;  %v1436_v2 = vld [vmem:[#allocation5 + $0x16d0] sm:$0xff]  ;;  %v3415_v56 = vadd.f32 %v3666_v32, %v916_v45 }
 0x31e   :  { %2970 = vmatprep.subr.bf16.mxu0 %v2969_v9  ;;  %3098 = vmatprep.subr.bf16.mxu1 %v3097_v10  ;;  %v1409_v6 = vld [vmem:[#allocation5 + $0x15f8] sm:$0xff]  ;;  %v1402_v9 = vld [vmem:[#allocation5 + $0x15c0] sm:$0xff]  ;;  %v3005_v63 = vpack.c.bf16 %v1439_v58, %v1435_v57  ;;  %v1440_v4 = vld [vmem:[#allocation5 + $0x16f0] sm:$0xff] }
 0x31f   :  { %v1406_v10 = vld [vmem:[#allocation5 + $0x15e0] sm:$0xff]  ;;  %v3117_v12 = vpack.c.bf16 %v1409_v6, %v1405_v5  ;;  %v1443_v5 = vld [vmem:[#allocation5 + $0x1708] sm:$0xff]  ;;  %v1452_v26 = vld [vmem:[#allocation5 + $0x1750] sm:$0xff] }
 0x320   :  { %v2991_v18 = vpack.c.bf16 %v1406_v10, %v1402_v9  ;;  %v1447_v6 = vld [vmem:[#allocation5 + $0x1728] sm:$0xff]  ;;  %v3135_v10 = vpack.c.bf16 %v1440_v4, %v1436_v2  ;;  %v1456_v28 = vld [vmem:[#allocation5 + $0x1770] sm:$0xff]  ;;  %v1470_v55 = vld [vmem:[#allocation5 + $0x17e0] sm:$0xff]  ;;  %v1211_v4 = vmul.f32 0.2, %v3415_v56 }
 0x321   :  { %2972 = vmatpush1.bf16.msra.mxu0 %v2971_v16  ;;  %3100 = vmatpush1.bf16.msra.mxu1 %v3099_v17  ;;  %v1413_v16 = vld [vmem:[#allocation5 + $0x1618] sm:$0xff]  ;;  %v3009_v13 = vpack.c.bf16 %v1447_v6, %v1443_v5  ;;  %v1460_v49 = vld [vmem:[#allocation5 + $0x1790] sm:$0xff]  ;;  %v1794_v2 = vld [vmem:[#allocation5 + $0x1820] sm:$0xff] }
 0x322   :  { %2974 = vmatprep.subr.bf16.mxu0 %v2973_v20  ;;  %3102 = vmatprep.subr.bf16.mxu1 %v3101_v21  ;;  %v1417_v17 = vld [vmem:[#allocation5 + $0x1638] sm:$0xff]  ;;  %v1410_v20 = vld [vmem:[#allocation5 + $0x1600] sm:$0xff]  ;;  %v1468_v58 = vld [vmem:[#allocation5 + $0x17d0] sm:$0xff] }
 0x323   :  { %v1414_v21 = vld [vmem:[#allocation5 + $0x1620] sm:$0xff]  ;;  %v3121_v23 = vpack.c.bf16 %v1417_v17, %v1413_v16  ;;  %v1451_v16 = vld [vmem:[#allocation5 + $0x1748] sm:$0xff]  ;;  %v1792_v6 = vld [vmem:[#allocation5 + $0x1810] sm:$0xff] }
 0x324   :  { %v2995_v31 = vpack.c.bf16 %v1414_v21, %v1410_v20  ;;  %v1455_v17 = vld [vmem:[#allocation5 + $0x1768] sm:$0xff]  ;;  %v3139_v21 = vpack.c.bf16 %v1448_v15, %v1444_v48  ;;  %v1802_v48 = vld [vmem:[#allocation5 + $0x1860] sm:$0xff]  ;;  %v1215_v15 = vmax.f32 %v3415_v56, %v1211_v4 }
 0x325   :  { %2976 = vmatpush1.bf16.msra.mxu0 %v2975_v29  ;;  %3104 = vmatpush1.bf16.msra.mxu1 %v3103_v30  ;;  %v1421_v29 = vld [vmem:[#allocation5 + $0x1658] sm:$0xff]  ;;  %v3013_v24 = vpack.c.bf16 %v1455_v17, %v1451_v16  ;;  %v1830_v4 = vld [vmem:[#allocation5 + $0x1940] sm:$0xff] }
 0x326   :  { %2978 = vmatprep.subr.bf16.mxu0 %v2977_v35  ;;  %3106 = vmatprep.subr.bf16.mxu1 %v3105_v37  ;;  %v1425_v30 = vld [vmem:[#allocation5 + $0x1678] sm:$0xff]  ;;  %v1418_v35 = vld [vmem:[#allocation5 + $0x1640] sm:$0xff] }
 0x327   :  { %v1422_v37 = vld [vmem:[#allocation5 + $0x1660] sm:$0xff]  ;;  %v3125_v44 = vpack.c.bf16 %v1425_v30, %v1421_v29  ;;  %v1459_v29 = vld [vmem:[#allocation5 + $0x1788] sm:$0xff] }
 0x328   :  { %v2999_v1 = vpack.c.bf16 %v1422_v37, %v1418_v35  ;;  %v1463_v30 = vld [vmem:[#allocation5 + $0x17a8] sm:$0xff]  ;;  %v3143_v37 = vpack.c.bf16 %v1456_v28, %v1452_v26  ;;  %v1806_v26 = vld [vmem:[#allocation5 + $0x1880] sm:$0xff] }
 0x329   :  { %2980 = vmatpush1.bf16.msra.mxu0 %v2979_v50  ;;  %3108 = vmatpush1.bf16.msra.mxu1 %v3107_v51  ;;  %v1429_v50 = vld [vmem:[#allocation5 + $0x1698] sm:$0xff]  ;;  %v3017_v46 = vpack.c.bf16 %v1463_v30, %v1459_v29  ;;  %v1810_v28 = vld [vmem:[#allocation5 + $0x18a0] sm:$0xff] }
 0x32a   :  { %2982 = vmatprep.subr.bf16.mxu0 %v2981_v52  ;;  %3110 = vmatprep.subr.bf16.mxu1 %v3109_v39  ;;  %v1433_v51 = vld [vmem:[#allocation5 + $0x16b8] sm:$0xff]  ;;  %v1426_v52 = vld [vmem:[#allocation5 + $0x1680] sm:$0xff]  ;;  %v3163_v45 = vpack.c.bf16 %v1810_v28, %v1806_v26 }
 0x32b   :  { %v1430_v39 = vld [vmem:[#allocation5 + $0x16a0] sm:$0xff]  ;;  %v3129_v54 = vpack.c.bf16 %v1433_v51, %v1429_v50  ;;  %v1464_v50 = vld [vmem:[#allocation5 + $0x17b0] sm:$0xff]  ;;  %v1467_v51 = vld [vmem:[#allocation5 + $0x17c8] sm:$0xff] }
 0x32c   :  { %v3003_v60 = vpack.c.bf16 %v1430_v39, %v1426_v52  ;;  %v1473_v52 = vld [vmem:[#allocation5 + $0x17f8] sm:$0xff]  ;;  %v1846_v26 = vld [vmem:[#allocation5 + $0x19c0] sm:$0xff] }
 0x32d   :  { %2984 = vmatpush1.bf16.msra.mxu0 %v2983_v59  ;;  %3112 = vmatpush1.bf16.msra.mxu1 %v3111_v34  ;;  %v1437_v59 = vld [vmem:[#allocation5 + $0x16d8] sm:$0xff]  ;;  %v1850_v28 = vld [vmem:[#allocation5 + $0x19e0] sm:$0xff] }
 0x32e   :  { %2986 = vmatprep.subr.bf16.mxu0 %v2985_v62  ;;  %3114 = vmatprep.subr.bf16.mxu1 %v3113_v3  ;;  %v1441_v34 = vld [vmem:[#allocation5 + $0x16f8] sm:$0xff]  ;;  %v1434_v62 = vld [vmem:[#allocation5 + $0x16c0] sm:$0xff] }
 0x32f   :  { %v1438_v3 = vld [vmem:[#allocation5 + $0x16e0] sm:$0xff]  ;;  %v3133_v41 = vpack.c.bf16 %v1441_v34, %v1437_v59  ;;  %v1472_v59 = vld [vmem:[#allocation5 + $0x17f0] sm:$0xff]  ;;  %v1791_v34 = vld [vmem:[#allocation5 + $0x1808] sm:$0xff] }
 0x330   :  { %v3007_v9 = vpack.c.bf16 %v1438_v3, %v1434_v62  ;;  %v1797_v62 = vld [vmem:[#allocation5 + $0x1838] sm:$0xff] }
 0x331   :  { %2988 = vmatpush1.bf16.msra.mxu0 %v2987_v7  ;;  %3116 = vmatpush1.bf16.msra.mxu1 %v3115_v8  ;;  %v1445_v7 = vld [vmem:[#allocation5 + $0x1718] sm:$0xff] }
 0x332   :  { %2990 = vmatprep.subr.bf16.mxu0 %v2989_v11  ;;  %3118 = vmatprep.subr.bf16.mxu1 %v3117_v12  ;;  %v1449_v8 = vld [vmem:[#allocation5 + $0x1738] sm:$0xff]  ;;  %v1442_v11 = vld [vmem:[#allocation5 + $0x1700] sm:$0xff] }
 0x333   :  { %v1446_v12 = vld [vmem:[#allocation5 + $0x1720] sm:$0xff]  ;;  %v3137_v14 = vpack.c.bf16 %v1449_v8, %v1445_v7  ;;  %v1796_v7 = vld [vmem:[#allocation5 + $0x1830] sm:$0xff]  ;;  %v1799_v8 = vld [vmem:[#allocation5 + $0x1848] sm:$0xff] }
 0x334   :  { %v3011_v20 = vpack.c.bf16 %v1446_v12, %v1442_v11  ;;  %v1805_v11 = vld [vmem:[#allocation5 + $0x1878] sm:$0xff] }
 0x335   :  { %2992 = vmatpush1.bf16.msra.mxu0 %v2991_v18  ;;  %3120 = vmatpush1.bf16.msra.mxu1 %v3119_v19  ;;  %v1453_v18 = vld [vmem:[#allocation5 + $0x1758] sm:$0xff] }
 0x336   :  { %2994 = vmatprep.subr.bf16.mxu0 %v2993_v22  ;;  %3122 = vmatprep.subr.bf16.mxu1 %v3121_v23  ;;  %v1457_v19 = vld [vmem:[#allocation5 + $0x1778] sm:$0xff]  ;;  %v1450_v22 = vld [vmem:[#allocation5 + $0x1740] sm:$0xff] }
 0x337   :  { %v1454_v23 = vld [vmem:[#allocation5 + $0x1760] sm:$0xff]  ;;  %v3141_v25 = vpack.c.bf16 %v1457_v19, %v1453_v18  ;;  %v1800_v18 = vld [vmem:[#allocation5 + $0x1850] sm:$0xff] }
 0x338   :  { %v3015_v35 = vpack.c.bf16 %v1454_v23, %v1450_v22  ;;  %v1804_v19 = vld [vmem:[#allocation5 + $0x1870] sm:$0xff]  ;;  %v1809_v22 = vld [vmem:[#allocation5 + $0x1898] sm:$0xff] }
 0x339   :  { %2996 = vmatpush1.bf16.msra.mxu0 %v2995_v31  ;;  %3124 = vmatpush1.bf16.msra.mxu1 %v3123_v33  ;;  %v1461_v31 = vld [vmem:[#allocation5 + $0x1798] sm:$0xff] }
 0x33a   :  { %2998 = vmatprep.subr.bf16.mxu0 %v2997_v38  ;;  %3126 = vmatprep.subr.bf16.mxu1 %v3125_v44  ;;  %v1465_v33 = vld [vmem:[#allocation5 + $0x17b8] sm:$0xff]  ;;  %v1458_v38 = vld [vmem:[#allocation5 + $0x1780] sm:$0xff] }
 0x33b   :  { %v1462_v44 = vld [vmem:[#allocation5 + $0x17a0] sm:$0xff]  ;;  %v3145_v47 = vpack.c.bf16 %v1465_v33, %v1461_v31  ;;  %v1813_v23 = vld [vmem:[#allocation5 + $0x18b8] sm:$0xff]  ;;  %v1808_v31 = vld [vmem:[#allocation5 + $0x1890] sm:$0xff] }
 0x33c   :  { %v3019_v39 = vpack.c.bf16 %v1462_v44, %v1458_v38  ;;  %v3289_v30 = vpack.c.bf16 %v1813_v23, %v1809_v22  ;;  %v1812_v33 = vld [vmem:[#allocation5 + $0x18b0] sm:$0xff]  ;;  %v1817_v38 = vld [vmem:[#allocation5 + $0x18d8] sm:$0xff] }
 0x33d   :  { %3000 = vmatpush1.bf16.msra.mxu0 %v2999_v1  ;;  %3128 = vmatpush1.bf16.msra.mxu1 %v3127_v0  ;;  %v1471_v1 = vld [vmem:[#allocation5 + $0x17e8] sm:$0xff]  ;;  %v1469_v0 = vld [vmem:[#allocation5 + $0x17d8] sm:$0xff] }
 0x33e   :  { %3002 = vmatprep.subr.bf16.mxu0 %v3001_v53  ;;  %3130 = vmatprep.subr.bf16.mxu1 %v3129_v54  ;;  %v3147_v53 = vpack.c.bf16 %v1464_v50, %v1460_v49  ;;  %v1466_v54 = vld [vmem:[#allocation5 + $0x17c0] sm:$0xff]  ;;  %v3021_v27 = vpack.c.bf16 %v1471_v1, %v1467_v51  ;;  %v3149_v57 = vpack.c.bf16 %v1473_v52, %v1469_v0  ;;  %v1821_v44 = vld [vmem:[#allocation5 + $0x18f8] sm:$0xff]  ;;  %v1816_v1 = vld [vmem:[#allocation5 + $0x18d0] sm:$0xff] }
 0x33f   :  { %v3023_v3 = vpack.c.bf16 %v1470_v55, %v1466_v54  ;;  %v1818_v49 = vld [vmem:[#allocation5 + $0x18e0] sm:$0xff]  ;;  %v3293_v51 = vpack.c.bf16 %v1821_v44, %v1817_v38  ;;  %v1820_v0 = vld [vmem:[#allocation5 + $0x18f0] sm:$0xff]  ;;  %v1823_v52 = vld [vmem:[#allocation5 + $0x1908] sm:$0xff] }
 0x340   :  { %v1829_v54 = vld [vmem:[#allocation5 + $0x1938] sm:$0xff]  ;;  %v3295_v56 = vpack.c.bf16 %v1820_v0, %v1816_v1  ;;  %v1856_v1 = vld [vmem:[#allocation5 + $0x1a10] sm:$0xff] }
 0x341   :  { %3004 = vmatpush1.bf16.msra.mxu0 %v3003_v60  ;;  %3132 = vmatpush1.bf16.msra.mxu1 %v3131_v61  ;;  %v1795_v60 = vld [vmem:[#allocation5 + $0x1828] sm:$0xff]  ;;  %v1793_v61 = vld [vmem:[#allocation5 + $0x1818] sm:$0xff]  ;;  %v1860_v0 = vld [vmem:[#allocation5 + $0x1a30] sm:$0xff] }
 0x342   :  { %3006 = vmatprep.subr.bf16.mxu0 %v3005_v63  ;;  %3134 = vmatprep.subr.bf16.mxu1 %v3133_v41  ;;  %v3151_v63 = vpack.c.bf16 %v1472_v59, %v1468_v58  ;;  %v1790_v41 = vld [vmem:[#allocation5 + $0x1800] sm:$0xff]  ;;  %v3153_v32 = vpack.c.bf16 %v1795_v60, %v1791_v34  ;;  %v3281_v5 = vpack.c.bf16 %v1797_v62, %v1793_v61  ;;  %v1824_v34 = vld [vmem:[#allocation5 + $0x1910] sm:$0xff]  ;;  %v1831_v61 = vld [vmem:[#allocation5 + $0x1948] sm:$0xff] }
 0x343   :  { %v3155_v12 = vpack.c.bf16 %v1794_v2, %v1790_v41  ;;  %v1828_v60 = vld [vmem:[#allocation5 + $0x1930] sm:$0xff]  ;;  %v1835_v62 = vld [vmem:[#allocation5 + $0x1968] sm:$0xff]  ;;  %v1849_v22 = vld [vmem:[#allocation5 + $0x19d8] sm:$0xff] }
 0x344   :  { %v3299_v2 = vpack.c.bf16 %v1828_v60, %v1824_v34  ;;  %v1853_v23 = vld [vmem:[#allocation5 + $0x19f8] sm:$0xff]  ;;  %v1864_v34 = vld [vmem:[#allocation5 + $0x1a50] sm:$0xff] }
 0x345   :  { %3008 = vmatpush1.bf16.msra.mxu0 %v3007_v9  ;;  %3136 = vmatpush1.bf16.msra.mxu1 %v3135_v10  ;;  %v1803_v9 = vld [vmem:[#allocation5 + $0x1868] sm:$0xff]  ;;  %v1801_v10 = vld [vmem:[#allocation5 + $0x1858] sm:$0xff]  ;;  %v1868_v60 = vld [vmem:[#allocation5 + $0x1a70] sm:$0xff] }
 0x346   :  { %3010 = vmatprep.subr.bf16.mxu0 %v3009_v13  ;;  %3138 = vmatprep.subr.bf16.mxu1 %v3137_v14  ;;  %v3283_v13 = vpack.c.bf16 %v1796_v7, %v1792_v6  ;;  %v1798_v14 = vld [vmem:[#allocation5 + $0x1840] sm:$0xff]  ;;  %v3157_v16 = vpack.c.bf16 %v1803_v9, %v1799_v8  ;;  %v3285_v17 = vpack.c.bf16 %v1805_v11, %v1801_v10  ;;  %v1832_v7 = vld [vmem:[#allocation5 + $0x1950] sm:$0xff]  ;;  %v1839_v9 = vld [vmem:[#allocation5 + $0x1988] sm:$0xff] }
 0x347   :  { %v1836_v8 = vld [vmem:[#allocation5 + $0x1970] sm:$0xff]  ;;  %v1843_v10 = vld [vmem:[#allocation5 + $0x19a8] sm:$0xff]  ;;  %v1841_v11 = vld [vmem:[#allocation5 + $0x1998] sm:$0xff] }
 0x348   :  { %v1857_v38 = vld [vmem:[#allocation5 + $0x1a18] sm:$0xff] }
 0x349   :  { %3012 = vmatpush1.bf16.msra.mxu0 %v3011_v20  ;;  %3140 = vmatpush1.bf16.msra.mxu1 %v3139_v21  ;;  %v1807_v20 = vld [vmem:[#allocation5 + $0x1888] sm:$0xff]  ;;  %v1861_v44 = vld [vmem:[#allocation5 + $0x1a38] sm:$0xff] }
 0x34a   :  { %3014 = vmatprep.subr.bf16.mxu0 %v3013_v24  ;;  %3142 = vmatprep.subr.bf16.mxu1 %v3141_v25  ;;  %v1811_v21 = vld [vmem:[#allocation5 + $0x18a8] sm:$0xff]  ;;  %v3159_v24 = vpack.c.bf16 %v1802_v48, %v1798_v14  ;;  %v3287_v25 = vpack.c.bf16 %v1804_v19, %v1800_v18  ;;  %v3303_v14 = vpack.c.bf16 %v1836_v8, %v1832_v7  ;;  %v1838_v48 = vld [vmem:[#allocation5 + $0x1980] sm:$0xff]  ;;  %v1840_v18 = vld [vmem:[#allocation5 + $0x1990] sm:$0xff] }
 0x34b   :  { %v3161_v29 = vpack.c.bf16 %v1811_v21, %v1807_v20  ;;  %v1844_v19 = vld [vmem:[#allocation5 + $0x19b0] sm:$0xff]  ;;  %v1847_v20 = vld [vmem:[#allocation5 + $0x19c8] sm:$0xff] }
 0x34c   :  { %v1851_v21 = vld [vmem:[#allocation5 + $0x19e8] sm:$0xff]  ;;  %v1872_v7 = vld [vmem:[#allocation5 + $0x1a90] sm:$0xff] }
 0x34d   :  { %3016 = vmatpush1.bf16.msra.mxu0 %v3015_v35  ;;  %3144 = vmatpush1.bf16.msra.mxu1 %v3143_v37  ;;  %v1815_v35 = vld [vmem:[#allocation5 + $0x18c8] sm:$0xff]  ;;  %v1876_v8 = vld [vmem:[#allocation5 + $0x1ab0] sm:$0xff] }
 0x34e   :  { %3018 = vmatprep.subr.bf16.mxu0 %v3017_v46  ;;  %3146 = vmatprep.subr.bf16.mxu1 %v3145_v47  ;;  %v1819_v37 = vld [vmem:[#allocation5 + $0x18e8] sm:$0xff]  ;;  %v3291_v46 = vpack.c.bf16 %v1812_v33, %v1808_v31  ;;  %v1814_v47 = vld [vmem:[#allocation5 + $0x18c0] sm:$0xff]  ;;  %v1848_v31 = vld [vmem:[#allocation5 + $0x19d0] sm:$0xff] }
 0x34f   :  { %v3165_v50 = vpack.c.bf16 %v1819_v37, %v1815_v35  ;;  %v3167_v55 = vpack.c.bf16 %v1818_v49, %v1814_v47  ;;  %v1852_v33 = vld [vmem:[#allocation5 + $0x19f0] sm:$0xff]  ;;  %v1855_v35 = vld [vmem:[#allocation5 + $0x1a08] sm:$0xff]  ;;  %v1854_v47 = vld [vmem:[#allocation5 + $0x1a00] sm:$0xff] }
 0x350   :  { %v1859_v37 = vld [vmem:[#allocation5 + $0x1a28] sm:$0xff]  ;;  %v1858_v49 = vld [vmem:[#allocation5 + $0x1a20] sm:$0xff] }
 0x351   :  { %3020 = vmatpush1.bf16.msra.mxu0 %v3019_v39  ;;  %3148 = vmatpush1.bf16.msra.mxu1 %v3147_v53  ;;  %v1827_v39 = vld [vmem:[#allocation5 + $0x1928] sm:$0xff]  ;;  %v1825_v53 = vld [vmem:[#allocation5 + $0x1918] sm:$0xff] }
 0x352   :  { %3022 = vmatprep.subr.bf16.mxu0 %v3021_v27  ;;  %3150 = vmatprep.subr.bf16.mxu1 %v3149_v57  ;;  %v1822_v27 = vld [vmem:[#allocation5 + $0x1900] sm:$0xff]  ;;  %v3169_v58 = vpack.c.bf16 %v1827_v39, %v1823_v52  ;;  %v3297_v59 = vpack.c.bf16 %v1829_v54, %v1825_v53  ;;  %v1863_v52 = vld [vmem:[#allocation5 + $0x1a48] sm:$0xff]  ;;  %v1865_v53 = vld [vmem:[#allocation5 + $0x1a58] sm:$0xff] }
 0x353   :  { %v1826_v57 = vld [vmem:[#allocation5 + $0x1920] sm:$0xff]  ;;  %v1867_v39 = vld [vmem:[#allocation5 + $0x1a68] sm:$0xff]  ;;  %v1869_v54 = vld [vmem:[#allocation5 + $0x1a78] sm:$0xff] }
 0x354   :  { %v3171_v41 = vpack.c.bf16 %v1826_v57, %v1822_v27  ;;  %v1862_v27 = vld [vmem:[#allocation5 + $0x1a40] sm:$0xff] }
 0x355   :  { %3024 = vmatpush1.bf16.msra.mxu0 %v3023_v3  ;;  %3152 = vmatpush1.bf16.msra.mxu1 %v3151_v63  ;;  %v1833_v3 = vld [vmem:[#allocation5 + $0x1958] sm:$0xff]  ;;  %v1866_v57 = vld [vmem:[#allocation5 + $0x1a60] sm:$0xff] }
 0x356   :  { %3154 = vmatprep.subr.bf16.mxu0 %v3153_v32  ;;  %3282 = vmatprep.subr.bf16.mxu1 %v3281_v5  ;;  %v1837_v63 = vld [vmem:[#allocation5 + $0x1978] sm:$0xff]  ;;  %v1834_v32 = vld [vmem:[#allocation5 + $0x1960] sm:$0xff]  ;;  %v3173_v5 = vpack.c.bf16 %v1835_v62, %v1831_v61  ;;  %v1871_v61 = vld [vmem:[#allocation5 + $0x1a88] sm:$0xff] }
 0x357   :  { %v3301_v6 = vpack.c.bf16 %v1837_v63, %v1833_v3  ;;  %v1875_v62 = vld [vmem:[#allocation5 + $0x1aa8] sm:$0xff]  ;;  %v1873_v3 = vld [vmem:[#allocation5 + $0x1a98] sm:$0xff] }
 0x358   :  { %1633 = vmatmul.mubr.f32.vlgmr.msra.gmra.mrb[4].mxu0 %v1215_v15  ;;  %1775 = vmatmul.mubr.f32.vlgmr.msra.gmra.mrb[4].mxu1 %v1215_v15  ;;  %v1842_v15 = vld [vmem:[#allocation5 + $0x19a0] sm:$0xff]  ;;  %v1877_v63 = vld [vmem:[#allocation5 + $0x1ab8] sm:$0xff] }
 0x359   :  { %3156 = vmatpush1.bf16.msra.mxu0 %v3155_v12  ;;  %3284 = vmatpush1.bf16.msra.mxu1 %v3283_v13  ;;  %v1845_v12 = vld [vmem:[#allocation5 + $0x19b8] sm:$0xff]  ;;  %v3175_v13 = vpack.c.bf16 %v1834_v32, %v1830_v4  ;;  %v1870_v4 = vld [vmem:[#allocation5 + $0x1a80] sm:$0xff] }
 0x35a   :  { %3158 = vmatprep.subr.bf16.mxu0 %v3157_v16  ;;  %3286 = vmatprep.subr.bf16.mxu1 %v3285_v17  ;;  %v3177_v16 = vpack.c.bf16 %v1843_v10, %v1839_v9  ;;  %v3305_v17 = vpack.c.bf16 %v1845_v12, %v1841_v11  ;;  %v1874_v32 = vld [vmem:[#allocation5 + $0x1aa0] sm:$0xff]  ;;  %v1879_v9 = vld [vmem:[#allocation5 + $0x1ac8] sm:$0xff]  ;;  %v1881_v11 = vld [vmem:[#allocation5 + $0x1ad8] sm:$0xff] }
 0x35b   :  { %v1883_v10 = vld [vmem:[#allocation5 + $0x1ae8] sm:$0xff]  ;;  %v1885_v12 = vld [vmem:[#allocation5 + $0x1af8] sm:$0xff] }
 0x35d   :  { %3160 = vmatpush1.bf16.msra.mxu0 %v3159_v24  ;;  %3288 = vmatpush1.bf16.msra.mxu1 %v3287_v25  ;;  %v3179_v24 = vpack.c.bf16 %v1842_v15, %v1838_v48  ;;  %v3307_v25 = vpack.c.bf16 %v1844_v19, %v1840_v18  ;;  %v1878_v48 = vld [vmem:[#allocation5 + $0x1ac0] sm:$0xff]  ;;  %v1880_v18 = vld [vmem:[#allocation5 + $0x1ad0] sm:$0xff] }
 0x35e   :  { %3162 = vmatprep.subr.bf16.mxu0 %v3161_v29  ;;  %3290 = vmatprep.subr.bf16.mxu1 %v3289_v30  ;;  %v3181_v29 = vpack.c.bf16 %v1851_v21, %v1847_v20  ;;  %v3309_v30 = vpack.c.bf16 %v1853_v23, %v1849_v22  ;;  %v1882_v15 = vld [vmem:[#allocation5 + $0x1ae0] sm:$0xff]  ;;  %v1884_v19 = vld [vmem:[#allocation5 + $0x1af0] sm:$0xff]  ;;  %v1887_v20 = vld [vmem:[#allocation5 + $0x1b08] sm:$0xff] }
 0x35f   :  { %v1891_v21 = vld [vmem:[#allocation5 + $0x1b28] sm:$0xff]  ;;  %v1889_v22 = vld [vmem:[#allocation5 + $0x1b18] sm:$0xff] }
 0x360   :  { %v1893_v23 = vld [vmem:[#allocation5 + $0x1b38] sm:$0xff] }
 0x361   :  { %3164 = vmatpush1.bf16.msra.mxu0 %v3163_v45  ;;  %3292 = vmatpush1.bf16.msra.mxu1 %v3291_v46  ;;  %v3183_v45 = vpack.c.bf16 %v1850_v28, %v1846_v26  ;;  %v3311_v46 = vpack.c.bf16 %v1852_v33, %v1848_v31  ;;  %v1886_v26 = vld [vmem:[#allocation5 + $0x1b00] sm:$0xff]  ;;  %v1888_v31 = vld [vmem:[#allocation5 + $0x1b10] sm:$0xff] }
 0x362   :  { %3166 = vmatprep.subr.bf16.mxu0 %v3165_v50  ;;  %3294 = vmatprep.subr.bf16.mxu1 %v3293_v51  ;;  %v3185_v50 = vpack.c.bf16 %v1859_v37, %v1855_v35  ;;  %v3313_v51 = vpack.c.bf16 %v1861_v44, %v1857_v38  ;;  %v1890_v28 = vld [vmem:[#allocation5 + $0x1b20] sm:$0xff]  ;;  %v1892_v33 = vld [vmem:[#allocation5 + $0x1b30] sm:$0xff]  ;;  %v1895_v35 = vld [vmem:[#allocation5 + $0x1b48] sm:$0xff] }
 0x363   :  { %v1899_v37 = vld [vmem:[#allocation5 + $0x1b68] sm:$0xff]  ;;  %v1897_v38 = vld [vmem:[#allocation5 + $0x1b58] sm:$0xff] }
 0x364   :  { %v1901_v44 = vld [vmem:[#allocation5 + $0x1b78] sm:$0xff] }
 0x365   :  { %3168 = vmatpush1.bf16.msra.mxu0 %v3167_v55  ;;  %3296 = vmatpush1.bf16.msra.mxu1 %v3295_v56  ;;  %v3187_v55 = vpack.c.bf16 %v1858_v49, %v1854_v47  ;;  %v3315_v56 = vpack.c.bf16 %v1860_v0, %v1856_v1  ;;  %v1894_v47 = vld [vmem:[#allocation5 + $0x1b40] sm:$0xff]  ;;  %v3205_v49 = vpack.c.bf16 %v1899_v37, %v1895_v35  ;;  %v1896_v1 = vld [vmem:[#allocation5 + $0x1b50] sm:$0xff]  ;;  %v1927_v37 = vld [vmem:[#allocation5 + $0x1c48] sm:$0xff] }
 0x366   :  { %3170 = vmatprep.subr.bf16.mxu0 %v3169_v58  ;;  %3298 = vmatprep.subr.bf16.mxu1 %v3297_v59  ;;  %v3189_v58 = vpack.c.bf16 %v1867_v39, %v1863_v52  ;;  %v3317_v59 = vpack.c.bf16 %v1869_v54, %v1865_v53  ;;  %v1900_v0 = vld [vmem:[#allocation5 + $0x1b70] sm:$0xff]  ;;  %v1903_v53 = vld [vmem:[#allocation5 + $0x1b88] sm:$0xff] }
 0x367   :  { %v3335_v39 = vpack.c.bf16 %v1900_v0, %v1896_v1  ;;  %v1907_v54 = vld [vmem:[#allocation5 + $0x1ba8] sm:$0xff]  ;;  %v1930_v1 = vld [vmem:[#allocation5 + $0x1c60] sm:$0xff] }
 0x369   :  { %3172 = vmatpush1.bf16.msra.mxu0 %v3171_v41  ;;  %3300 = vmatpush1.bf16.msra.mxu1 %v3299_v2  ;;  %v3191_v41 = vpack.c.bf16 %v1866_v57, %v1862_v27  ;;  %v3319_v2 = vpack.c.bf16 %v1868_v60, %v1864_v34  ;;  %v1909_v27 = vld [vmem:[#allocation5 + $0x1bb8] sm:$0xff]  ;;  %v1902_v57 = vld [vmem:[#allocation5 + $0x1b80] sm:$0xff]  ;;  %v1904_v60 = vld [vmem:[#allocation5 + $0x1b90] sm:$0xff] }
 0x36a   :  { %3174 = vmatprep.subr.bf16.mxu0 %v3173_v5  ;;  %3302 = vmatprep.subr.bf16.mxu1 %v3301_v6  ;;  %v3193_v5 = vpack.c.bf16 %v1875_v62, %v1871_v61  ;;  %v3321_v6 = vpack.c.bf16 %v1877_v63, %v1873_v3  ;;  %v1908_v61 = vld [vmem:[#allocation5 + $0x1bb0] sm:$0xff]  ;;  %v1911_v3 = vld [vmem:[#allocation5 + $0x1bc8] sm:$0xff] }
 0x36b   :  { %v3339_v62 = vpack.c.bf16 %v1908_v61, %v1904_v60  ;;  %v1915_v63 = vld [vmem:[#allocation5 + $0x1be8] sm:$0xff]  ;;  %v1934_v60 = vld [vmem:[#allocation5 + $0x1c80] sm:$0xff] }
 0x36c   :  { %v1938_v61 = vld [vmem:[#allocation5 + $0x1ca0] sm:$0xff] }
 0x36d   :  { %3176 = vmatpush1.bf16.msra.mxu0 %v3175_v13  ;;  %3304 = vmatpush1.bf16.msra.mxu1 %v3303_v14  ;;  %v3195_v13 = vpack.c.bf16 %v1874_v32, %v1870_v4  ;;  %v3323_v14 = vpack.c.bf16 %v1876_v8, %v1872_v7  ;;  %v1917_v4 = vld [vmem:[#allocation5 + $0x1bf8] sm:$0xff]  ;;  %v1910_v32 = vld [vmem:[#allocation5 + $0x1bc0] sm:$0xff]  ;;  %v1912_v8 = vld [vmem:[#allocation5 + $0x1bd0] sm:$0xff] }
 0x36e   :  { %3178 = vmatprep.subr.bf16.mxu0 %v3177_v16  ;;  %3306 = vmatprep.subr.bf16.mxu1 %v3305_v17  ;;  %v3197_v16 = vpack.c.bf16 %v1883_v10, %v1879_v9  ;;  %v3325_v17 = vpack.c.bf16 %v1885_v12, %v1881_v11  ;;  %v1916_v9 = vld [vmem:[#allocation5 + $0x1bf0] sm:$0xff]  ;;  %v1919_v11 = vld [vmem:[#allocation5 + $0x1c08] sm:$0xff] }
 0x36f   :  { %v3343_v10 = vpack.c.bf16 %v1916_v9, %v1912_v8  ;;  %v1923_v12 = vld [vmem:[#allocation5 + $0x1c28] sm:$0xff]  ;;  %v1942_v8 = vld [vmem:[#allocation5 + $0x1cc0] sm:$0xff] }
 0x370   :  { %v1946_v9 = vld [vmem:[#allocation5 + $0x1ce0] sm:$0xff] }
 0x371   :  { %3180 = vmatpush1.bf16.msra.mxu0 %v3179_v24  ;;  %3308 = vmatpush1.bf16.msra.mxu1 %v3307_v25  ;;  %v3199_v24 = vpack.c.bf16 %v1882_v15, %v1878_v48  ;;  %v3327_v25 = vpack.c.bf16 %v1884_v19, %v1880_v18  ;;  %v1925_v48 = vld [vmem:[#allocation5 + $0x1c38] sm:$0xff] }
 0x372   :  { %3182 = vmatprep.subr.bf16.mxu0 %v3181_v29  ;;  %3310 = vmatprep.subr.bf16.mxu1 %v3309_v30  ;;  %v3201_v29 = vpack.c.bf16 %v1891_v21, %v1887_v20  ;;  %v3329_v30 = vpack.c.bf16 %v1893_v23, %v1889_v22 }
 0x375   :  { %3184 = vmatpush1.bf16.msra.mxu0 %v3183_v45  ;;  %3312 = vmatpush1.bf16.msra.mxu1 %v3311_v46  ;;  %v3203_v45 = vpack.c.bf16 %v1890_v28, %v1886_v26  ;;  %v3331_v46 = vpack.c.bf16 %v1892_v33, %v1888_v31  ;;  %v1918_v28 = vld [vmem:[#allocation5 + $0x1c00] sm:$0xff]  ;;  %v1920_v31 = vld [vmem:[#allocation5 + $0x1c10] sm:$0xff] }
 0x376   :  { %3186 = vmatprep.subr.bf16.mxu0 %v3185_v50  ;;  %3314 = vmatprep.subr.bf16.mxu1 %v3313_v51  ;;  %v3333_v50 = vpack.c.bf16 %v1901_v44, %v1897_v38  ;;  %v1898_v51 = vld [vmem:[#allocation5 + $0x1b60] sm:$0xff]  ;;  %v1924_v33 = vld [vmem:[#allocation5 + $0x1c30] sm:$0xff]  ;;  %v1931_v44 = vld [vmem:[#allocation5 + $0x1c68] sm:$0xff] }
 0x377   :  { %v3207_v52 = vpack.c.bf16 %v1898_v51, %v1894_v47  ;;  %v1926_v51 = vld [vmem:[#allocation5 + $0x1c40] sm:$0xff] }
 0x379   :  { %3188 = vmatpush1.bf16.msra.mxu0 %v3187_v55  ;;  %3316 = vmatpush1.bf16.msra.mxu1 %v3315_v56  ;;  %v1905_v55 = vld [vmem:[#allocation5 + $0x1b98] sm:$0xff]  ;;  %v3209_v56 = vpack.c.bf16 %v1907_v54, %v1903_v53  ;;  %v1935_v53 = vld [vmem:[#allocation5 + $0x1c88] sm:$0xff]  ;;  %v3221_v54 = vpack.c.bf16 %v1931_v44, %v1927_v37  ;;  %v1958_v37 = vld [vmem:[#allocation5 + $0x1d40] sm:$0xff] }
 0x37a   :  { %3190 = vmatprep.subr.bf16.mxu0 %v3189_v58  ;;  %3318 = vmatprep.subr.bf16.mxu1 %v3317_v59  ;;  %v1906_v58 = vld [vmem:[#allocation5 + $0x1ba0] sm:$0xff]  ;;  %v3337_v59 = vpack.c.bf16 %v1909_v27, %v1905_v55  ;;  %v1937_v27 = vld [vmem:[#allocation5 + $0x1c98] sm:$0xff] }
 0x37b   :  { %v3211_v34 = vpack.c.bf16 %v1906_v58, %v1902_v57  ;;  %v1941_v57 = vld [vmem:[#allocation5 + $0x1cb8] sm:$0xff] }
 0x37d   :  { %3192 = vmatpush1.bf16.msra.mxu0 %v3191_v41  ;;  %3320 = vmatpush1.bf16.msra.mxu1 %v3319_v2  ;;  %v1913_v41 = vld [vmem:[#allocation5 + $0x1bd8] sm:$0xff]  ;;  %v3213_v2 = vpack.c.bf16 %v1915_v63, %v1911_v3  ;;  %v3353_v3 = vpack.c.bf16 %v1941_v57, %v1937_v27  ;;  %v1936_v63 = vld [vmem:[#allocation5 + $0x1c90] sm:$0xff]  ;;  %v1975_v57 = vld [vmem:[#allocation5 + $0x1dc8] sm:$0xff] }
 0x37e   :  { %3194 = vmatprep.subr.bf16.mxu0 %v3193_v5  ;;  %3322 = vmatprep.subr.bf16.mxu1 %v3321_v6  ;;  %v1914_v5 = vld [vmem:[#allocation5 + $0x1be0] sm:$0xff]  ;;  %v3341_v6 = vpack.c.bf16 %v1917_v4, %v1913_v41  ;;  %v1940_v41 = vld [vmem:[#allocation5 + $0x1cb0] sm:$0xff]  ;;  %v1947_v4 = vld [vmem:[#allocation5 + $0x1ce8] sm:$0xff] }
 0x37f   :  { %v3215_v7 = vpack.c.bf16 %v1914_v5, %v1910_v32  ;;  %v1945_v32 = vld [vmem:[#allocation5 + $0x1cd8] sm:$0xff]  ;;  %v1972_v27 = vld [vmem:[#allocation5 + $0x1db0] sm:$0xff] }
 0x380   :  { %v1949_v5 = vld [vmem:[#allocation5 + $0x1cf8] sm:$0xff] }
 0x381   :  { %3196 = vmatpush1.bf16.msra.mxu0 %v3195_v13  ;;  %3324 = vmatpush1.bf16.msra.mxu1 %v3323_v14  ;;  %v1921_v13 = vld [vmem:[#allocation5 + $0x1c18] sm:$0xff]  ;;  %v3217_v14 = vpack.c.bf16 %v1923_v12, %v1919_v11  ;;  %v3357_v11 = vpack.c.bf16 %v1949_v5, %v1945_v32  ;;  %v1944_v12 = vld [vmem:[#allocation5 + $0x1cd0] sm:$0xff]  ;;  %v1983_v32 = vld [vmem:[#allocation5 + $0x1e08] sm:$0xff] }
 0x382   :  { %3198 = vmatprep.subr.bf16.mxu0 %v3197_v16  ;;  %3326 = vmatprep.subr.bf16.mxu1 %v3325_v17  ;;  %v3345_v15 = vpack.c.bf16 %v1925_v48, %v1921_v13  ;;  %v3671_v16 = vld [vmem:[#allocation7 + $0x8] sm:$0xf]  ;;  %v1948_v13 = vld [vmem:[#allocation5 + $0x1cf0] sm:$0xff] }
 0x383   :  { %v1480_v17 = vrot.slane %v3671_v16, %v3634_v40  ;;  %v1484_v18 = vrot.slane %v3671_v16, %v3639_v42  ;;  %v1492_v19 = vrot.slane %v3671_v16, %v3642_v43  ;;  %v1955_v48 = vld [vmem:[#allocation5 + $0x1d28] sm:$0xff] }
 0x384   :  { %v1987_v5 = vld [vmem:[#allocation5 + $0x1e28] sm:$0xff] }
 0x385   :  { %3200 = vmatpush1.bf16.msra.mxu0 %v3199_v24  ;;  %3328 = vmatpush1.bf16.msra.mxu1 %v3327_v25 }
 0x386   :  { %3202 = vmatprep.subr.bf16.mxu0 %v3201_v29  ;;  %3330 = vmatprep.subr.bf16.mxu1 %v3329_v30  ;;  %v1922_v30 = vld [vmem:[#allocation5 + $0x1c20] sm:$0xff] }
 0x389   :  { %3204 = vmatpush1.bf16.msra.mxu0 %v3203_v45  ;;  %3332 = vmatpush1.bf16.msra.mxu1 %v3331_v46  ;;  %v1929_v45 = vld [vmem:[#allocation5 + $0x1c58] sm:$0xff] }
 0x38a   :  { %3206 = vmatprep.subr.bf16.mxu0 %v3205_v49  ;;  %3334 = vmatprep.subr.bf16.mxu1 %v3333_v50  ;;  %v1933_v46 = vld [vmem:[#allocation5 + $0x1c78] sm:$0xff]  ;;  %v3219_v49 = vpack.c.bf16 %v1922_v30, %v1918_v28  ;;  %v3347_v50 = vpack.c.bf16 %v1924_v33, %v1920_v31  ;;  %v1959_v28 = vld [vmem:[#allocation5 + $0x1d48] sm:$0xff] }
 0x38b   :  { %v3349_v55 = vpack.c.bf16 %v1933_v46, %v1929_v45  ;;  %v1961_v30 = vld [vmem:[#allocation5 + $0x1d58] sm:$0xff]  ;;  %v1960_v46 = vld [vmem:[#allocation5 + $0x1d50] sm:$0xff] }
 0x38c   :  { %v1965_v31 = vld [vmem:[#allocation5 + $0x1d78] sm:$0xff] }
 0x38d   :  { %3208 = vmatpush1.bf16.msra.mxu0 %v3207_v52  ;;  %3336 = vmatpush1.bf16.msra.mxu1 %v3335_v39  ;;  %v1928_v52 = vld [vmem:[#allocation5 + $0x1c50] sm:$0xff]  ;;  %v3365_v45 = vpack.c.bf16 %v1965_v31, %v1961_v30  ;;  %v1999_v30 = vld [vmem:[#allocation5 + $0x1e88] sm:$0xff] }
 0x38e   :  { %3210 = vmatprep.subr.bf16.mxu0 %v3209_v56  ;;  %3338 = vmatprep.subr.bf16.mxu1 %v3337_v59  ;;  %v1932_v39 = vld [vmem:[#allocation5 + $0x1c70] sm:$0xff]  ;;  %v1939_v56 = vld [vmem:[#allocation5 + $0x1ca8] sm:$0xff]  ;;  %v3223_v59 = vpack.c.bf16 %v1930_v1, %v1926_v51  ;;  %v1969_v51 = vld [vmem:[#allocation5 + $0x1d98] sm:$0xff] }
 0x38f   :  { %v1973_v1 = vld [vmem:[#allocation5 + $0x1db8] sm:$0xff]  ;;  %v2003_v31 = vld [vmem:[#allocation5 + $0x1ea8] sm:$0xff] }
 0x391   :  { %3212 = vmatpush1.bf16.msra.mxu0 %v3211_v34  ;;  %3340 = vmatpush1.bf16.msra.mxu1 %v3339_v62  ;;  %v3351_v34 = vpack.c.bf16 %v1932_v39, %v1928_v52  ;;  %v3225_v62 = vpack.c.bf16 %v1939_v56, %v1935_v53  ;;  %v1966_v39 = vld [vmem:[#allocation5 + $0x1d80] sm:$0xff]  ;;  %v1968_v56 = vld [vmem:[#allocation5 + $0x1d90] sm:$0xff] }
 0x392   :  { %3214 = vmatprep.subr.bf16.mxu0 %v3213_v2  ;;  %3342 = vmatprep.subr.bf16.mxu1 %v3341_v6  ;;  %v1943_v2 = vld [vmem:[#allocation5 + $0x1cc8] sm:$0xff]  ;;  %v3227_v6 = vpack.c.bf16 %v1938_v61, %v1934_v60  ;;  %v1970_v53 = vld [vmem:[#allocation5 + $0x1da0] sm:$0xff]  ;;  %v3371_v61 = vpack.c.bf16 %v1972_v27, %v1968_v56 }
 0x393   :  { %v3243_v60 = vpack.c.bf16 %v1970_v53, %v1966_v39 }
 0x395   :  { %3216 = vmatpush1.bf16.msra.mxu0 %v3215_v7  ;;  %3344 = vmatpush1.bf16.msra.mxu1 %v3343_v10  ;;  %v3355_v7 = vpack.c.bf16 %v1940_v41, %v1936_v63  ;;  %v3229_v10 = vpack.c.bf16 %v1947_v4, %v1943_v2  ;;  %v1976_v2 = vld [vmem:[#allocation5 + $0x1dd0] sm:$0xff] }
 0x396   :  { %3218 = vmatprep.subr.bf16.mxu0 %v3217_v14  ;;  %3346 = vmatprep.subr.bf16.mxu1 %v3345_v15  ;;  %v1951_v14 = vld [vmem:[#allocation5 + $0x1d08] sm:$0xff]  ;;  %v1953_v15 = vld [vmem:[#allocation5 + $0x1d18] sm:$0xff]  ;;  %v1980_v4 = vld [vmem:[#allocation5 + $0x1df0] sm:$0xff] }
 0x42b   :  { %v1634_v20 = vpop.f32.mrb[4].mxu0  ;;  %v3679_v21 = vpop.f32.mrb[4].mxu1 }
 0x42c   :  { %v3417_v22 = vadd.f32 %v1634_v20, %v1480_v17  ;;  %v1636_v23 = vpop.f32.mrb[5].mxu0  ;;  %v1778_v24 = vpop.f32.mrb[5].mxu1  ;;  %v1957_v17 = vld [vmem:[#allocation5 + $0x1d38] sm:$0xff]  ;;  %v1950_v20 = vld [vmem:[#allocation5 + $0x1d00] sm:$0xff] }
 0x42d   :  { %v3418_v25 = vadd.f32 %v1636_v23, %v1484_v18  ;;  %v3420_v26 = vadd.f32 %v1778_v24, %v1492_v19  ;;  %v3231_v18 = vpack.c.bf16 %v1946_v9, %v1942_v8  ;;  %v3359_v19 = vpack.c.bf16 %v1948_v13, %v1944_v12 }
 0x42e   :  { %v1781_v29 = vmul.f32 0.2, %v3417_v22  ;;  %v3233_v23 = vpack.c.bf16 %v1955_v48, %v1951_v14  ;;  %v3361_v24 = vpack.c.bf16 %v1957_v17, %v1953_v15  ;;  %v3375_v9 = vpack.c.bf16 %v1980_v4, %v1976_v2  ;;  %v1984_v14 = vld [vmem:[#allocation5 + $0x1e10] sm:$0xff]  ;;  %v1991_v15 = vld [vmem:[#allocation5 + $0x1e48] sm:$0xff] }
 0x42f   :  { %v1782_v35 = vmul.f32 0.2, %v3418_v25  ;;  %v1784_v38 = vmul.f32 0.2, %v3420_v26  ;;  %v3249_v12 = vpack.c.bf16 %v1987_v5, %v1983_v32  ;;  %v1988_v48 = vld [vmem:[#allocation5 + $0x1e30] sm:$0xff]  ;;  %v1995_v17 = vld [vmem:[#allocation5 + $0x1e68] sm:$0xff] }
 0x430   :  { %v1785_v0 = vmax.f32 %v3417_v22, %v1781_v29  ;;  %v1954_v22 = vld [vmem:[#allocation5 + $0x1d20] sm:$0xff]  ;;  %v1963_v29 = vld [vmem:[#allocation5 + $0x1d68] sm:$0xff]  ;;  %v2016_v32 = vld [vmem:[#allocation5 + $0x1f10] sm:$0xff] }
 0x431   :  { %v1786_v47 = vmax.f32 %v3418_v25, %v1782_v35  ;;  %v1788_v58 = vmax.f32 %v3420_v26, %v1784_v38  ;;  %v1952_v25 = vld [vmem:[#allocation5 + $0x1d10] sm:$0xff]  ;;  %v3235_v33 = vpack.c.bf16 %v1954_v22, %v1950_v20  ;;  %v1962_v38 = vld [vmem:[#allocation5 + $0x1d60] sm:$0xff]  ;;  %v3237_v44 = vpack.c.bf16 %v1963_v29, %v1959_v28 }
 0x432   :  { %v1956_v26 = vld [vmem:[#allocation5 + $0x1d30] sm:$0xff]  ;;  %v3379_v22 = vpack.c.bf16 %v1988_v48, %v1984_v14 }
 0x433   :  { %2133 = vmatprep.mubr.f32.mxu0 %v1786_v47  ;;  %2275 = vmatprep.mubr.f32.mxu1 %v1786_v47  ;;  %v3363_v35 = vpack.c.bf16 %v1956_v26, %v1952_v25  ;;  %v1964_v47 = vld [vmem:[#allocation5 + $0x1d70] sm:$0xff]  ;;  %v3253_v25 = vpack.c.bf16 %v1995_v17, %v1991_v15 }
 0x434   :  { %2134 = vmatmul.mubr.f32.vlgmr.msra.gmra.mrb[6].mxu0 %v1785_v0  ;;  %2276 = vmatmul.mubr.f32.vlgmr.msra.gmra.mrb[6].mxu1 %v1785_v0  ;;  %v3239_v0 = vpack.c.bf16 %v1962_v38, %v1958_v37  ;;  %v3367_v52 = vpack.c.bf16 %v1964_v47, %v1960_v46  ;;  %v1992_v28 = vld [vmem:[#allocation5 + $0x1e50] sm:$0xff]  ;;  %v3257_v46 = vpack.c.bf16 %v2003_v31, %v1999_v30 }
 0x435   :  { %3220 = vmatpush1.bf16.msra.mxu0 %v3219_v49  ;;  %3348 = vmatpush1.bf16.msra.mxu1 %v3347_v50  ;;  %v1967_v49 = vld [vmem:[#allocation5 + $0x1d88] sm:$0xff]  ;;  %v1996_v29 = vld [vmem:[#allocation5 + $0x1e70] sm:$0xff] }
 0x436   :  { %2204 = vmatprep.mubr.f32.mxu0 %v1788_v58  ;;  %2346 = vmatprep.mubr.f32.mxu1 %v1788_v58  ;;  %v1971_v50 = vld [vmem:[#allocation5 + $0x1da8] sm:$0xff]  ;;  %v3383_v38 = vpack.c.bf16 %v1996_v29, %v1992_v28  ;;  %v2020_v5 = vld [vmem:[#allocation5 + $0x1f30] sm:$0xff]  ;;  %v1488_v28 = vrot.slane %v3671_v16, %v3653_v36 }
 0x437   :  { %3222 = vmatprep.subr.bf16.mxu0 %v3221_v54  ;;  %3350 = vmatprep.subr.bf16.mxu1 %v3349_v55  ;;  %v3241_v54 = vpack.c.bf16 %v1971_v50, %v1967_v49  ;;  %v3369_v55 = vpack.c.bf16 %v1973_v1, %v1969_v51  ;;  %v1979_v58 = vld [vmem:[#allocation5 + $0x1de8] sm:$0xff]  ;;  %v2000_v49 = vld [vmem:[#allocation5 + $0x1e90] sm:$0xff] }
 0x438   :  { %v3245_v63 = vpack.c.bf16 %v1979_v58, %v1975_v57  ;;  %v2004_v50 = vld [vmem:[#allocation5 + $0x1eb0] sm:$0xff]  ;;  %v2007_v51 = vld [vmem:[#allocation5 + $0x1ec8] sm:$0xff] }
 0x439   :  { %3224 = vmatpush1.bf16.msra.mxu0 %v3223_v59  ;;  %3352 = vmatpush1.bf16.msra.mxu1 %v3351_v34  ;;  %v1977_v59 = vld [vmem:[#allocation5 + $0x1dd8] sm:$0xff]  ;;  %v2011_v1 = vld [vmem:[#allocation5 + $0x1ee8] sm:$0xff]  ;;  %v3387_v53 = vpack.c.bf16 %v2004_v50, %v2000_v49  ;;  %v2008_v57 = vld [vmem:[#allocation5 + $0x1ed0] sm:$0xff]  ;;  %v3419_v49 = vadd.f32 %v3679_v21, %v1488_v28 }
 0x43a   :  { %3226 = vmatprep.subr.bf16.mxu0 %v3225_v62  ;;  %3354 = vmatprep.subr.bf16.mxu1 %v3353_v3  ;;  %v1981_v34 = vld [vmem:[#allocation5 + $0x1df8] sm:$0xff]  ;;  %v1974_v62 = vld [vmem:[#allocation5 + $0x1dc0] sm:$0xff]  ;;  %v3261_v56 = vpack.c.bf16 %v2011_v1, %v2007_v51  ;;  %v2012_v58 = vld [vmem:[#allocation5 + $0x1ef0] sm:$0xff] }
 0x43b   :  { %v1978_v3 = vld [vmem:[#allocation5 + $0x1de0] sm:$0xff]  ;;  %v3373_v41 = vpack.c.bf16 %v1981_v34, %v1977_v59  ;;  %v2015_v59 = vld [vmem:[#allocation5 + $0x1f08] sm:$0xff]  ;;  %v2024_v15 = vld [vmem:[#allocation5 + $0x1f50] sm:$0xff] }
 0x43c   :  { %v3247_v8 = vpack.c.bf16 %v1978_v3, %v1974_v62  ;;  %v2019_v34 = vld [vmem:[#allocation5 + $0x1f28] sm:$0xff]  ;;  %v3391_v3 = vpack.c.bf16 %v2012_v58, %v2008_v57  ;;  %v2028_v17 = vld [vmem:[#allocation5 + $0x1f70] sm:$0xff]  ;;  %v2042_v51 = vld [vmem:[#allocation5 + $0x1fe0] sm:$0xff] }
 0x43d   :  { %3228 = vmatpush1.bf16.msra.mxu0 %v3227_v6  ;;  %3356 = vmatpush1.bf16.msra.mxu1 %v3355_v7  ;;  %v1985_v6 = vld [vmem:[#allocation5 + $0x1e18] sm:$0xff]  ;;  %v3265_v2 = vpack.c.bf16 %v2019_v34, %v2015_v59  ;;  %v2032_v31 = vld [vmem:[#allocation5 + $0x1f90] sm:$0xff]  ;;  %v2047_v21 = vld [vmem:[#allocation7 + $0xc] sm:$0xf] }
 0x43e   :  { %3230 = vmatprep.subr.bf16.mxu0 %v3229_v10  ;;  %3358 = vmatprep.subr.bf16.mxu1 %v3357_v11  ;;  %v1989_v7 = vld [vmem:[#allocation5 + $0x1e38] sm:$0xff]  ;;  %v1982_v10 = vld [vmem:[#allocation5 + $0x1e00] sm:$0xff]  ;;  %v2040_v1 = vld [vmem:[#allocation5 + $0x1fd0] sm:$0xff]  ;;  %v2064_v57 = vrot.slane %v2047_v21, %v3642_v43 }
 0x43f   :  { %v1986_v11 = vld [vmem:[#allocation5 + $0x1e20] sm:$0xff]  ;;  %v3377_v13 = vpack.c.bf16 %v1989_v7, %v1985_v6  ;;  %v2023_v6 = vld [vmem:[#allocation5 + $0x1f48] sm:$0xff] }
 0x440   :  { %v3251_v20 = vpack.c.bf16 %v1986_v11, %v1982_v10  ;;  %v2027_v7 = vld [vmem:[#allocation5 + $0x1f68] sm:$0xff]  ;;  %v3395_v11 = vpack.c.bf16 %v2020_v5, %v2016_v32 }
 0x441   :  { %3232 = vmatpush1.bf16.msra.mxu0 %v3231_v18  ;;  %3360 = vmatpush1.bf16.msra.mxu1 %v3359_v19  ;;  %v1993_v18 = vld [vmem:[#allocation5 + $0x1e58] sm:$0xff]  ;;  %v3269_v14 = vpack.c.bf16 %v2027_v7, %v2023_v6 }
 0x442   :  { %3234 = vmatprep.subr.bf16.mxu0 %v3233_v23  ;;  %3362 = vmatprep.subr.bf16.mxu1 %v3361_v24  ;;  %v1997_v19 = vld [vmem:[#allocation5 + $0x1e78] sm:$0xff]  ;;  %v1990_v23 = vld [vmem:[#allocation5 + $0x1e40] sm:$0xff] }
 0x443   :  { %v1994_v24 = vld [vmem:[#allocation5 + $0x1e60] sm:$0xff]  ;;  %v3381_v26 = vpack.c.bf16 %v1997_v19, %v1993_v18  ;;  %v2031_v18 = vld [vmem:[#allocation5 + $0x1f88] sm:$0xff] }
 0x444   :  { %v3255_v37 = vpack.c.bf16 %v1994_v24, %v1990_v23  ;;  %v2035_v19 = vld [vmem:[#allocation5 + $0x1fa8] sm:$0xff]  ;;  %v3399_v24 = vpack.c.bf16 %v2028_v17, %v2024_v15 }
 0x445   :  { %3236 = vmatpush1.bf16.msra.mxu0 %v3235_v33  ;;  %3364 = vmatpush1.bf16.msra.mxu1 %v3363_v35  ;;  %v2001_v33 = vld [vmem:[#allocation5 + $0x1e98] sm:$0xff]  ;;  %v3273_v29 = vpack.c.bf16 %v2035_v19, %v2031_v18 }
 0x446   :  { %3238 = vmatprep.subr.bf16.mxu0 %v3237_v44  ;;  %3366 = vmatprep.subr.bf16.mxu1 %v3365_v45  ;;  %v2005_v35 = vld [vmem:[#allocation5 + $0x1eb8] sm:$0xff]  ;;  %v1998_v44 = vld [vmem:[#allocation5 + $0x1e80] sm:$0xff] }
 0x447   :  { %v2002_v45 = vld [vmem:[#allocation5 + $0x1ea0] sm:$0xff]  ;;  %v3385_v47 = vpack.c.bf16 %v2005_v35, %v2001_v33  ;;  %v2036_v33 = vld [vmem:[#allocation5 + $0x1fb0] sm:$0xff]  ;;  %v2039_v35 = vld [vmem:[#allocation5 + $0x1fc8] sm:$0xff] }
 0x448   :  { %v3259_v39 = vpack.c.bf16 %v2002_v45, %v1998_v44  ;;  %v2045_v44 = vld [vmem:[#allocation5 + $0x1ff8] sm:$0xff] }
 0x449   :  { %3240 = vmatpush1.bf16.msra.mxu0 %v3239_v0  ;;  %3368 = vmatpush1.bf16.msra.mxu1 %v3367_v52  ;;  %v2009_v0 = vld [vmem:[#allocation5 + $0x1ed8] sm:$0xff] }
 0x44a   :  { %3242 = vmatprep.subr.bf16.mxu0 %v3241_v54  ;;  %3370 = vmatprep.subr.bf16.mxu1 %v3369_v55  ;;  %v2013_v52 = vld [vmem:[#allocation5 + $0x1ef8] sm:$0xff]  ;;  %v2006_v54 = vld [vmem:[#allocation5 + $0x1ec0] sm:$0xff] }
 0x44b   :  { %v2010_v55 = vld [vmem:[#allocation5 + $0x1ee0] sm:$0xff]  ;;  %v3389_v27 = vpack.c.bf16 %v2013_v52, %v2009_v0  ;;  %v2044_v0 = vld [vmem:[#allocation5 + $0x1ff0] sm:$0xff] }
 0x44c   :  { %v3263_v62 = vpack.c.bf16 %v2010_v55, %v2006_v54  ;;  %v2052_v55 = vrot.slane %v2047_v21, %v3634_v40 }
 0x44d   :  { %3244 = vmatpush1.bf16.msra.mxu0 %v3243_v60  ;;  %3372 = vmatpush1.bf16.msra.mxu1 %v3371_v61  ;;  %v2017_v60 = vld [vmem:[#allocation5 + $0x1f18] sm:$0xff] }
 0x44e   :  { %3246 = vmatprep.subr.bf16.mxu0 %v3245_v63  ;;  %3374 = vmatprep.subr.bf16.mxu1 %v3373_v41  ;;  %v2021_v61 = vld [vmem:[#allocation5 + $0x1f38] sm:$0xff]  ;;  %v2014_v63 = vld [vmem:[#allocation5 + $0x1f00] sm:$0xff] }
 0x44f   :  { %v2018_v41 = vld [vmem:[#allocation5 + $0x1f20] sm:$0xff]  ;;  %v3393_v4 = vpack.c.bf16 %v2021_v61, %v2017_v60 }
 0x450   :  { %v3267_v10 = vpack.c.bf16 %v2018_v41, %v2014_v63 }
 0x451   :  { %3248 = vmatpush1.bf16.msra.mxu0 %v3247_v8  ;;  %3376 = vmatpush1.bf16.msra.mxu1 %v3375_v9  ;;  %v2025_v8 = vld [vmem:[#allocation5 + $0x1f58] sm:$0xff] }
 0x452   :  { %3250 = vmatprep.subr.bf16.mxu0 %v3249_v12  ;;  %3378 = vmatprep.subr.bf16.mxu1 %v3377_v13  ;;  %v2029_v9 = vld [vmem:[#allocation5 + $0x1f78] sm:$0xff]  ;;  %v2022_v12 = vld [vmem:[#allocation5 + $0x1f40] sm:$0xff] }
 0x453   :  { %v2026_v13 = vld [vmem:[#allocation5 + $0x1f60] sm:$0xff]  ;;  %v3397_v48 = vpack.c.bf16 %v2029_v9, %v2025_v8 }
 0x454   :  { %v3271_v23 = vpack.c.bf16 %v2026_v13, %v2022_v12 }
 0x455   :  { %3252 = vmatpush1.bf16.msra.mxu0 %v3251_v20  ;;  %3380 = vmatpush1.bf16.msra.mxu1 %v3379_v22  ;;  %v2033_v20 = vld [vmem:[#allocation5 + $0x1f98] sm:$0xff] }
 0x456   :  { %3254 = vmatprep.subr.bf16.mxu0 %v3253_v25  ;;  %3382 = vmatprep.subr.bf16.mxu1 %v3381_v26  ;;  %v2037_v22 = vld [vmem:[#allocation5 + $0x1fb8] sm:$0xff]  ;;  %v2030_v25 = vld [vmem:[#allocation5 + $0x1f80] sm:$0xff] }
 0x457   :  { %v2034_v26 = vld [vmem:[#allocation5 + $0x1fa0] sm:$0xff]  ;;  %v3401_v30 = vpack.c.bf16 %v2037_v22, %v2033_v20 }
 0x458   :  { %v3275_v45 = vpack.c.bf16 %v2034_v26, %v2030_v25 }
 0x459   :  { %3256 = vmatpush1.bf16.msra.mxu0 %v3255_v37  ;;  %3384 = vmatpush1.bf16.msra.mxu1 %v3383_v38  ;;  %v2043_v37 = vld [vmem:[#allocation5 + $0x1fe8] sm:$0xff]  ;;  %v2041_v38 = vld [vmem:[#allocation5 + $0x1fd8] sm:$0xff] }
 0x45a   :  { %3258 = vmatprep.subr.bf16.mxu0 %v3257_v46  ;;  %3386 = vmatprep.subr.bf16.mxu1 %v3385_v47  ;;  %v3403_v46 = vpack.c.bf16 %v2036_v33, %v2032_v31  ;;  %v2038_v47 = vld [vmem:[#allocation5 + $0x1fc0] sm:$0xff]  ;;  %v3277_v16 = vpack.c.bf16 %v2043_v37, %v2039_v35  ;;  %v3405_v50 = vpack.c.bf16 %v2045_v44, %v2041_v38 }
 0x45b   :  { %v3279_v52 = vpack.c.bf16 %v2042_v51, %v2038_v47 }
 0x45d   :  { %3260 = vmatpush1.bf16.msra.mxu0 %v3259_v39  ;;  %3388 = vmatpush1.bf16.msra.mxu1 %v3387_v53  ;;  %v3407_v39 = vpack.c.bf16 %v2044_v0, %v2040_v1  ;;  %v1783_v53 = vmul.f32 0.2, %v3419_v49 }
 0x45e   :  { %3262 = vmatprep.subr.bf16.mxu0 %v3261_v56  ;;  %3390 = vmatprep.subr.bf16.mxu1 %v3389_v27  ;;  %v2060_v56 = vrot.slane %v2047_v21, %v3653_v36  ;;  %v2056_v27 = vrot.slane %v2047_v21, %v3639_v42 }
 0x45f   :  { %v1787_v54 = vmax.f32 %v3419_v49, %v1783_v53 }
 0x461   :  { %3264 = vmatpush1.bf16.msra.mxu0 %v3263_v62  ;;  %3392 = vmatpush1.bf16.msra.mxu1 %v3391_v3 }
 0x462   :  { %3266 = vmatprep.subr.bf16.mxu0 %v3265_v2  ;;  %3394 = vmatprep.subr.bf16.mxu1 %v3393_v4 }
 0x465   :  { %3268 = vmatpush1.bf16.msra.mxu0 %v3267_v10  ;;  %3396 = vmatpush1.bf16.msra.mxu1 %v3395_v11 }
 0x466   :  { %3270 = vmatprep.subr.bf16.mxu0 %v3269_v14  ;;  %3398 = vmatprep.subr.bf16.mxu1 %v3397_v48 }
 0x469   :  { %3272 = vmatpush1.bf16.msra.mxu0 %v3271_v23  ;;  %3400 = vmatpush1.bf16.msra.mxu1 %v3399_v24 }
 0x46a   :  { %3274 = vmatprep.subr.bf16.mxu0 %v3273_v29  ;;  %3402 = vmatprep.subr.bf16.mxu1 %v3401_v30 }
 0x46d   :  { %3276 = vmatpush1.bf16.msra.mxu0 %v3275_v45  ;;  %3404 = vmatpush1.bf16.msra.mxu1 %v3403_v46 }
 0x46e   :  { %3278 = vmatprep.subr.bf16.mxu0 %v3277_v16  ;;  %3406 = vmatprep.subr.bf16.mxu1 %v3405_v50 }
 0x471   :  { %3280 = vmatpush1.bf16.msra.mxu0 %v3279_v52  ;;  %3408 = vmatpush1.bf16.msra.mxu1 %v3407_v39 }
 0x474   :  { %2205 = vmatmul.mubr.f32.vlgmr.msra.gmra.mrb[6].mxu0 %v1787_v54  ;;  %2347 = vmatmul.mubr.f32.vlgmr.msra.gmra.mrb[6].mxu1 %v1787_v54 }
 0x547   :  { %v2206_v58 = vpop.f32.mrb[6].mxu0  ;;  %v2348_v59 = vpop.f32.mrb[6].mxu1 }
 0x548   :  { %v3421_v34 = vadd.f32 %v2206_v58, %v2052_v55  ;;  %v3423_v60 = vadd.f32 %v2348_v59, %v2060_v56  ;;  %v2208_v61 = vpop.f32.mrb[7].mxu0  ;;  %v2350_v62 = vpop.f32.mrb[7].mxu1 }
 0x549   :  { %v3422_v3 = vadd.f32 %v2208_v61, %v2056_v27  ;;  %v3424_v63 = vadd.f32 %v2350_v62, %v2064_v57 }
 0x54a   :  { %v2353_v41 = vmul.f32 0.2, %v3421_v34  ;;  %v2355_v2 = vmul.f32 0.2, %v3423_v60 }
 0x54b   :  { %v2354_v4 = vmul.f32 0.2, %v3422_v3  ;;  %v2356_v32 = vmul.f32 0.2, %v3424_v63 }
 0x54c   :  { %v2357_v5 = vmax.f32 %v3421_v34, %v2353_v41  ;;  %v2359_v40 = vmax.f32 %v3423_v60, %v2355_v2 }
 0x54d   :  { %v2358_v36 = vmax.f32 %v3422_v3, %v2354_v4  ;;  %v2360_v42 = vmax.f32 %v3424_v63, %v2356_v32 }
 0x54e   :  { %v2361_v6 = vmul.f32 1.4142135, %v2357_v5  ;;  %v2363_v43 = vmul.f32 1.4142135, %v2359_v40 }
 0x54f   :  { %v2362_v7 = vmul.f32 1.4142135, %v2358_v36  ;;  %v2364_v8 = vmul.f32 1.4142135, %v2360_v42 }
 0x550   :  { %2365 = vst [vmem:[#allocation8] sm:$0xff] %v2361_v6  ;;  %2367 = vst [vmem:[#allocation8 + $0x10] sm:$0xff] %v2363_v43 }
 0x551   :  { %2366 = vst [vmem:[#allocation8 + $0x8] sm:$0xff] %v2362_v7  ;;  %2368 = vst [vmem:[#allocation8 + $0x18] sm:$0xff] %v2364_v8 }
 0x552   :  { %3529 = shalt.err (!%p3526_p0)
}
 0x553   :  { %s3530_s27 = scalar_lea.hbm %s3703_s3, 512 }
 0x554   :  { %p3531_p1 = scmp.ne.s32.totalorder %s3703_s3, %s3530_s27  ;;  %p3534_p2 = scmp.lt.u32.totalorder %s3530_s27, %s3703_s3 }
 0x556   :  { %p3536_p3 = pnand %p3534_p2, %p3531_p1 }
 0x558   :  { %3539 = shalt.err (!%p3536_p3)
}
 0x559   :  { %2378 = dma.vmem_to_hbm [thread:$0]  %s2376_s23, 512, %s3703_s3, [#allocation4]  }
 0x55a   :  { %3544 = dma.done.wait [#allocation4], 512  }
 0x55b   :  { %3545 = vsyncadd [#allocation4], 4294966784 }
 0x55c   :  { %2382 = vsyncpa [#allocation3], 1 }
 0x55d   :  { %2383 = vsyncpa [#allocation6], 1 }
 0x55e   :  { %2384 = vsyncpa [#allocation4], 1 }

</bundles_post_ra>
